<compile_context>
chip_gen: v5e
topology: v5e:2x2
jax: 0.10.0
libtpu: 0.0.40
codegen_flags: <defaults>
</compile_context>

<pallas_src>
import functools

import jax
import jax.numpy as jnp
from jax.experimental import pallas as pl
from jax.experimental.pallas import tpu as pltpu

LN_EPS = 1e-5
_VMEM_LIMIT = 48 * 1024 * 1024   # above default scoped limits, below v7x physical 64 MiB


def _ceil_to(x, m):
    return (x + m - 1) // m * m


def _layernorm(x, w, b):
    mu = jnp.mean(x, axis=-1, keepdims=True)
    xc = x - mu
    var = jnp.mean(xc * xc, axis=-1, keepdims=True)
    return xc * jax.lax.rsqrt(var + LN_EPS) * w + b


# ---------------------------------------------------------------------------
# Kernel 1: fused LayerNorm -> qkv -> MHSA -> proj [-> fc] [+ residual]
#           processes G sequences of (padded) length Np per grid step.
# ---------------------------------------------------------------------------
def _make_ln_attn_kernel(num_heads, n_valid, with_fc, residual_mode):
    def kernel(x_ref, lnw_ref, lnb_ref, wqkv_ref, wproj_ref, bproj_ref, *rest):
        if with_fc:
            wfc_ref, bfc_ref, o_ref = rest
        else:
            (o_ref,) = rest

        x3 = x_ref[...].astype(jnp.float32)                  # (G, Np, C)
        G, Np, C = x3.shape
        hd = C // num_heads

        # Fat 2-D matmuls over all G*Np tokens (Np is a multiple of 8, so the
        # (G, Np, C) <-> (G*Np, C) reshapes are layout no-ops).
        x2 = x3.reshape(G * Np, C)
        xn = _layernorm(x2, lnw_ref[0], lnb_ref[0])

        # qkv projection; attention scale already folded into the q columns.
        qkv = jnp.dot(xn.astype(jnp.bfloat16), wqkv_ref[...],
                      preferred_element_type=jnp.float32)    # (G*Np, 3C) f32
        qkv3 = qkv.reshape(G, Np, 3 * C)

        if n_valid < Np:                                     # mask padded key columns
            col = jax.lax.broadcasted_iota(jnp.int32, (1, 1, Np), 2)
            kmask = col < n_valid
        else:
            kmask = None

        # Per-head attention, batched over the G sequences (single-batch-dim einsums).
        # TODO(synk): the unrolled head loop + lane concat could be replaced by a
        #             head-batched dot_general once multi-batch-dim matmuls lower cleanly.
        head_outs = []
        for h in range(num_heads):
            q = qkv3[:, :, h * hd:(h + 1) * hd].astype(jnp.bfloat16)
            k = qkv3[:, :, C + h * hd:C + (h + 1) * hd].astype(jnp.bfloat16)
            v = qkv3[:, :, 2 * C + h * hd:2 * C + (h + 1) * hd].astype(jnp.bfloat16)
            s = jnp.einsum('gqd,gkd->gqk', q, k,
                           preferred_element_type=jnp.float32)       # (G, Np, Np)
            if kmask is not None:
                s = jnp.where(kmask, s, -1e30)
            s = s - jnp.max(s, axis=-1, keepdims=True)
            e = jnp.exp(s)
            p = e * pl.reciprocal(jnp.sum(e, axis=-1, keepdims=True), approx=True)
            head_outs.append(jnp.einsum('gqk,gkd->gqd', p.astype(jnp.bfloat16), v,
                                        preferred_element_type=jnp.float32))
        ctx = jnp.concatenate(head_outs, axis=-1)            # (G, Np, C) f32

        out = jnp.dot(ctx.reshape(G * Np, C).astype(jnp.bfloat16), wproj_ref[...],
                      preferred_element_type=jnp.float32) + bproj_ref[0]
        if with_fc:                                          # fused temporal_fc
            out = jnp.dot(out.astype(jnp.bfloat16), wfc_ref[...],
                          preferred_element_type=jnp.float32) + bfc_ref[0]

        out3 = out.reshape(G, Np, C)
        if residual_mode == "all":                           # x + attn-branch
            out3 = out3 + x3
        elif residual_mode == "skip_first":                  # residual for all rows but cls
            tok = jax.lax.broadcasted_iota(jnp.int32, (1, Np, 1), 1)
            out3 = out3 + jnp.where(tok > 0, x3, 0.0)
        o_ref[...] = out3.astype(o_ref.dtype)

    return kernel


def fused_ln_attention(x, ln_w, ln_b, w_qkv_t, w_proj_t, b_proj, num_heads,
                       w_fc_t=None, b_fc=None, residual="none"):
    """LayerNorm -> MHSA -> proj [-> fc] [+ residual].  x: (Bt, N, C)."""
    Bt, N, C = x.shape
    scale = (C // num_heads) ** -0.5

    # Fold the attention scale into the q columns of Wqkv; bf16 the big operands.
    col_scale = jnp.concatenate([jnp.full((C,), scale, jnp.float32),
                                 jnp.ones((2 * C,), jnp.float32)])
    wqkv = (w_qkv_t.astype(jnp.float32) * col_scale[None, :]).astype(jnp.bfloat16)
    wproj = w_proj_t.astype(jnp.bfloat16)
    with_fc = w_fc_t is not None

    # Pad token count to a multiple of 8 sublanes; batch G sequences per grid step.
    Np = _ceil_to(N, 8)
    G = max(1, min(64, -(-256 // Np)))
    G = min(G, Bt)
    Bt_pad = _ceil_to(Bt, G)
    xp = jnp.pad(x, ((0, Bt_pad - Bt), (0, Np - N), (0, 0)))

    kernel = _make_ln_attn_kernel(num_heads=num_heads, n_valid=N,
                                  with_fc=with_fc, residual_mode=residual)

    ins = [xp, ln_w.reshape(1, C), ln_b.reshape(1, C), wqkv, wproj,
           b_proj.reshape(1, C)]
    in_specs = [
        pl.BlockSpec((G, Np, C), lambda b: (b, 0, 0)),
        pl.BlockSpec((1, C), lambda b: (0, 0)),
        pl.BlockSpec((1, C), lambda b: (0, 0)),
        pl.BlockSpec((C, 3 * C), lambda b: (0, 0)),
        pl.BlockSpec((C, C), lambda b: (0, 0)),
        pl.BlockSpec((1, C), lambda b: (0, 0)),
    ]
    if with_fc:
        ins += [w_fc_t.astype(jnp.bfloat16), b_fc.reshape(1, C)]
        in_specs += [pl.BlockSpec((C, C), lambda b: (0, 0)),
                     pl.BlockSpec((1, C), lambda b: (0, 0))]

    out = pl.pallas_call(
        kernel,
        out_shape=jax.ShapeDtypeStruct((Bt_pad, Np, C), x.dtype),
        grid=(Bt_pad // G,),
        in_specs=in_specs,
        out_specs=pl.BlockSpec((G, Np, C), lambda b: (b, 0, 0)),
        compiler_params=pltpu.CompilerParams(
            dimension_semantics=("parallel",),
            vmem_limit_bytes=_VMEM_LIMIT),
    )(*ins)
    return out[:Bt, :N, :]


# ---------------------------------------------------------------------------
# Kernel 2: fused LayerNorm -> fc1 -> GELU(erf) -> fc2 -> + residual
#           operates on a flat (rows, C) token slab, TR rows per grid step.
# ---------------------------------------------------------------------------
def _ln_mlp_kernel(x_ref, lnw_ref, lnb_ref, w1_ref, b1_ref, w2_ref, b2_ref, o_ref):
    x = x_ref[...].astype(jnp.float32)                        # (TR, C)
    xn = _layernorm(x, lnw_ref[0], lnb_ref[0])
    h = jnp.dot(xn.astype(jnp.bfloat16), w1_ref[...],
                preferred_element_type=jnp.float32) + b1_ref[0]
    h = 0.5 * h * (1.0 + jax.lax.erf(h * (2.0 ** -0.5)))      # exact GELU (nn.GELU default)
    y = jnp.dot(h.astype(jnp.bfloat16), w2_ref[...],
                preferred_element_type=jnp.float32) + b2_ref[0]
    o_ref[...] = (x + y).astype(o_ref.dtype)                  # residual fused in


def fused_ln_mlp(x, ln_w, ln_b, w1_t, b1, w2_t, b2):
    Bsz, Np1, C = x.shape
    Hf = w1_t.shape[1]
    rows = Bsz * Np1
    TR = min(256, _ceil_to(rows, 8))
    R_pad = _ceil_to(rows, TR)
    x2 = jnp.pad(x.reshape(rows, C), ((0, R_pad - rows), (0, 0)))

    out = pl.pallas_call(
        _ln_mlp_kernel,
        out_shape=jax.ShapeDtypeStruct((R_pad, C), x.dtype),
        grid=(R_pad // TR,),
        in_specs=[
            pl.BlockSpec((TR, C), lambda r: (r, 0)),
            pl.BlockSpec((1, C), lambda r: (0, 0)),
            pl.BlockSpec((1, C), lambda r: (0, 0)),
            pl.BlockSpec((C, Hf), lambda r: (0, 0)),
            pl.BlockSpec((1, Hf), lambda r: (0, 0)),
            pl.BlockSpec((Hf, C), lambda r: (0, 0)),
            pl.BlockSpec((1, C), lambda r: (0, 0)),
        ],
        out_specs=pl.BlockSpec((TR, C), lambda r: (r, 0)),
        compiler_params=pltpu.CompilerParams(
            dimension_semantics=("parallel",),
            vmem_limit_bytes=_VMEM_LIMIT),
    )(x2, ln_w.reshape(1, C), ln_b.reshape(1, C),
      w1_t.astype(jnp.bfloat16), b1.reshape(1, Hf),
      w2_t.astype(jnp.bfloat16), b2.reshape(1, C))
    return out[:rows].reshape(Bsz, Np1, C)


# ---------------------------------------------------------------------------
# Block forward (divided_space_time)
# ---------------------------------------------------------------------------
def block_forward(x, params, B, T, W, num_heads):
    _, Np1, C = x.shape
    num_spatial = (Np1 - 1) // T
    H = num_spatial // W

    # ------- temporal attention: 'b (h w t) m -> (b h w) t m' -------
    xt_in = x[:, 1:, :].reshape(B * H * W, T, C)
    # fused in-kernel: xt_seq + temporal_fc(proj(attn(temporal_norm1(xt_seq))))
    xt = fused_ln_attention(xt_in, params["t_ln_w"], params["t_ln_b"],
                            params["t_wqkv"], params["t_wproj"], params["t_bproj"],
                            num_heads, w_fc_t=params["tfc_w"], b_fc=params["tfc_b"],
                            residual="all")
    xt = xt.reshape(B, H * W * T, C)                       # == x[:,1:,:] + res_temporal

    # ------- spatial attention: 'b (h w t) m -> (b t) (h w) m' -------
    # TODO(synk): the (h w t)<->(t h w) regrouping stays as XLA transposes (extra HBM
    # round trips); expressing it as an in-kernel strided gather is future work.
    init_cls = x[:, 0:1, :]
    cls_rep = jnp.broadcast_to(init_cls, (B, T, C)).reshape(B * T, 1, C)
    xs = xt.reshape(B, H, W, T, C).transpose(0, 3, 1, 2, 4).reshape(B * T, H * W, C)
    xs = jnp.concatenate([cls_rep, xs], axis=1)            # (B*T, 1+H*W, C)
    # fused in-kernel: spatial rows get the xt residual added; cls row is raw attn out.
    out_s = fused_ln_attention(xs, params["ln1_w"], params["ln1_b"],
                               params["s_wqkv"], params["s_wproj"], params["s_bproj"],
                               num_heads, residual="skip_first")
    cls_new = init_cls + out_s[:, 0, :].reshape(B, T, C).mean(axis=1, keepdims=True)
    sp = out_s[:, 1:, :].reshape(B, T, H, W, C).transpose(0, 2, 3, 1, 4)
    sp = sp.reshape(B, H * W * T, C)                       # == xt + res_spatial
    x_mid = jnp.concatenate([cls_new, sp], axis=1)

    # ------- norm2 + MLP (+ residual, fused) -------
    return fused_ln_mlp(x_mid, params["ln2_w"], params["ln2_b"],
                        params["fc1_w"], params["fc1_b"],
                        params["fc2_w"], params["fc2_b"])


def init_params(key, dim, num_heads, mlp_ratio=4.0):
    hidden = int(dim * mlp_ratio)
    ks = jax.random.split(key, 16)
    n = lambda k, shape, s=0.02: (s * jax.random.normal(k, shape)).astype(jnp.float32)
    return {
        # spatial attention (self.norm1 / self.attn), qkv_bias=False
        "ln1_w": 1.0 + n(ks[0], (dim,)), "ln1_b": n(ks[1], (dim,)),
        "s_wqkv": n(ks[2], (dim, 3 * dim)),                 # pre-transposed (C, 3C)
        "s_wproj": n(ks[3], (dim, dim)), "s_bproj": n(ks[4], (dim,)),
        # temporal attention (self.temporal_norm1 / self.temporal_attn)
        "t_ln_w": 1.0 + n(ks[5], (dim,)), "t_ln_b": n(ks[6], (dim,)),
        "t_wqkv": n(ks[7], (dim, 3 * dim)),
        "t_wproj": n(ks[8], (dim, dim)), "t_bproj": n(ks[9], (dim,)),
        # temporal_fc
        "tfc_w": n(ks[10], (dim, dim)), "tfc_b": n(ks[11], (dim,)),
        # norm2 + MLP
        "ln2_w": 1.0 + n(ks[12], (dim,)), "ln2_b": n(ks[13], (dim,)),
        "fc1_w": n(ks[14], (dim, hidden)), "fc1_b": jnp.zeros((hidden,), jnp.float32),
        "fc2_w": n(ks[15], (hidden, dim)), "fc2_b": jnp.zeros((dim,), jnp.float32),
    }


if __name__ == "__main__":
    # Small shapes consistent with the module: B=2, T=2, H=W=2, dim=32, heads=4.
    B, T, Hh, Ww = 2, 2, 2, 2
    dim, num_heads = 32, 4
    N = 1 + Hh * Ww * T                                      # 9 tokens (cls + h*w*t)

    key = jax.random.PRNGKey(0)
    kx, kp = jax.random.split(key)
    x = jax.random.normal(kx, (B, N, dim), dtype=jnp.float32)
    params = init_params(kp, dim, num_heads)

    fwd = jax.jit(functools.partial(block_forward, B=B, T=T, W=Ww,
                                    num_heads=num_heads))
    out = fwd(x, params)
    jax.block_until_ready(out)
    assert out.shape == (B, N, dim)
    print("KERNEL_OK")
</pallas_src>

<mosaic_0001>
module attributes {stable_mosaic.version = 11 : i64} {
  func.func @kernel(%arg0: i32, %arg1: memref<8x8x32xf32, #tpu.memory_space<vmem>>, %arg2: memref<1x32xf32, #tpu.memory_space<vmem>>, %arg3: memref<1x32xf32, #tpu.memory_space<vmem>>, %arg4: memref<32x96xbf16, #tpu.memory_space<vmem>>, %arg5: memref<32x32xbf16, #tpu.memory_space<vmem>>, %arg6: memref<1x32xf32, #tpu.memory_space<vmem>>, %arg7: memref<32x32xbf16, #tpu.memory_space<vmem>>, %arg8: memref<1x32xf32, #tpu.memory_space<vmem>>, %arg9: memref<8x8x32xf32, #tpu.memory_space<vmem>>) attributes {dimension_semantics = [#tpu.dimension_semantics<parallel>], iteration_bounds = array<i64: 1>, scalar_prefetch = 0 : i64, scratch_operands = 0 : i64, tpu.core_type = #tpu.core_type<tc>, window_params = [{transform_indices = @transform_0, window_bounds = array<i64: 8, 8, 32>}, {pipeline_mode = #tpu.pipeline_mode<synchronous>, transform_indices = @transform_1, window_bounds = array<i64: 1, 32>}, {pipeline_mode = #tpu.pipeline_mode<synchronous>, transform_indices = @transform_2, window_bounds = array<i64: 1, 32>}, {pipeline_mode = #tpu.pipeline_mode<synchronous>, transform_indices = @transform_3, window_bounds = array<i64: 32, 96>}, {pipeline_mode = #tpu.pipeline_mode<synchronous>, transform_indices = @transform_4, window_bounds = array<i64: 32, 32>}, {pipeline_mode = #tpu.pipeline_mode<synchronous>, transform_indices = @transform_5, window_bounds = array<i64: 1, 32>}, {pipeline_mode = #tpu.pipeline_mode<synchronous>, transform_indices = @transform_6, window_bounds = array<i64: 32, 32>}, {pipeline_mode = #tpu.pipeline_mode<synchronous>, transform_indices = @transform_7, window_bounds = array<i64: 1, 32>}, {transform_indices = @transform_8, window_bounds = array<i64: 8, 8, 32>}]} {
    %c0 = arith.constant 0 : index
    %c0_0 = arith.constant 0 : index
    %c0_1 = arith.constant 0 : index
    %0 = vector.load %arg1[%c0, %c0_0, %c0_1] : memref<8x8x32xf32, #tpu.memory_space<vmem>>, vector<8x8x32xf32>
    %1 = vector.shape_cast %0 : vector<8x8x32xf32> to vector<64x32xf32>
    %c0_2 = arith.constant 0 : index
    %c0_3 = arith.constant 0 : index
    %2 = vector.load %arg2[%c0_2, %c0_3] : memref<1x32xf32, #tpu.memory_space<vmem>>, vector<1x32xf32>
    %3 = vector.shape_cast %2 : vector<1x32xf32> to vector<32xf32>
    %c0_4 = arith.constant 0 : index
    %c0_5 = arith.constant 0 : index
    %4 = vector.load %arg3[%c0_4, %c0_5] : memref<1x32xf32, #tpu.memory_space<vmem>>, vector<1x32xf32>
    %5 = vector.shape_cast %4 : vector<1x32xf32> to vector<32xf32>
    %cst = arith.constant dense<0.000000e+00> : vector<64xf32>
    %6 = vector.multi_reduction <add>, %1, %cst [1] : vector<64x32xf32> to vector<64xf32>
    %7 = vector.shape_cast %6 : vector<64xf32> to vector<64x1xf32>
    %cst_6 = arith.constant 3.200000e+01 : f32
    %8 = vector.broadcast %cst_6 : f32 to vector<64x1xf32>
    %9 = arith.divf %7, %8 : vector<64x1xf32>
    %10 = vector.broadcast %9 : vector<64x1xf32> to vector<64x32xf32>
    %11 = arith.subf %1, %10 : vector<64x32xf32>
    %12 = arith.mulf %11, %11 : vector<64x32xf32>
    %cst_7 = arith.constant dense<0.000000e+00> : vector<64xf32>
    %13 = vector.multi_reduction <add>, %12, %cst_7 [1] : vector<64x32xf32> to vector<64xf32>
    %14 = vector.shape_cast %13 : vector<64xf32> to vector<64x1xf32>
    %cst_8 = arith.constant 3.200000e+01 : f32
    %15 = vector.broadcast %cst_8 : f32 to vector<64x1xf32>
    %16 = arith.divf %14, %15 : vector<64x1xf32>
    %cst_9 = arith.constant 9.99999974E-6 : f32
    %17 = vector.broadcast %cst_9 : f32 to vector<64x1xf32>
    %18 = arith.addf %16, %17 : vector<64x1xf32>
    %19 = math.rsqrt %18 : vector<64x1xf32>
    %20 = vector.broadcast %19 : vector<64x1xf32> to vector<64x32xf32>
    %21 = arith.mulf %11, %20 : vector<64x32xf32>
    %22 = vector.shape_cast %3 : vector<32xf32> to vector<1x32xf32>
    %23 = vector.broadcast %22 : vector<1x32xf32> to vector<64x32xf32>
    %24 = arith.mulf %21, %23 : vector<64x32xf32>
    %25 = vector.shape_cast %5 : vector<32xf32> to vector<1x32xf32>
    %26 = vector.broadcast %25 : vector<1x32xf32> to vector<64x32xf32>
    %27 = arith.addf %24, %26 : vector<64x32xf32>
    %28 = arith.truncf %27 : vector<64x32xf32> to vector<64x32xbf16>
    %c0_10 = arith.constant 0 : index
    %c0_11 = arith.constant 0 : index
    %29 = vector.load %arg4[%c0_10, %c0_11] : memref<32x96xbf16, #tpu.memory_space<vmem>>, vector<32x96xbf16>
    %cst_12 = arith.constant dense<0.000000e+00> : vector<64x96xf32>
    %30 = tpu.matmul %28, %29, %cst_12 {dimension_numbers = #tpu.dot_dimension_numbers<[1], [0], [0], [1], [0, 0, 1, 1], [], []>} : vector<64x32xbf16>, vector<32x96xbf16>, vector<64x96xf32> -> vector<64x96xf32>
    %31 = vector.shape_cast %30 : vector<64x96xf32> to vector<8x8x96xf32>
    %32 = tpu.iota {dimensions = array<i32: 2>} : vector<1x1x8xi32>
    %c2_i32 = arith.constant 2 : i32
    %33 = vector.broadcast %c2_i32 : i32 to vector<1x1x8xi32>
    %34 = arith.cmpi slt, %32, %33 : vector<1x1x8xi32>
    %35 = vector.extract_strided_slice %31 {offsets = [0, 0, 0], sizes = [8, 8, 8], strides = [1, 1, 1]} : vector<8x8x96xf32> to vector<8x8x8xf32>
    %36 = arith.truncf %35 : vector<8x8x8xf32> to vector<8x8x8xbf16>
    %37 = vector.extract_strided_slice %31 {offsets = [0, 0, 32], sizes = [8, 8, 8], strides = [1, 1, 1]} : vector<8x8x96xf32> to vector<8x8x8xf32>
    %38 = arith.truncf %37 : vector<8x8x8xf32> to vector<8x8x8xbf16>
    %39 = vector.extract_strided_slice %31 {offsets = [0, 0, 64], sizes = [8, 8, 8], strides = [1, 1, 1]} : vector<8x8x96xf32> to vector<8x8x8xf32>
    %40 = arith.truncf %39 : vector<8x8x8xf32> to vector<8x8x8xbf16>
    "tpu.trace_start"() <{level = 10 : i32, message = "gqd,gkd->gqk"}> : () -> ()
    %cst_13 = arith.constant dense<0.000000e+00> : vector<8x8x8xf32>
    %41 = tpu.matmul %36, %38, %cst_13 {dimension_numbers = #tpu.dot_dimension_numbers<[2], [2], [1], [1], [0, 0, 0, 1, 1, 1], [0], [0]>} : vector<8x8x8xbf16>, vector<8x8x8xbf16>, vector<8x8x8xf32> -> vector<8x8x8xf32>
    %cst_14 = arith.constant -1.000000e+30 : f32
    "tpu.trace_stop"() : () -> ()
    %42 = vector.shape_cast %34 : vector<1x1x8xi1> to vector<1x1x8xi1>
    %43 = vector.broadcast %42 : vector<1x1x8xi1> to vector<8x8x8xi1>
    %44 = vector.broadcast %cst_14 : f32 to vector<8x8x8xf32>
    %45 = arith.select %43, %41, %44 : vector<8x8x8xi1>, vector<8x8x8xf32>
    %cst_15 = arith.constant dense<0xFF800000> : vector<8x8xf32>
    %46 = vector.multi_reduction <maximumf>, %45, %cst_15 [2] : vector<8x8x8xf32> to vector<8x8xf32>
    %47 = vector.shape_cast %46 : vector<8x8xf32> to vector<8x8x1xf32>
    %48 = vector.broadcast %47 : vector<8x8x1xf32> to vector<8x8x8xf32>
    %49 = arith.subf %45, %48 : vector<8x8x8xf32>
    %50 = math.exp %49 : vector<8x8x8xf32>
    %cst_16 = arith.constant dense<0.000000e+00> : vector<8x8xf32>
    %51 = vector.multi_reduction <add>, %50, %cst_16 [2] : vector<8x8x8xf32> to vector<8x8xf32>
    %52 = vector.shape_cast %51 : vector<8x8xf32> to vector<8x8x1xf32>
    %53 = tpu.reciprocal %52 {approx = true} : vector<8x8x1xf32> -> vector<8x8x1xf32>
    %54 = vector.broadcast %53 : vector<8x8x1xf32> to vector<8x8x8xf32>
    %55 = arith.mulf %50, %54 : vector<8x8x8xf32>
    %56 = arith.truncf %55 : vector<8x8x8xf32> to vector<8x8x8xbf16>
    "tpu.trace_start"() <{level = 10 : i32, message = "gqk,gkd->gqd"}> : () -> ()
    %cst_17 = arith.constant dense<0.000000e+00> : vector<8x8x8xf32>
    %57 = tpu.matmul %56, %40, %cst_17 {dimension_numbers = #tpu.dot_dimension_numbers<[2], [1], [1], [2], [0, 0, 0, 1, 1, 2], [0], [0]>} : vector<8x8x8xbf16>, vector<8x8x8xbf16>, vector<8x8x8xf32> -> vector<8x8x8xf32>
    "tpu.trace_stop"() : () -> ()
    %58 = vector.extract_strided_slice %31 {offsets = [0, 0, 8], sizes = [8, 8, 8], strides = [1, 1, 1]} : vector<8x8x96xf32> to vector<8x8x8xf32>
    %59 = arith.truncf %58 : vector<8x8x8xf32> to vector<8x8x8xbf16>
    %60 = vector.extract_strided_slice %31 {offsets = [0, 0, 40], sizes = [8, 8, 8], strides = [1, 1, 1]} : vector<8x8x96xf32> to vector<8x8x8xf32>
    %61 = arith.truncf %60 : vector<8x8x8xf32> to vector<8x8x8xbf16>
    %62 = vector.extract_strided_slice %31 {offsets = [0, 0, 72], sizes = [8, 8, 8], strides = [1, 1, 1]} : vector<8x8x96xf32> to vector<8x8x8xf32>
    %63 = arith.truncf %62 : vector<8x8x8xf32> to vector<8x8x8xbf16>
    "tpu.trace_start"() <{level = 10 : i32, message = "gqd,gkd->gqk"}> : () -> ()
    %cst_18 = arith.constant dense<0.000000e+00> : vector<8x8x8xf32>
    %64 = tpu.matmul %59, %61, %cst_18 {dimension_numbers = #tpu.dot_dimension_numbers<[2], [2], [1], [1], [0, 0, 0, 1, 1, 1], [0], [0]>} : vector<8x8x8xbf16>, vector<8x8x8xbf16>, vector<8x8x8xf32> -> vector<8x8x8xf32>
    %cst_19 = arith.constant -1.000000e+30 : f32
    "tpu.trace_stop"() : () -> ()
    %65 = vector.shape_cast %34 : vector<1x1x8xi1> to vector<1x1x8xi1>
    %66 = vector.broadcast %65 : vector<1x1x8xi1> to vector<8x8x8xi1>
    %67 = vector.broadcast %cst_19 : f32 to vector<8x8x8xf32>
    %68 = arith.select %66, %64, %67 : vector<8x8x8xi1>, vector<8x8x8xf32>
    %cst_20 = arith.constant dense<0xFF800000> : vector<8x8xf32>
    %69 = vector.multi_reduction <maximumf>, %68, %cst_20 [2] : vector<8x8x8xf32> to vector<8x8xf32>
    %70 = vector.shape_cast %69 : vector<8x8xf32> to vector<8x8x1xf32>
    %71 = vector.broadcast %70 : vector<8x8x1xf32> to vector<8x8x8xf32>
    %72 = arith.subf %68, %71 : vector<8x8x8xf32>
    %73 = math.exp %72 : vector<8x8x8xf32>
    %cst_21 = arith.constant dense<0.000000e+00> : vector<8x8xf32>
    %74 = vector.multi_reduction <add>, %73, %cst_21 [2] : vector<8x8x8xf32> to vector<8x8xf32>
    %75 = vector.shape_cast %74 : vector<8x8xf32> to vector<8x8x1xf32>
    %76 = tpu.reciprocal %75 {approx = true} : vector<8x8x1xf32> -> vector<8x8x1xf32>
    %77 = vector.broadcast %76 : vector<8x8x1xf32> to vector<8x8x8xf32>
    %78 = arith.mulf %73, %77 : vector<8x8x8xf32>
    %79 = arith.truncf %78 : vector<8x8x8xf32> to vector<8x8x8xbf16>
    "tpu.trace_start"() <{level = 10 : i32, message = "gqk,gkd->gqd"}> : () -> ()
    %cst_22 = arith.constant dense<0.000000e+00> : vector<8x8x8xf32>
    %80 = tpu.matmul %79, %63, %cst_22 {dimension_numbers = #tpu.dot_dimension_numbers<[2], [1], [1], [2], [0, 0, 0, 1, 1, 2], [0], [0]>} : vector<8x8x8xbf16>, vector<8x8x8xbf16>, vector<8x8x8xf32> -> vector<8x8x8xf32>
    "tpu.trace_stop"() : () -> ()
    %81 = vector.extract_strided_slice %31 {offsets = [0, 0, 16], sizes = [8, 8, 8], strides = [1, 1, 1]} : vector<8x8x96xf32> to vector<8x8x8xf32>
    %82 = arith.truncf %81 : vector<8x8x8xf32> to vector<8x8x8xbf16>
    %83 = vector.extract_strided_slice %31 {offsets = [0, 0, 48], sizes = [8, 8, 8], strides = [1, 1, 1]} : vector<8x8x96xf32> to vector<8x8x8xf32>
    %84 = arith.truncf %83 : vector<8x8x8xf32> to vector<8x8x8xbf16>
    %85 = vector.extract_strided_slice %31 {offsets = [0, 0, 80], sizes = [8, 8, 8], strides = [1, 1, 1]} : vector<8x8x96xf32> to vector<8x8x8xf32>
    %86 = arith.truncf %85 : vector<8x8x8xf32> to vector<8x8x8xbf16>
    "tpu.trace_start"() <{level = 10 : i32, message = "gqd,gkd->gqk"}> : () -> ()
    %cst_23 = arith.constant dense<0.000000e+00> : vector<8x8x8xf32>
    %87 = tpu.matmul %82, %84, %cst_23 {dimension_numbers = #tpu.dot_dimension_numbers<[2], [2], [1], [1], [0, 0, 0, 1, 1, 1], [0], [0]>} : vector<8x8x8xbf16>, vector<8x8x8xbf16>, vector<8x8x8xf32> -> vector<8x8x8xf32>
    %cst_24 = arith.constant -1.000000e+30 : f32
    "tpu.trace_stop"() : () -> ()
    %88 = vector.shape_cast %34 : vector<1x1x8xi1> to vector<1x1x8xi1>
    %89 = vector.broadcast %88 : vector<1x1x8xi1> to vector<8x8x8xi1>
    %90 = vector.broadcast %cst_24 : f32 to vector<8x8x8xf32>
    %91 = arith.select %89, %87, %90 : vector<8x8x8xi1>, vector<8x8x8xf32>
    %cst_25 = arith.constant dense<0xFF800000> : vector<8x8xf32>
    %92 = vector.multi_reduction <maximumf>, %91, %cst_25 [2] : vector<8x8x8xf32> to vector<8x8xf32>
    %93 = vector.shape_cast %92 : vector<8x8xf32> to vector<8x8x1xf32>
    %94 = vector.broadcast %93 : vector<8x8x1xf32> to vector<8x8x8xf32>
    %95 = arith.subf %91, %94 : vector<8x8x8xf32>
    %96 = math.exp %95 : vector<8x8x8xf32>
    %cst_26 = arith.constant dense<0.000000e+00> : vector<8x8xf32>
    %97 = vector.multi_reduction <add>, %96, %cst_26 [2] : vector<8x8x8xf32> to vector<8x8xf32>
    %98 = vector.shape_cast %97 : vector<8x8xf32> to vector<8x8x1xf32>
    %99 = tpu.reciprocal %98 {approx = true} : vector<8x8x1xf32> -> vector<8x8x1xf32>
    %100 = vector.broadcast %99 : vector<8x8x1xf32> to vector<8x8x8xf32>
    %101 = arith.mulf %96, %100 : vector<8x8x8xf32>
    %102 = arith.truncf %101 : vector<8x8x8xf32> to vector<8x8x8xbf16>
    "tpu.trace_start"() <{level = 10 : i32, message = "gqk,gkd->gqd"}> : () -> ()
    %cst_27 = arith.constant dense<0.000000e+00> : vector<8x8x8xf32>
    %103 = tpu.matmul %102, %86, %cst_27 {dimension_numbers = #tpu.dot_dimension_numbers<[2], [1], [1], [2], [0, 0, 0, 1, 1, 2], [0], [0]>} : vector<8x8x8xbf16>, vector<8x8x8xbf16>, vector<8x8x8xf32> -> vector<8x8x8xf32>
    "tpu.trace_stop"() : () -> ()
    %104 = vector.extract_strided_slice %31 {offsets = [0, 0, 24], sizes = [8, 8, 8], strides = [1, 1, 1]} : vector<8x8x96xf32> to vector<8x8x8xf32>
    %105 = arith.truncf %104 : vector<8x8x8xf32> to vector<8x8x8xbf16>
    %106 = vector.extract_strided_slice %31 {offsets = [0, 0, 56], sizes = [8, 8, 8], strides = [1, 1, 1]} : vector<8x8x96xf32> to vector<8x8x8xf32>
    %107 = arith.truncf %106 : vector<8x8x8xf32> to vector<8x8x8xbf16>
    %108 = vector.extract_strided_slice %31 {offsets = [0, 0, 88], sizes = [8, 8, 8], strides = [1, 1, 1]} : vector<8x8x96xf32> to vector<8x8x8xf32>
    %109 = arith.truncf %108 : vector<8x8x8xf32> to vector<8x8x8xbf16>
    "tpu.trace_start"() <{level = 10 : i32, message = "gqd,gkd->gqk"}> : () -> ()
    %cst_28 = arith.constant dense<0.000000e+00> : vector<8x8x8xf32>
    %110 = tpu.matmul %105, %107, %cst_28 {dimension_numbers = #tpu.dot_dimension_numbers<[2], [2], [1], [1], [0, 0, 0, 1, 1, 1], [0], [0]>} : vector<8x8x8xbf16>, vector<8x8x8xbf16>, vector<8x8x8xf32> -> vector<8x8x8xf32>
    %cst_29 = arith.constant -1.000000e+30 : f32
    "tpu.trace_stop"() : () -> ()
    %111 = vector.shape_cast %34 : vector<1x1x8xi1> to vector<1x1x8xi1>
    %112 = vector.broadcast %111 : vector<1x1x8xi1> to vector<8x8x8xi1>
    %113 = vector.broadcast %cst_29 : f32 to vector<8x8x8xf32>
    %114 = arith.select %112, %110, %113 : vector<8x8x8xi1>, vector<8x8x8xf32>
    %cst_30 = arith.constant dense<0xFF800000> : vector<8x8xf32>
    %115 = vector.multi_reduction <maximumf>, %114, %cst_30 [2] : vector<8x8x8xf32> to vector<8x8xf32>
    %116 = vector.shape_cast %115 : vector<8x8xf32> to vector<8x8x1xf32>
    %117 = vector.broadcast %116 : vector<8x8x1xf32> to vector<8x8x8xf32>
    %118 = arith.subf %114, %117 : vector<8x8x8xf32>
    %119 = math.exp %118 : vector<8x8x8xf32>
    %cst_31 = arith.constant dense<0.000000e+00> : vector<8x8xf32>
    %120 = vector.multi_reduction <add>, %119, %cst_31 [2] : vector<8x8x8xf32> to vector<8x8xf32>
    %121 = vector.shape_cast %120 : vector<8x8xf32> to vector<8x8x1xf32>
    %122 = tpu.reciprocal %121 {approx = true} : vector<8x8x1xf32> -> vector<8x8x1xf32>
    %123 = vector.broadcast %122 : vector<8x8x1xf32> to vector<8x8x8xf32>
    %124 = arith.mulf %119, %123 : vector<8x8x8xf32>
    %125 = arith.truncf %124 : vector<8x8x8xf32> to vector<8x8x8xbf16>
    "tpu.trace_start"() <{level = 10 : i32, message = "gqk,gkd->gqd"}> : () -> ()
    %cst_32 = arith.constant dense<0.000000e+00> : vector<8x8x8xf32>
    %126 = tpu.matmul %125, %109, %cst_32 {dimension_numbers = #tpu.dot_dimension_numbers<[2], [1], [1], [2], [0, 0, 0, 1, 1, 2], [0], [0]>} : vector<8x8x8xbf16>, vector<8x8x8xbf16>, vector<8x8x8xf32> -> vector<8x8x8xf32>
    "tpu.trace_stop"() : () -> ()
    %127 = tpu.concatenate %57, %80, %103, %126 in 2 : vector<8x8x8xf32>, vector<8x8x8xf32>, vector<8x8x8xf32>, vector<8x8x8xf32> -> vector<8x8x32xf32>
    %128 = vector.shape_cast %127 : vector<8x8x32xf32> to vector<64x32xf32>
    %129 = arith.truncf %128 : vector<64x32xf32> to vector<64x32xbf16>
    %c0_33 = arith.constant 0 : index
    %c0_34 = arith.constant 0 : index
    %130 = vector.load %arg5[%c0_33, %c0_34] : memref<32x32xbf16, #tpu.memory_space<vmem>>, vector<32x32xbf16>
    %cst_35 = arith.constant dense<0.000000e+00> : vector<64x32xf32>
    %131 = tpu.matmul %129, %130, %cst_35 {dimension_numbers = #tpu.dot_dimension_numbers<[1], [0], [0], [1], [0, 0, 1, 1], [], []>} : vector<64x32xbf16>, vector<32x32xbf16>, vector<64x32xf32> -> vector<64x32xf32>
    %c0_36 = arith.constant 0 : index
    %c0_37 = arith.constant 0 : index
    %132 = vector.load %arg6[%c0_36, %c0_37] : memref<1x32xf32, #tpu.memory_space<vmem>>, vector<1x32xf32>
    %133 = vector.shape_cast %132 : vector<1x32xf32> to vector<32xf32>
    %134 = vector.shape_cast %133 : vector<32xf32> to vector<1x32xf32>
    %135 = vector.broadcast %134 : vector<1x32xf32> to vector<64x32xf32>
    %136 = arith.addf %131, %135 : vector<64x32xf32>
    %137 = arith.truncf %136 : vector<64x32xf32> to vector<64x32xbf16>
    %c0_38 = arith.constant 0 : index
    %c0_39 = arith.constant 0 : index
    %138 = vector.load %arg7[%c0_38, %c0_39] : memref<32x32xbf16, #tpu.memory_space<vmem>>, vector<32x32xbf16>
    %cst_40 = arith.constant dense<0.000000e+00> : vector<64x32xf32>
    %139 = tpu.matmul %137, %138, %cst_40 {dimension_numbers = #tpu.dot_dimension_numbers<[1], [0], [0], [1], [0, 0, 1, 1], [], []>} : vector<64x32xbf16>, vector<32x32xbf16>, vector<64x32xf32> -> vector<64x32xf32>
    %c0_41 = arith.constant 0 : index
    %c0_42 = arith.constant 0 : index
    %140 = vector.load %arg8[%c0_41, %c0_42] : memref<1x32xf32, #tpu.memory_space<vmem>>, vector<1x32xf32>
    %141 = vector.shape_cast %140 : vector<1x32xf32> to vector<32xf32>
    %142 = vector.shape_cast %141 : vector<32xf32> to vector<1x32xf32>
    %143 = vector.broadcast %142 : vector<1x32xf32> to vector<64x32xf32>
    %144 = arith.addf %139, %143 : vector<64x32xf32>
    %145 = vector.shape_cast %144 : vector<64x32xf32> to vector<8x8x32xf32>
    %146 = arith.addf %145, %0 : vector<8x8x32xf32>
    %c0_43 = arith.constant 0 : index
    %c0_44 = arith.constant 0 : index
    %c0_45 = arith.constant 0 : index
    %147 = vector.load %arg9[%c0_43, %c0_44, %c0_45] : memref<8x8x32xf32, #tpu.memory_space<vmem>>, vector<8x8x32xf32>
    tpu.vector_store %arg9[%c0_43, %c0_44, %c0_45], %146 {strides = array<i32>} : memref<8x8x32xf32, #tpu.memory_space<vmem>>, vector<8x8x32xf32>,
    return
  }
  func.func @transform_0(%arg0: i32) -> (i32, i32, i32) {
    %c0_i32 = arith.constant 0 : i32
    %c0_i32_0 = arith.constant 0 : i32
    %c0_i32_1 = arith.constant 0 : i32
    return %arg0, %c0_i32, %c0_i32_0 : i32, i32, i32
  }
  func.func @transform_1(%arg0: i32) -> (i32, i32) {
    %c0_i32 = arith.constant 0 : i32
    %c0_i32_0 = arith.constant 0 : i32
    %c0_i32_1 = arith.constant 0 : i32
    return %c0_i32, %c0_i32_0 : i32, i32
  }
  func.func @transform_2(%arg0: i32) -> (i32, i32) {
    %c0_i32 = arith.constant 0 : i32
    %c0_i32_0 = arith.constant 0 : i32
    %c0_i32_1 = arith.constant 0 : i32
    return %c0_i32, %c0_i32_0 : i32, i32
  }
  func.func @transform_3(%arg0: i32) -> (i32, i32) {
    %c0_i32 = arith.constant 0 : i32
    %c0_i32_0 = arith.constant 0 : i32
    %c0_i32_1 = arith.constant 0 : i32
    return %c0_i32, %c0_i32_0 : i32, i32
  }
  func.func @transform_4(%arg0: i32) -> (i32, i32) {
    %c0_i32 = arith.constant 0 : i32
    %c0_i32_0 = arith.constant 0 : i32
    %c0_i32_1 = arith.constant 0 : i32
    return %c0_i32, %c0_i32_0 : i32, i32
  }
  func.func @transform_5(%arg0: i32) -> (i32, i32) {
    %c0_i32 = arith.constant 0 : i32
    %c0_i32_0 = arith.constant 0 : i32
    %c0_i32_1 = arith.constant 0 : i32
    return %c0_i32, %c0_i32_0 : i32, i32
  }
  func.func @transform_6(%arg0: i32) -> (i32, i32) {
    %c0_i32 = arith.constant 0 : i32
    %c0_i32_0 = arith.constant 0 : i32
    %c0_i32_1 = arith.constant 0 : i32
    return %c0_i32, %c0_i32_0 : i32, i32
  }
  func.func @transform_7(%arg0: i32) -> (i32, i32) {
    %c0_i32 = arith.constant 0 : i32
    %c0_i32_0 = arith.constant 0 : i32
    %c0_i32_1 = arith.constant 0 : i32
    return %c0_i32, %c0_i32_0 : i32, i32
  }
  func.func @transform_8(%arg0: i32) -> (i32, i32, i32) {
    %c0_i32 = arith.constant 0 : i32
    %c0_i32_0 = arith.constant 0 : i32
    %c0_i32_1 = arith.constant 0 : i32
    return %arg0, %c0_i32, %c0_i32_0 : i32, i32, i32
  }
}

module attributes {stable_mosaic.version = 11 : i64} {
  func.func @kernel(%arg0: i32, %arg1: memref<4x8x32xf32, #tpu.memory_space<vmem>>, %arg2: memref<1x32xf32, #tpu.memory_space<vmem>>, %arg3: memref<1x32xf32, #tpu.memory_space<vmem>>, %arg4: memref<32x96xbf16, #tpu.memory_space<vmem>>, %arg5: memref<32x32xbf16, #tpu.memory_space<vmem>>, %arg6: memref<1x32xf32, #tpu.memory_space<vmem>>, %arg7: memref<4x8x32xf32, #tpu.memory_space<vmem>>) attributes {dimension_semantics = [#tpu.dimension_semantics<parallel>], iteration_bounds = array<i64: 1>, scalar_prefetch = 0 : i64, scratch_operands = 0 : i64, tpu.core_type = #tpu.core_type<tc>, window_params = [{transform_indices = @transform_0, window_bounds = array<i64: 4, 8, 32>}, {pipeline_mode = #tpu.pipeline_mode<synchronous>, transform_indices = @transform_1, window_bounds = array<i64: 1, 32>}, {pipeline_mode = #tpu.pipeline_mode<synchronous>, transform_indices = @transform_2, window_bounds = array<i64: 1, 32>}, {pipeline_mode = #tpu.pipeline_mode<synchronous>, transform_indices = @transform_3, window_bounds = array<i64: 32, 96>}, {pipeline_mode = #tpu.pipeline_mode<synchronous>, transform_indices = @transform_4, window_bounds = array<i64: 32, 32>}, {pipeline_mode = #tpu.pipeline_mode<synchronous>, transform_indices = @transform_5, window_bounds = array<i64: 1, 32>}, {transform_indices = @transform_6, window_bounds = array<i64: 4, 8, 32>}]} {
    %c0 = arith.constant 0 : index
    %c0_0 = arith.constant 0 : index
    %c0_1 = arith.constant 0 : index
    %0 = vector.load %arg1[%c0, %c0_0, %c0_1] : memref<4x8x32xf32, #tpu.memory_space<vmem>>, vector<4x8x32xf32>
    %1 = vector.shape_cast %0 : vector<4x8x32xf32> to vector<32x32xf32>
    %c0_2 = arith.constant 0 : index
    %c0_3 = arith.constant 0 : index
    %2 = vector.load %arg2[%c0_2, %c0_3] : memref<1x32xf32, #tpu.memory_space<vmem>>, vector<1x32xf32>
    %3 = vector.shape_cast %2 : vector<1x32xf32> to vector<32xf32>
    %c0_4 = arith.constant 0 : index
    %c0_5 = arith.constant 0 : index
    %4 = vector.load %arg3[%c0_4, %c0_5] : memref<1x32xf32, #tpu.memory_space<vmem>>, vector<1x32xf32>
    %5 = vector.shape_cast %4 : vector<1x32xf32> to vector<32xf32>
    %cst = arith.constant dense<0.000000e+00> : vector<32xf32>
    %6 = vector.multi_reduction <add>, %1, %cst [1] : vector<32x32xf32> to vector<32xf32>
    %7 = vector.shape_cast %6 : vector<32xf32> to vector<32x1xf32>
    %cst_6 = arith.constant 3.200000e+01 : f32
    %8 = vector.broadcast %cst_6 : f32 to vector<32x1xf32>
    %9 = arith.divf %7, %8 : vector<32x1xf32>
    %10 = vector.broadcast %9 : vector<32x1xf32> to vector<32x32xf32>
    %11 = arith.subf %1, %10 : vector<32x32xf32>
    %12 = arith.mulf %11, %11 : vector<32x32xf32>
    %cst_7 = arith.constant dense<0.000000e+00> : vector<32xf32>
    %13 = vector.multi_reduction <add>, %12, %cst_7 [1] : vector<32x32xf32> to vector<32xf32>
    %14 = vector.shape_cast %13 : vector<32xf32> to vector<32x1xf32>
    %cst_8 = arith.constant 3.200000e+01 : f32
    %15 = vector.broadcast %cst_8 : f32 to vector<32x1xf32>
    %16 = arith.divf %14, %15 : vector<32x1xf32>
    %cst_9 = arith.constant 9.99999974E-6 : f32
    %17 = vector.broadcast %cst_9 : f32 to vector<32x1xf32>
    %18 = arith.addf %16, %17 : vector<32x1xf32>
    %19 = math.rsqrt %18 : vector<32x1xf32>
    %20 = vector.broadcast %19 : vector<32x1xf32> to vector<32x32xf32>
    %21 = arith.mulf %11, %20 : vector<32x32xf32>
    %22 = vector.shape_cast %3 : vector<32xf32> to vector<1x32xf32>
    %23 = vector.broadcast %22 : vector<1x32xf32> to vector<32x32xf32>
    %24 = arith.mulf %21, %23 : vector<32x32xf32>
    %25 = vector.shape_cast %5 : vector<32xf32> to vector<1x32xf32>
    %26 = vector.broadcast %25 : vector<1x32xf32> to vector<32x32xf32>
    %27 = arith.addf %24, %26 : vector<32x32xf32>
    %28 = arith.truncf %27 : vector<32x32xf32> to vector<32x32xbf16>
    %c0_10 = arith.constant 0 : index
    %c0_11 = arith.constant 0 : index
    %29 = vector.load %arg4[%c0_10, %c0_11] : memref<32x96xbf16, #tpu.memory_space<vmem>>, vector<32x96xbf16>
    %cst_12 = arith.constant dense<0.000000e+00> : vector<32x96xf32>
    %30 = tpu.matmul %28, %29, %cst_12 {dimension_numbers = #tpu.dot_dimension_numbers<[1], [0], [0], [1], [0, 0, 1, 1], [], []>} : vector<32x32xbf16>, vector<32x96xbf16>, vector<32x96xf32> -> vector<32x96xf32>
    %31 = vector.shape_cast %30 : vector<32x96xf32> to vector<4x8x96xf32>
    %32 = tpu.iota {dimensions = array<i32: 2>} : vector<1x1x8xi32>
    %c5_i32 = arith.constant 5 : i32
    %33 = vector.broadcast %c5_i32 : i32 to vector<1x1x8xi32>
    %34 = arith.cmpi slt, %32, %33 : vector<1x1x8xi32>
    %35 = vector.extract_strided_slice %31 {offsets = [0, 0, 0], sizes = [4, 8, 8], strides = [1, 1, 1]} : vector<4x8x96xf32> to vector<4x8x8xf32>
    %36 = arith.truncf %35 : vector<4x8x8xf32> to vector<4x8x8xbf16>
    %37 = vector.extract_strided_slice %31 {offsets = [0, 0, 32], sizes = [4, 8, 8], strides = [1, 1, 1]} : vector<4x8x96xf32> to vector<4x8x8xf32>
    %38 = arith.truncf %37 : vector<4x8x8xf32> to vector<4x8x8xbf16>
    %39 = vector.extract_strided_slice %31 {offsets = [0, 0, 64], sizes = [4, 8, 8], strides = [1, 1, 1]} : vector<4x8x96xf32> to vector<4x8x8xf32>
    %40 = arith.truncf %39 : vector<4x8x8xf32> to vector<4x8x8xbf16>
    "tpu.trace_start"() <{level = 10 : i32, message = "gqd,gkd->gqk"}> : () -> ()
    %cst_13 = arith.constant dense<0.000000e+00> : vector<4x8x8xf32>
    %41 = tpu.matmul %36, %38, %cst_13 {dimension_numbers = #tpu.dot_dimension_numbers<[2], [2], [1], [1], [0, 0, 0, 1, 1, 1], [0], [0]>} : vector<4x8x8xbf16>, vector<4x8x8xbf16>, vector<4x8x8xf32> -> vector<4x8x8xf32>
    %cst_14 = arith.constant -1.000000e+30 : f32
    "tpu.trace_stop"() : () -> ()
    %42 = vector.shape_cast %34 : vector<1x1x8xi1> to vector<1x1x8xi1>
    %43 = vector.broadcast %42 : vector<1x1x8xi1> to vector<4x8x8xi1>
    %44 = vector.broadcast %cst_14 : f32 to vector<4x8x8xf32>
    %45 = arith.select %43, %41, %44 : vector<4x8x8xi1>, vector<4x8x8xf32>
    %cst_15 = arith.constant dense<0xFF800000> : vector<4x8xf32>
    %46 = vector.multi_reduction <maximumf>, %45, %cst_15 [2] : vector<4x8x8xf32> to vector<4x8xf32>
    %47 = vector.shape_cast %46 : vector<4x8xf32> to vector<4x8x1xf32>
    %48 = vector.broadcast %47 : vector<4x8x1xf32> to vector<4x8x8xf32>
    %49 = arith.subf %45, %48 : vector<4x8x8xf32>
    %50 = math.exp %49 : vector<4x8x8xf32>
    %cst_16 = arith.constant dense<0.000000e+00> : vector<4x8xf32>
    %51 = vector.multi_reduction <add>, %50, %cst_16 [2] : vector<4x8x8xf32> to vector<4x8xf32>
    %52 = vector.shape_cast %51 : vector<4x8xf32> to vector<4x8x1xf32>
    %53 = tpu.reciprocal %52 {approx = true} : vector<4x8x1xf32> -> vector<4x8x1xf32>
    %54 = vector.broadcast %53 : vector<4x8x1xf32> to vector<4x8x8xf32>
    %55 = arith.mulf %50, %54 : vector<4x8x8xf32>
    %56 = arith.truncf %55 : vector<4x8x8xf32> to vector<4x8x8xbf16>
    "tpu.trace_start"() <{level = 10 : i32, message = "gqk,gkd->gqd"}> : () -> ()
    %cst_17 = arith.constant dense<0.000000e+00> : vector<4x8x8xf32>
    %57 = tpu.matmul %56, %40, %cst_17 {dimension_numbers = #tpu.dot_dimension_numbers<[2], [1], [1], [2], [0, 0, 0, 1, 1, 2], [0], [0]>} : vector<4x8x8xbf16>, vector<4x8x8xbf16>, vector<4x8x8xf32> -> vector<4x8x8xf32>
    "tpu.trace_stop"() : () -> ()
    %58 = vector.extract_strided_slice %31 {offsets = [0, 0, 8], sizes = [4, 8, 8], strides = [1, 1, 1]} : vector<4x8x96xf32> to vector<4x8x8xf32>
    %59 = arith.truncf %58 : vector<4x8x8xf32> to vector<4x8x8xbf16>
    %60 = vector.extract_strided_slice %31 {offsets = [0, 0, 40], sizes = [4, 8, 8], strides = [1, 1, 1]} : vector<4x8x96xf32> to vector<4x8x8xf32>
    %61 = arith.truncf %60 : vector<4x8x8xf32> to vector<4x8x8xbf16>
    %62 = vector.extract_strided_slice %31 {offsets = [0, 0, 72], sizes = [4, 8, 8], strides = [1, 1, 1]} : vector<4x8x96xf32> to vector<4x8x8xf32>
    %63 = arith.truncf %62 : vector<4x8x8xf32> to vector<4x8x8xbf16>
    "tpu.trace_start"() <{level = 10 : i32, message = "gqd,gkd->gqk"}> : () -> ()
    %cst_18 = arith.constant dense<0.000000e+00> : vector<4x8x8xf32>
    %64 = tpu.matmul %59, %61, %cst_18 {dimension_numbers = #tpu.dot_dimension_numbers<[2], [2], [1], [1], [0, 0, 0, 1, 1, 1], [0], [0]>} : vector<4x8x8xbf16>, vector<4x8x8xbf16>, vector<4x8x8xf32> -> vector<4x8x8xf32>
    %cst_19 = arith.constant -1.000000e+30 : f32
    "tpu.trace_stop"() : () -> ()
    %65 = vector.shape_cast %34 : vector<1x1x8xi1> to vector<1x1x8xi1>
    %66 = vector.broadcast %65 : vector<1x1x8xi1> to vector<4x8x8xi1>
    %67 = vector.broadcast %cst_19 : f32 to vector<4x8x8xf32>
    %68 = arith.select %66, %64, %67 : vector<4x8x8xi1>, vector<4x8x8xf32>
    %cst_20 = arith.constant dense<0xFF800000> : vector<4x8xf32>
    %69 = vector.multi_reduction <maximumf>, %68, %cst_20 [2] : vector<4x8x8xf32> to vector<4x8xf32>
    %70 = vector.shape_cast %69 : vector<4x8xf32> to vector<4x8x1xf32>
    %71 = vector.broadcast %70 : vector<4x8x1xf32> to vector<4x8x8xf32>
    %72 = arith.subf %68, %71 : vector<4x8x8xf32>
    %73 = math.exp %72 : vector<4x8x8xf32>
    %cst_21 = arith.constant dense<0.000000e+00> : vector<4x8xf32>
    %74 = vector.multi_reduction <add>, %73, %cst_21 [2] : vector<4x8x8xf32> to vector<4x8xf32>
    %75 = vector.shape_cast %74 : vector<4x8xf32> to vector<4x8x1xf32>
    %76 = tpu.reciprocal %75 {approx = true} : vector<4x8x1xf32> -> vector<4x8x1xf32>
    %77 = vector.broadcast %76 : vector<4x8x1xf32> to vector<4x8x8xf32>
    %78 = arith.mulf %73, %77 : vector<4x8x8xf32>
    %79 = arith.truncf %78 : vector<4x8x8xf32> to vector<4x8x8xbf16>
    "tpu.trace_start"() <{level = 10 : i32, message = "gqk,gkd->gqd"}> : () -> ()
    %cst_22 = arith.constant dense<0.000000e+00> : vector<4x8x8xf32>
    %80 = tpu.matmul %79, %63, %cst_22 {dimension_numbers = #tpu.dot_dimension_numbers<[2], [1], [1], [2], [0, 0, 0, 1, 1, 2], [0], [0]>} : vector<4x8x8xbf16>, vector<4x8x8xbf16>, vector<4x8x8xf32> -> vector<4x8x8xf32>
    "tpu.trace_stop"() : () -> ()
    %81 = vector.extract_strided_slice %31 {offsets = [0, 0, 16], sizes = [4, 8, 8], strides = [1, 1, 1]} : vector<4x8x96xf32> to vector<4x8x8xf32>
    %82 = arith.truncf %81 : vector<4x8x8xf32> to vector<4x8x8xbf16>
    %83 = vector.extract_strided_slice %31 {offsets = [0, 0, 48], sizes = [4, 8, 8], strides = [1, 1, 1]} : vector<4x8x96xf32> to vector<4x8x8xf32>
    %84 = arith.truncf %83 : vector<4x8x8xf32> to vector<4x8x8xbf16>
    %85 = vector.extract_strided_slice %31 {offsets = [0, 0, 80], sizes = [4, 8, 8], strides = [1, 1, 1]} : vector<4x8x96xf32> to vector<4x8x8xf32>
    %86 = arith.truncf %85 : vector<4x8x8xf32> to vector<4x8x8xbf16>
    "tpu.trace_start"() <{level = 10 : i32, message = "gqd,gkd->gqk"}> : () -> ()
    %cst_23 = arith.constant dense<0.000000e+00> : vector<4x8x8xf32>
    %87 = tpu.matmul %82, %84, %cst_23 {dimension_numbers = #tpu.dot_dimension_numbers<[2], [2], [1], [1], [0, 0, 0, 1, 1, 1], [0], [0]>} : vector<4x8x8xbf16>, vector<4x8x8xbf16>, vector<4x8x8xf32> -> vector<4x8x8xf32>
    %cst_24 = arith.constant -1.000000e+30 : f32
    "tpu.trace_stop"() : () -> ()
    %88 = vector.shape_cast %34 : vector<1x1x8xi1> to vector<1x1x8xi1>
    %89 = vector.broadcast %88 : vector<1x1x8xi1> to vector<4x8x8xi1>
    %90 = vector.broadcast %cst_24 : f32 to vector<4x8x8xf32>
    %91 = arith.select %89, %87, %90 : vector<4x8x8xi1>, vector<4x8x8xf32>
    %cst_25 = arith.constant dense<0xFF800000> : vector<4x8xf32>
    %92 = vector.multi_reduction <maximumf>, %91, %cst_25 [2] : vector<4x8x8xf32> to vector<4x8xf32>
    %93 = vector.shape_cast %92 : vector<4x8xf32> to vector<4x8x1xf32>
    %94 = vector.broadcast %93 : vector<4x8x1xf32> to vector<4x8x8xf32>
    %95 = arith.subf %91, %94 : vector<4x8x8xf32>
    %96 = math.exp %95 : vector<4x8x8xf32>
    %cst_26 = arith.constant dense<0.000000e+00> : vector<4x8xf32>
    %97 = vector.multi_reduction <add>, %96, %cst_26 [2] : vector<4x8x8xf32> to vector<4x8xf32>
    %98 = vector.shape_cast %97 : vector<4x8xf32> to vector<4x8x1xf32>
    %99 = tpu.reciprocal %98 {approx = true} : vector<4x8x1xf32> -> vector<4x8x1xf32>
    %100 = vector.broadcast %99 : vector<4x8x1xf32> to vector<4x8x8xf32>
    %101 = arith.mulf %96, %100 : vector<4x8x8xf32>
    %102 = arith.truncf %101 : vector<4x8x8xf32> to vector<4x8x8xbf16>
    "tpu.trace_start"() <{level = 10 : i32, message = "gqk,gkd->gqd"}> : () -> ()
    %cst_27 = arith.constant dense<0.000000e+00> : vector<4x8x8xf32>
    %103 = tpu.matmul %102, %86, %cst_27 {dimension_numbers = #tpu.dot_dimension_numbers<[2], [1], [1], [2], [0, 0, 0, 1, 1, 2], [0], [0]>} : vector<4x8x8xbf16>, vector<4x8x8xbf16>, vector<4x8x8xf32> -> vector<4x8x8xf32>
    "tpu.trace_stop"() : () -> ()
    %104 = vector.extract_strided_slice %31 {offsets = [0, 0, 24], sizes = [4, 8, 8], strides = [1, 1, 1]} : vector<4x8x96xf32> to vector<4x8x8xf32>
    %105 = arith.truncf %104 : vector<4x8x8xf32> to vector<4x8x8xbf16>
    %106 = vector.extract_strided_slice %31 {offsets = [0, 0, 56], sizes = [4, 8, 8], strides = [1, 1, 1]} : vector<4x8x96xf32> to vector<4x8x8xf32>
    %107 = arith.truncf %106 : vector<4x8x8xf32> to vector<4x8x8xbf16>
    %108 = vector.extract_strided_slice %31 {offsets = [0, 0, 88], sizes = [4, 8, 8], strides = [1, 1, 1]} : vector<4x8x96xf32> to vector<4x8x8xf32>
    %109 = arith.truncf %108 : vector<4x8x8xf32> to vector<4x8x8xbf16>
    "tpu.trace_start"() <{level = 10 : i32, message = "gqd,gkd->gqk"}> : () -> ()
    %cst_28 = arith.constant dense<0.000000e+00> : vector<4x8x8xf32>
    %110 = tpu.matmul %105, %107, %cst_28 {dimension_numbers = #tpu.dot_dimension_numbers<[2], [2], [1], [1], [0, 0, 0, 1, 1, 1], [0], [0]>} : vector<4x8x8xbf16>, vector<4x8x8xbf16>, vector<4x8x8xf32> -> vector<4x8x8xf32>
    %cst_29 = arith.constant -1.000000e+30 : f32
    "tpu.trace_stop"() : () -> ()
    %111 = vector.shape_cast %34 : vector<1x1x8xi1> to vector<1x1x8xi1>
    %112 = vector.broadcast %111 : vector<1x1x8xi1> to vector<4x8x8xi1>
    %113 = vector.broadcast %cst_29 : f32 to vector<4x8x8xf32>
    %114 = arith.select %112, %110, %113 : vector<4x8x8xi1>, vector<4x8x8xf32>
    %cst_30 = arith.constant dense<0xFF800000> : vector<4x8xf32>
    %115 = vector.multi_reduction <maximumf>, %114, %cst_30 [2] : vector<4x8x8xf32> to vector<4x8xf32>
    %116 = vector.shape_cast %115 : vector<4x8xf32> to vector<4x8x1xf32>
    %117 = vector.broadcast %116 : vector<4x8x1xf32> to vector<4x8x8xf32>
    %118 = arith.subf %114, %117 : vector<4x8x8xf32>
    %119 = math.exp %118 : vector<4x8x8xf32>
    %cst_31 = arith.constant dense<0.000000e+00> : vector<4x8xf32>
    %120 = vector.multi_reduction <add>, %119, %cst_31 [2] : vector<4x8x8xf32> to vector<4x8xf32>
    %121 = vector.shape_cast %120 : vector<4x8xf32> to vector<4x8x1xf32>
    %122 = tpu.reciprocal %121 {approx = true} : vector<4x8x1xf32> -> vector<4x8x1xf32>
    %123 = vector.broadcast %122 : vector<4x8x1xf32> to vector<4x8x8xf32>
    %124 = arith.mulf %119, %123 : vector<4x8x8xf32>
    %125 = arith.truncf %124 : vector<4x8x8xf32> to vector<4x8x8xbf16>
    "tpu.trace_start"() <{level = 10 : i32, message = "gqk,gkd->gqd"}> : () -> ()
    %cst_32 = arith.constant dense<0.000000e+00> : vector<4x8x8xf32>
    %126 = tpu.matmul %125, %109, %cst_32 {dimension_numbers = #tpu.dot_dimension_numbers<[2], [1], [1], [2], [0, 0, 0, 1, 1, 2], [0], [0]>} : vector<4x8x8xbf16>, vector<4x8x8xbf16>, vector<4x8x8xf32> -> vector<4x8x8xf32>
    "tpu.trace_stop"() : () -> ()
    %127 = tpu.concatenate %57, %80, %103, %126 in 2 : vector<4x8x8xf32>, vector<4x8x8xf32>, vector<4x8x8xf32>, vector<4x8x8xf32> -> vector<4x8x32xf32>
    %128 = vector.shape_cast %127 : vector<4x8x32xf32> to vector<32x32xf32>
    %129 = arith.truncf %128 : vector<32x32xf32> to vector<32x32xbf16>
    %c0_33 = arith.constant 0 : index
    %c0_34 = arith.constant 0 : index
    %130 = vector.load %arg5[%c0_33, %c0_34] : memref<32x32xbf16, #tpu.memory_space<vmem>>, vector<32x32xbf16>
    %cst_35 = arith.constant dense<0.000000e+00> : vector<32x32xf32>
    %131 = tpu.matmul %129, %130, %cst_35 {dimension_numbers = #tpu.dot_dimension_numbers<[1], [0], [0], [1], [0, 0, 1, 1], [], []>} : vector<32x32xbf16>, vector<32x32xbf16>, vector<32x32xf32> -> vector<32x32xf32>
    %c0_36 = arith.constant 0 : index
    %c0_37 = arith.constant 0 : index
    %132 = vector.load %arg6[%c0_36, %c0_37] : memref<1x32xf32, #tpu.memory_space<vmem>>, vector<1x32xf32>
    %133 = vector.shape_cast %132 : vector<1x32xf32> to vector<32xf32>
    %134 = vector.shape_cast %133 : vector<32xf32> to vector<1x32xf32>
    %135 = vector.broadcast %134 : vector<1x32xf32> to vector<32x32xf32>
    %136 = arith.addf %131, %135 : vector<32x32xf32>
    %137 = vector.shape_cast %136 : vector<32x32xf32> to vector<4x8x32xf32>
    %138 = tpu.iota {dimensions = array<i32: 1>} : vector<1x8x1xi32>
    %c0_i32 = arith.constant 0 : i32
    %139 = vector.broadcast %c0_i32 : i32 to vector<1x8x1xi32>
    %140 = arith.cmpi sgt, %138, %139 : vector<1x8x1xi32>
    %cst_38 = arith.constant 0.000000e+00 : f32
    %141 = vector.shape_cast %140 : vector<1x8x1xi1> to vector<1x8x1xi1>
    %142 = vector.broadcast %141 : vector<1x8x1xi1> to vector<4x8x32xi1>
    %143 = vector.broadcast %cst_38 : f32 to vector<4x8x32xf32>
    %144 = arith.select %142, %0, %143 : vector<4x8x32xi1>, vector<4x8x32xf32>
    %145 = arith.addf %137, %144 : vector<4x8x32xf32>
    %c0_39 = arith.constant 0 : index
    %c0_40 = arith.constant 0 : index
    %c0_41 = arith.constant 0 : index
    %146 = vector.load %arg7[%c0_39, %c0_40, %c0_41] : memref<4x8x32xf32, #tpu.memory_space<vmem>>, vector<4x8x32xf32>
    tpu.vector_store %arg7[%c0_39, %c0_40, %c0_41], %145 {strides = array<i32>} : memref<4x8x32xf32, #tpu.memory_space<vmem>>, vector<4x8x32xf32>,
    return
  }
  func.func @transform_0(%arg0: i32) -> (i32, i32, i32) {
    %c0_i32 = arith.constant 0 : i32
    %c0_i32_0 = arith.constant 0 : i32
    %c0_i32_1 = arith.constant 0 : i32
    return %arg0, %c0_i32, %c0_i32_0 : i32, i32, i32
  }
  func.func @transform_1(%arg0: i32) -> (i32, i32) {
    %c0_i32 = arith.constant 0 : i32
    %c0_i32_0 = arith.constant 0 : i32
    %c0_i32_1 = arith.constant 0 : i32
    return %c0_i32, %c0_i32_0 : i32, i32
  }
  func.func @transform_2(%arg0: i32) -> (i32, i32) {
    %c0_i32 = arith.constant 0 : i32
    %c0_i32_0 = arith.constant 0 : i32
    %c0_i32_1 = arith.constant 0 : i32
    return %c0_i32, %c0_i32_0 : i32, i32
  }
  func.func @transform_3(%arg0: i32) -> (i32, i32) {
    %c0_i32 = arith.constant 0 : i32
    %c0_i32_0 = arith.constant 0 : i32
    %c0_i32_1 = arith.constant 0 : i32
    return %c0_i32, %c0_i32_0 : i32, i32
  }
  func.func @transform_4(%arg0: i32) -> (i32, i32) {
    %c0_i32 = arith.constant 0 : i32
    %c0_i32_0 = arith.constant 0 : i32
    %c0_i32_1 = arith.constant 0 : i32
    return %c0_i32, %c0_i32_0 : i32, i32
  }
  func.func @transform_5(%arg0: i32) -> (i32, i32) {
    %c0_i32 = arith.constant 0 : i32
    %c0_i32_0 = arith.constant 0 : i32
    %c0_i32_1 = arith.constant 0 : i32
    return %c0_i32, %c0_i32_0 : i32, i32
  }
  func.func @transform_6(%arg0: i32) -> (i32, i32, i32) {
    %c0_i32 = arith.constant 0 : i32
    %c0_i32_0 = arith.constant 0 : i32
    %c0_i32_1 = arith.constant 0 : i32
    return %arg0, %c0_i32, %c0_i32_0 : i32, i32, i32
  }
}

module attributes {stable_mosaic.version = 11 : i64} {
  func.func @_ln_mlp_kernel(%arg0: i32, %arg1: memref<24x32xf32, #tpu.memory_space<vmem>>, %arg2: memref<1x32xf32, #tpu.memory_space<vmem>>, %arg3: memref<1x32xf32, #tpu.memory_space<vmem>>, %arg4: memref<32x128xbf16, #tpu.memory_space<vmem>>, %arg5: memref<1x128xf32, #tpu.memory_space<vmem>>, %arg6: memref<128x32xbf16, #tpu.memory_space<vmem>>, %arg7: memref<1x32xf32, #tpu.memory_space<vmem>>, %arg8: memref<24x32xf32, #tpu.memory_space<vmem>>) attributes {dimension_semantics = [#tpu.dimension_semantics<parallel>], iteration_bounds = array<i64: 1>, scalar_prefetch = 0 : i64, scratch_operands = 0 : i64, tpu.core_type = #tpu.core_type<tc>, window_params = [{transform_indices = @transform_0, window_bounds = array<i64: 24, 32>}, {pipeline_mode = #tpu.pipeline_mode<synchronous>, transform_indices = @transform_1, window_bounds = array<i64: 1, 32>}, {pipeline_mode = #tpu.pipeline_mode<synchronous>, transform_indices = @transform_2, window_bounds = array<i64: 1, 32>}, {pipeline_mode = #tpu.pipeline_mode<synchronous>, transform_indices = @transform_3, window_bounds = array<i64: 32, 128>}, {pipeline_mode = #tpu.pipeline_mode<synchronous>, transform_indices = @transform_4, window_bounds = array<i64: 1, 128>}, {pipeline_mode = #tpu.pipeline_mode<synchronous>, transform_indices = @transform_5, window_bounds = array<i64: 128, 32>}, {pipeline_mode = #tpu.pipeline_mode<synchronous>, transform_indices = @transform_6, window_bounds = array<i64: 1, 32>}, {transform_indices = @transform_7, window_bounds = array<i64: 24, 32>}]} {
    %c0 = arith.constant 0 : index
    %c0_0 = arith.constant 0 : index
    %0 = vector.load %arg1[%c0, %c0_0] : memref<24x32xf32, #tpu.memory_space<vmem>>, vector<24x32xf32>
    %c0_1 = arith.constant 0 : index
    %c0_2 = arith.constant 0 : index
    %1 = vector.load %arg2[%c0_1, %c0_2] : memref<1x32xf32, #tpu.memory_space<vmem>>, vector<1x32xf32>
    %2 = vector.shape_cast %1 : vector<1x32xf32> to vector<32xf32>
    %c0_3 = arith.constant 0 : index
    %c0_4 = arith.constant 0 : index
    %3 = vector.load %arg3[%c0_3, %c0_4] : memref<1x32xf32, #tpu.memory_space<vmem>>, vector<1x32xf32>
    %4 = vector.shape_cast %3 : vector<1x32xf32> to vector<32xf32>
    %cst = arith.constant dense<0.000000e+00> : vector<24xf32>
    %5 = vector.multi_reduction <add>, %0, %cst [1] : vector<24x32xf32> to vector<24xf32>
    %6 = vector.shape_cast %5 : vector<24xf32> to vector<24x1xf32>
    %cst_5 = arith.constant 3.200000e+01 : f32
    %7 = vector.broadcast %cst_5 : f32 to vector<24x1xf32>
    %8 = arith.divf %6, %7 : vector<24x1xf32>
    %9 = vector.broadcast %8 : vector<24x1xf32> to vector<24x32xf32>
    %10 = arith.subf %0, %9 : vector<24x32xf32>
    %11 = arith.mulf %10, %10 : vector<24x32xf32>
    %cst_6 = arith.constant dense<0.000000e+00> : vector<24xf32>
    %12 = vector.multi_reduction <add>, %11, %cst_6 [1] : vector<24x32xf32> to vector<24xf32>
    %13 = vector.shape_cast %12 : vector<24xf32> to vector<24x1xf32>
    %cst_7 = arith.constant 3.200000e+01 : f32
    %14 = vector.broadcast %cst_7 : f32 to vector<24x1xf32>
    %15 = arith.divf %13, %14 : vector<24x1xf32>
    %cst_8 = arith.constant 9.99999974E-6 : f32
    %16 = vector.broadcast %cst_8 : f32 to vector<24x1xf32>
    %17 = arith.addf %15, %16 : vector<24x1xf32>
    %18 = math.rsqrt %17 : vector<24x1xf32>
    %19 = vector.broadcast %18 : vector<24x1xf32> to vector<24x32xf32>
    %20 = arith.mulf %10, %19 : vector<24x32xf32>
    %21 = vector.shape_cast %2 : vector<32xf32> to vector<1x32xf32>
    %22 = vector.broadcast %21 : vector<1x32xf32> to vector<24x32xf32>
    %23 = arith.mulf %20, %22 : vector<24x32xf32>
    %24 = vector.shape_cast %4 : vector<32xf32> to vector<1x32xf32>
    %25 = vector.broadcast %24 : vector<1x32xf32> to vector<24x32xf32>
    %26 = arith.addf %23, %25 : vector<24x32xf32>
    %27 = arith.truncf %26 : vector<24x32xf32> to vector<24x32xbf16>
    %c0_9 = arith.constant 0 : index
    %c0_10 = arith.constant 0 : index
    %28 = vector.load %arg4[%c0_9, %c0_10] : memref<32x128xbf16, #tpu.memory_space<vmem>>, vector<32x128xbf16>
    %cst_11 = arith.constant dense<0.000000e+00> : vector<24x128xf32>
    %29 = tpu.matmul %27, %28, %cst_11 {dimension_numbers = #tpu.dot_dimension_numbers<[1], [0], [0], [1], [0, 0, 1, 1], [], []>} : vector<24x32xbf16>, vector<32x128xbf16>, vector<24x128xf32> -> vector<24x128xf32>
    %c0_12 = arith.constant 0 : index
    %c0_13 = arith.constant 0 : index
    %30 = vector.load %arg5[%c0_12, %c0_13] : memref<1x128xf32, #tpu.memory_space<vmem>>, vector<1x128xf32>
    %31 = vector.shape_cast %30 : vector<1x128xf32> to vector<128xf32>
    %32 = vector.shape_cast %31 : vector<128xf32> to vector<1x128xf32>
    %33 = vector.broadcast %32 : vector<1x128xf32> to vector<24x128xf32>
    %34 = arith.addf %29, %33 : vector<24x128xf32>
    %cst_14 = arith.constant 5.000000e-01 : f32
    %35 = vector.broadcast %cst_14 : f32 to vector<24x128xf32>
    %36 = arith.mulf %35, %34 : vector<24x128xf32>
    %cst_15 = arith.constant 0.707106769 : f32
    %37 = vector.broadcast %cst_15 : f32 to vector<24x128xf32>
    %38 = arith.mulf %34, %37 : vector<24x128xf32>
    %39 = math.erf %38 : vector<24x128xf32>
    %cst_16 = arith.constant 1.000000e+00 : f32
    %40 = vector.broadcast %cst_16 : f32 to vector<24x128xf32>
    %41 = arith.addf %40, %39 : vector<24x128xf32>
    %42 = arith.mulf %36, %41 : vector<24x128xf32>
    %43 = arith.truncf %42 : vector<24x128xf32> to vector<24x128xbf16>
    %c0_17 = arith.constant 0 : index
    %c0_18 = arith.constant 0 : index
    %44 = vector.load %arg6[%c0_17, %c0_18] : memref<128x32xbf16, #tpu.memory_space<vmem>>, vector<128x32xbf16>
    %cst_19 = arith.constant dense<0.000000e+00> : vector<24x32xf32>
    %45 = tpu.matmul %43, %44, %cst_19 {dimension_numbers = #tpu.dot_dimension_numbers<[1], [0], [0], [1], [0, 0, 1, 1], [], []>} : vector<24x128xbf16>, vector<128x32xbf16>, vector<24x32xf32> -> vector<24x32xf32>
    %c0_20 = arith.constant 0 : index
    %c0_21 = arith.constant 0 : index
    %46 = vector.load %arg7[%c0_20, %c0_21] : memref<1x32xf32, #tpu.memory_space<vmem>>, vector<1x32xf32>
    %47 = vector.shape_cast %46 : vector<1x32xf32> to vector<32xf32>
    %48 = vector.shape_cast %47 : vector<32xf32> to vector<1x32xf32>
    %49 = vector.broadcast %48 : vector<1x32xf32> to vector<24x32xf32>
    %50 = arith.addf %45, %49 : vector<24x32xf32>
    %51 = arith.addf %0, %50 : vector<24x32xf32>
    %c0_22 = arith.constant 0 : index
    %c0_23 = arith.constant 0 : index
    %52 = vector.load %arg8[%c0_22, %c0_23] : memref<24x32xf32, #tpu.memory_space<vmem>>, vector<24x32xf32>
    tpu.vector_store %arg8[%c0_22, %c0_23], %51 {strides = array<i32>} : memref<24x32xf32, #tpu.memory_space<vmem>>, vector<24x32xf32>,
    return
  }
  func.func @transform_0(%arg0: i32) -> (i32, i32) {
    %c0_i32 = arith.constant 0 : i32
    %c0_i32_0 = arith.constant 0 : i32
    return %arg0, %c0_i32 : i32, i32
  }
  func.func @transform_1(%arg0: i32) -> (i32, i32) {
    %c0_i32 = arith.constant 0 : i32
    %c0_i32_0 = arith.constant 0 : i32
    %c0_i32_1 = arith.constant 0 : i32
    return %c0_i32, %c0_i32_0 : i32, i32
  }
  func.func @transform_2(%arg0: i32) -> (i32, i32) {
    %c0_i32 = arith.constant 0 : i32
    %c0_i32_0 = arith.constant 0 : i32
    %c0_i32_1 = arith.constant 0 : i32
    return %c0_i32, %c0_i32_0 : i32, i32
  }
  func.func @transform_3(%arg0: i32) -> (i32, i32) {
    %c0_i32 = arith.constant 0 : i32
    %c0_i32_0 = arith.constant 0 : i32
    %c0_i32_1 = arith.constant 0 : i32
    return %c0_i32, %c0_i32_0 : i32, i32
  }
  func.func @transform_4(%arg0: i32) -> (i32, i32) {
    %c0_i32 = arith.constant 0 : i32
    %c0_i32_0 = arith.constant 0 : i32
    %c0_i32_1 = arith.constant 0 : i32
    return %c0_i32, %c0_i32_0 : i32, i32
  }
  func.func @transform_5(%arg0: i32) -> (i32, i32) {
    %c0_i32 = arith.constant 0 : i32
    %c0_i32_0 = arith.constant 0 : i32
    %c0_i32_1 = arith.constant 0 : i32
    return %c0_i32, %c0_i32_0 : i32, i32
  }
  func.func @transform_6(%arg0: i32) -> (i32, i32) {
    %c0_i32 = arith.constant 0 : i32
    %c0_i32_0 = arith.constant 0 : i32
    %c0_i32_1 = arith.constant 0 : i32
    return %c0_i32, %c0_i32_0 : i32, i32
  }
  func.func @transform_7(%arg0: i32) -> (i32, i32) {
    %c0_i32 = arith.constant 0 : i32
    %c0_i32_0 = arith.constant 0 : i32
    return %arg0, %c0_i32 : i32, i32
  }
}

</mosaic_0001>

<bundles_post_ra>
// kernel: block_forward.5
= control target key start
LH: loop header
LB: loop body
LE: loop exit
PB: predicated region body
PF: predicated region fallthrough
CT: control target
= control target key end

     0   :  { %vm32_vm0 = vcmask 261120   ;;  %v476_v6 = vmov 32.0   ;;  %s671_s0 = inlined_call_operand.vmem [shape: f32[24,32], index: 0, kind: input, shape index: {}]   ;;  %s672_s1 = inlined_call_operand.vmem [shape: f32[1,32], index: 1, kind: input, shape index: {}]   ;;  %s673_s2 = inlined_call_operand.vmem [shape: f32[1,32], index: 2, kind: input, shape index: {}]   ;;  %s674_s4 = inlined_call_operand.vmem [shape: f32[1,128], index: 4, kind: input, shape index: {}]   ;;  %s675_s3 = inlined_call_operand.vmem [shape: bf16[32,128], index: 3, kind: input, shape index: {}]   ;;  %s676_s6 = inlined_call_operand.vmem [shape: f32[1,32], index: 6, kind: input, shape index: {}]   ;;  %s677_s5 = inlined_call_operand.vmem [shape: bf16[128,32], index: 5, kind: input, shape index: {}]   ;;  %s678_s7 = inlined_call_operand.vmem [shape: f32[24,32], index: 7, kind: output, shape index: {}]  }
   0x1   :  { %v520_v0 = vld [vmem:[%s671_s0] sm:$0xff]  ;;  %v525_v1 = vld [vmem:[%s671_s0 + $0x10] sm:$0xff]  ;;  %v534_v4 = vld [vmem:[%s671_s0 + $0x8] sm:$0xff]  ;;  %462 = vrcp.f32 %v476_v6 }
   0x2   :  { %v33_v2 = vsel %vm32_vm0, %v520_v0, 0.0  ;;  %v39_v3 = vsel %vm32_vm0, %v525_v1, 0.0  ;;  %v36_v5 = vsel %vm32_vm0, %v534_v4, 0.0  ;;  %v440_v28 = vld [vmem:[%s675_s3 + $0x8] sm:$0xff]  ;;  %v439_v31 = vld [vmem:[%s675_s3] sm:$0xff] }
   0x3   :  { %34 = vadd.xlane.f32.xlu0 %v33_v2  ;;  %40 = vadd.xlane.f32.xlu1 %v39_v3  ;;  %v458_v53 = vld [vmem:[%s672_s1] ss:$0 sm:$0xff] }
   0x4   :  { %152 = vmatpush.bf16.msra.mxu0 %v440_v28  ;;  %v459_v60 = vld [vmem:[%s673_s2] ss:$0 sm:$0xff] }
   0x7   :  { %v463_v7 = vpop.eup %462 }
   0x8   :  { %v43_v8 = vmul.f32 32.0, %v463_v7  ;;  %vm47_vm1 = vweird.f32 %v463_v7  ;;  %153 = vmatpush.bf16.msra.mxu0 %v439_v31 }
   0xa   :  { %v44_v9 = vsub.f32 1.0, %v43_v8 }
   0xb   :  { %37 = vadd.xlane.f32.xlu0 %v36_v5 }
   0xc   :  { %v45_v10 = vmul.f32 %v463_v7, %v44_v9 }
   0xe   :  { %v46_v11 = vadd.f32 %v463_v7, %v45_v10 }
  0x10   :  { %v48_v12 = vsel %vm47_vm1, %v463_v7, %v46_v11 }
  0x76   :  { %v35_v13 = vpop.xlane.xlu0 %34  ;;  %v41_v17 = vpop.xlane.xlu1 %40 }
  0x77   :  { %v49_v14 = vmul.f32 %v48_v12, %v35_v13  ;;  %v51_v21 = vmul.f32 %v48_v12, %v41_v17  ;;  %v447_v17 = vld [vmem:[%s677_s5 + $0x30] sm:$0xff] }
  0x79   :  { %v52_v15 = vsub.f32 %v520_v0, %v49_v14  ;;  %v542_v23 = vsub.f32 %v525_v1, %v51_v21  ;;  %v448_v14 = vld [vmem:[%s677_s5 + $0x38] sm:$0xff]  ;;  %v446_v21 = vld [vmem:[%s677_s5 + $0x28] sm:$0xff] }
  0x7a   :  { %366 = vmatpush.bf16.msra.mxu1 %v448_v14  ;;  %449 = vmatpush.bf16.msra.mxu2 %v448_v14 }
  0x7b   :  { %v55_v16 = vmul.f32 %v52_v15, %v52_v15  ;;  %v57_v26 = vmul.f32 %v542_v23, %v542_v23 }
  0x7d   :  { %v58_v18 = vsel %vm32_vm0, %v55_v16, 0.0  ;;  %v64_v27 = vsel %vm32_vm0, %v57_v26, 0.0 }
  0x7e   :  { %59 = vadd.xlane.f32.xlu1 %v58_v18  ;;  %v38_v19 = vpop.xlane.xlu0 %37  ;;  %367 = vmatpush.bf16.msra.mxu1 %v447_v17 }
  0x7f   :  { %v50_v20 = vmul.f32 %v48_v12, %v38_v19  ;;  %450 = vmatpush.bf16.msra.mxu2 %v447_v17 }
  0x81   :  { %v53_v22 = vsub.f32 %v534_v4, %v50_v20 }
  0x82   :  { %368 = vmatpush.bf16.msra.mxu1 %v446_v21 }
  0x83   :  { %v56_v24 = vmul.f32 %v53_v22, %v53_v22  ;;  %451 = vmatpush.bf16.msra.mxu2 %v446_v21 }
  0x85   :  { %v61_v25 = vsel %vm32_vm0, %v56_v24, 0.0 }
  0x86   :  { %62 = vadd.xlane.f32.xlu2 %v61_v25 }
  0x8e   :  { %65 = vadd.xlane.f32.xlu2 %v64_v27  ;;  %v445_v27 = vld [vmem:[%s677_s5 + $0x20] sm:$0xff] }
  0x8f   :  { %369 = vmatpush.bf16.msra.mxu1 %v445_v27  ;;  %452 = vmatpush.bf16.msra.mxu2 %v445_v27 }
  0xf1   :  { %v60_v29 = vpop.xlane.xlu1 %59 }
  0xf2   :  { %v67_v30 = vmul.f32 %v60_v29, %v48_v12 }
  0xf4   :  { %v70_v32 = vadd.f32 1e-05, %v67_v30  ;;  %v444_v30 = vld [vmem:[%s677_s5 + $0x18] sm:$0xff] }
  0xf5   :  { %370 = vmatpush.bf16.msra.mxu1 %v444_v30  ;;  %453 = vmatpush.bf16.msra.mxu2 %v444_v30 }
  0xf6   :  { %464 = vrsqrt.f32 %v70_v32  ;;  %vm79_vm3 = vweird.f32 %v70_v32 }
  0xf9   :  { %v63_v33 = vpop.xlane.xlu2 %62 }
  0xfa   :  { %v68_v34 = vmul.f32 %v63_v33, %v48_v12 }
  0xfc   :  { %v465_v35 = vpop.eup %464  ;;  %v71_v36 = vadd.f32 1e-05, %v68_v34 }
  0xfd   :  { %v74_v37 = vmul.f32 %v465_v35, %v70_v32  ;;  %vm80_vm2 = vweird.f32 %v465_v35 }
  0xfe   :  { %466 = vrsqrt.f32 %v71_v36  ;;  %vm81_vm4 = vmor %vm79_vm3, %vm80_vm2  ;;  %vm89_vm6 = vweird.f32 %v71_v36 }
  0xff   :  { %v75_v38 = vmul.f32 %v465_v35, %v74_v37 }
 0x101   :  { %v76_v39 = vmul.f32 0.5, %v75_v38  ;;  %v66_v40 = vpop.xlane.xlu2 %65 }
 0x102   :  { %v69_v41 = vmul.f32 %v66_v40, %v48_v12  ;;  %v460_v12 = vld [vmem:[%s674_s4] ss:$0 sm:$0xff] }
 0x103   :  { %v77_v42 = vsub.f32 1.5, %v76_v39  ;;  %v443_v39 = vld [vmem:[%s677_s5 + $0x10] sm:$0xff] }
 0x104   :  { %v467_v43 = vpop.eup %466  ;;  %v72_v44 = vadd.f32 1e-05, %v69_v41  ;;  %371 = vmatpush.bf16.msra.mxu1 %v443_v39  ;;  %454 = vmatpush.bf16.msra.mxu2 %v443_v39 }
 0x105   :  { %v78_v45 = vmul.f32 %v465_v35, %v77_v42  ;;  %v84_v46 = vmul.f32 %v467_v43, %v71_v36  ;;  %vm90_vm5 = vweird.f32 %v467_v43 }
 0x106   :  { %468 = vrsqrt.f32 %v72_v44  ;;  %vm91_vm7 = vmor %vm89_vm6, %vm90_vm5  ;;  %vm99_vm8 = vweird.f32 %v72_v44 }
 0x107   :  { %v85_v47 = vmul.f32 %v467_v43, %v84_v46  ;;  %v82_v48 = vsel %vm81_vm4, %v465_v35, %v78_v45 }
 0x108   :  { %v103_v52 = vmul.f32 %v82_v48, %v52_v15  ;;  %v442_v48 = vld [vmem:[%s677_s5 + $0x8] sm:$0xff] }
 0x109   :  { %v86_v49 = vmul.f32 0.5, %v85_v47  ;;  %372 = vmatpush.bf16.msra.mxu1 %v442_v48  ;;  %455 = vmatpush.bf16.msra.mxu2 %v442_v48 }
 0x10a   :  { %v109_v59 = vmul.f32 %v458_v53, %v103_v52 }
 0x10b   :  { %v87_v50 = vsub.f32 1.5, %v86_v49 }
 0x10c   :  { %v469_v51 = vpop.eup %468  ;;  %v115_v2 = vadd.f32 %v459_v60, %v109_v59 }
 0x10d   :  { %v88_v54 = vmul.f32 %v467_v43, %v87_v50  ;;  %v94_v55 = vmul.f32 %v469_v51, %v72_v44  ;;  %vm100_vm9 = vweird.f32 %v469_v51 }
 0x10e   :  { %vm101_vm10 = vmor %vm99_vm8, %vm100_vm9 }
 0x10f   :  { %v92_v56 = vsel %vm91_vm7, %v467_v43, %v88_v54  ;;  %v95_v57 = vmul.f32 %v469_v51, %v94_v55 }
 0x110   :  { %v104_v58 = vmul.f32 %v92_v56, %v53_v22 }
 0x111   :  { %v96_v61 = vmul.f32 0.5, %v95_v57 }
 0x112   :  { %v110_v62 = vmul.f32 %v458_v53, %v104_v58  ;;  %v441_v58 = vld [vmem:[%s677_s5] sm:$0xff] }
 0x113   :  { %v97_v63 = vsub.f32 1.5, %v96_v61  ;;  %373 = vmatpush.bf16.msra.mxu1 %v441_v58  ;;  %456 = vmatpush.bf16.msra.mxu2 %v441_v58 }
 0x114   :  { %v116_v3 = vadd.f32 %v459_v60, %v110_v62 }
 0x115   :  { %v98_v5 = vmul.f32 %v469_v51, %v97_v63 }
 0x116   :  { %v118_v6 = vpack.c.bf16 %v116_v3, %v115_v2 }
 0x117   :  { %v102_v7 = vsel %vm101_vm10, %v469_v51, %v98_v5 }
 0x118   :  { %402 = vmatmul.msk.bf16.vlgmr.msra.gmra.mxu0 %vm32_vm0, %v118_v6  ;;  %v105_v8 = vmul.f32 %v102_v7, %v542_v23 }
 0x11a   :  { %v111_v9 = vmul.f32 %v458_v53, %v105_v8 }
 0x11c   :  { %v117_v10 = vadd.f32 %v459_v60, %v111_v9 }
 0x11e   :  { %v119_v11 = vpack.c.bf16 %v117_v10, %v117_v10 }
 0x128   :  { %403 = vmatmul.msk.bf16.gmra.mxu0 %vm32_vm0, %v119_v11 }
 0x195   :  { %v155_v13 = vpop.f32.mrf.mxu0 }
 0x196   :  { %v569_v15 = vadd.f32 %v460_v12, %v155_v13 }
 0x198   :  { %v572_v16 = vmul.f32 0.70710677, %v569_v15 }
 0x19a   :  { %v170_v18 = vmul.f32 %v572_v16, %v572_v16 }
 0x19c   :  { %v579_v19 = vmin.f32 %v170_v18, 16.0 }
 0x19d   :  { %v157_v20 = vpop.f32.mrf.mxu0 }
 0x19e   :  { %v172_v22 = vmul.f32 2.1237322e-06, %v579_v19  ;;  %v585_v23 = vadd.f32 %v460_v12, %v157_v20  ;;  %v183_v24 = vmul.f32 3.8918573e-05, %v579_v19 }
 0x1a0   :  { %v173_v25 = vadd.f32 0.00028619796, %v172_v22  ;;  %v589_v26 = vmul.f32 0.70710677, %v585_v23  ;;  %v184_v28 = vadd.f32 0.001143296, %v183_v24 }
 0x1a2   :  { %v210_v29 = vmul.f32 %v589_v26, %v589_v26  ;;  %v185_v31 = vmul.f32 %v184_v28, %v579_v19  ;;  %v174_v32 = vmul.f32 %v173_v25, %v579_v19 }
 0x1a4   :  { %v601_v33 = vmin.f32 %v210_v29, 16.0  ;;  %v186_v35 = vadd.f32 0.014752088, %v185_v31  ;;  %v175_v41 = vadd.f32 0.0036580483, %v174_v32 }
 0x1a5   :  { %v160_v34 = vpop.f32.mrf.mxu0 }
 0x1a6   :  { %v212_v36 = vmul.f32 2.1237322e-06, %v601_v33  ;;  %v604_v37 = vadd.f32 %v460_v12, %v160_v34  ;;  %v223_v38 = vmul.f32 3.8918573e-05, %v601_v33  ;;  %v187_v40 = vmul.f32 %v186_v35, %v579_v19 }
 0x1a7   :  { %v176_v51 = vmul.f32 %v175_v41, %v579_v19 }
 0x1a8   :  { %v213_v42 = vadd.f32 0.00028619796, %v212_v36  ;;  %v612_v43 = vmul.f32 0.70710677, %v604_v37  ;;  %v188_v44 = vadd.f32 0.112945676, %v187_v40 }
 0x1a9   :  { %v224_v45 = vadd.f32 0.001143296, %v223_v38  ;;  %v177_v62 = vadd.f32 0.05243302, %v176_v51 }
 0x1aa   :  { %v214_v46 = vmul.f32 %v213_v42, %v601_v33  ;;  %v250_v47 = vmul.f32 %v612_v43, %v612_v43  ;;  %v189_v49 = vmul.f32 %v188_v44, %v579_v19 }
 0x1ab   :  { %v225_v50 = vmul.f32 %v224_v45, %v601_v33  ;;  %v178_v10 = vmul.f32 %v177_v62, %v579_v19 }
 0x1ac   :  { %v623_v52 = vmin.f32 %v250_v47, 16.0  ;;  %v190_v54 = vadd.f32 0.4994258, %v189_v49  ;;  %v215_v56 = vadd.f32 0.0036580483, %v214_v46 }
 0x1ad   :  { %v162_v53 = vpop.f32.mrf.mxu0  ;;  %v226_v55 = vadd.f32 0.014752088, %v225_v50  ;;  %v179_v21 = vadd.f32 0.18741608, %v178_v10  ;;  %v164_v10 = vmul.f32 0.5, %v569_v15 }
 0x1ae   :  { %v252_v57 = vmul.f32 2.1237322e-06, %v623_v52  ;;  %v191_v59 = vmul.f32 %v190_v54, %v579_v19  ;;  %v263_v61 = vmul.f32 3.8918573e-05, %v623_v52  ;;  %v216_v5 = vmul.f32 %v215_v56, %v601_v33 }
 0x1af   :  { %v227_v60 = vmul.f32 %v226_v55, %v601_v33  ;;  %v180_v30 = vmul.f32 %v179_v21, %v579_v19 }
 0x1b0   :  { %v253_v63 = vadd.f32 0.00028619796, %v252_v57  ;;  %v192_v2 = vadd.f32 1.0, %v191_v59  ;;  %v264_v6 = vadd.f32 0.001143296, %v263_v61 }
 0x1b1   :  { %v228_v3 = vadd.f32 0.112945676, %v227_v60  ;;  %v217_v11 = vadd.f32 0.05243302, %v216_v5  ;;  %v181_v41 = vadd.f32 1.1283791, %v180_v30 }
 0x1b2   :  { %470 = vrcp.f32 %v192_v2  ;;  %v254_v7 = vmul.f32 %v253_v63, %v623_v52  ;;  %v265_v9 = vmul.f32 %v264_v6, %v623_v52  ;;  %v204_v35 = vand.u32 2147483648, %v192_v2 }
 0x1b3   :  { %v229_v8 = vmul.f32 %v228_v3, %v601_v33  ;;  %v218_v22 = vmul.f32 %v217_v11, %v601_v33  ;;  %v202_v36 = vand.u32 2147483647, %v192_v2  ;;  %vm198_vm12 = vweird.f32 %v192_v2 }
 0x1b4   :  { %v266_v13 = vadd.f32 0.014752088, %v265_v9  ;;  %v255_v14 = vadd.f32 0.0036580483, %v254_v7  ;;  %v205_v19 = vor.u32 1.1754944e-38, %v204_v35  ;;  %v182_v51 = vmul.f32 %v181_v41, %v572_v16 }
 0x1b5   :  { %v230_v12 = vadd.f32 0.4994258, %v229_v8  ;;  %v219_v32 = vadd.f32 0.18741608, %v218_v22  ;;  %vm203_vm14 = vcmp.eq.f32.partialorder %v202_v36, 8.507059e+37  ;;  %v165_v11 = vmul.f32 0.5, %v585_v23 }
 0x1b6   :  { %v267_v18 = vmul.f32 %v266_v13, %v623_v52  ;;  %v256_v28 = vmul.f32 %v255_v14, %v623_v52 }
 0x1b7   :  { %v231_v17 = vmul.f32 %v230_v12, %v601_v33  ;;  %v220_v45 = vmul.f32 %v219_v32, %v601_v33  ;;  %v461_v32 = vld [vmem:[%s676_s6] ss:$0 sm:$0xff] }
 0x1b8   :  { %v471_v20 = vpop.eup %470  ;;  %v268_v27 = vadd.f32 0.112945676, %v267_v18  ;;  %v257_v39 = vadd.f32 0.05243302, %v256_v28  ;;  %v166_v28 = vmul.f32 0.5, %v604_v37 }
 0x1b9   :  { %v194_v24 = vmul.f32 %v471_v20, %v192_v2  ;;  %v232_v25 = vadd.f32 1.0, %v231_v17  ;;  %vm199_vm11 = vweird.f32 %v471_v20  ;;  %v221_v54 = vadd.f32 1.1283791, %v220_v45 }
 0x1ba   :  { %v269_v31 = vmul.f32 %v268_v27, %v623_v52  ;;  %vm200_vm13 = vmor %vm198_vm12, %vm199_vm11  ;;  %v258_v48 = vmul.f32 %v257_v39, %v623_v52 }
 0x1bb   :  { %v195_v29 = vsub.f32 1.0, %v194_v24  ;;  %472 = vrcp.f32 %v232_v25  ;;  %v244_v55 = vand.u32 2147483648, %v232_v25  ;;  %v242_v58 = vand.u32 2147483647, %v232_v25 }
 0x1bc   :  { %v270_v38 = vadd.f32 0.4994258, %v269_v31  ;;  %v259_v59 = vadd.f32 0.18741608, %v258_v48  ;;  %vm238_vm1 = vweird.f32 %v232_v25  ;;  %v222_v61 = vmul.f32 %v221_v54, %v589_v26 }
 0x1bd   :  { %v196_v34 = vmul.f32 %v471_v20, %v195_v29  ;;  %v245_v60 = vor.u32 1.1754944e-38, %v244_v55  ;;  %vm243_vm3 = vcmp.eq.f32.partialorder %v242_v58, 8.507059e+37 }
 0x1be   :  { %v271_v42 = vmul.f32 %v270_v38, %v623_v52  ;;  %v260_v16 = vmul.f32 %v259_v59, %v623_v52 }
 0x1bf   :  { %v197_v40 = vadd.f32 %v471_v20, %v196_v34 }
 0x1c0   :  { %v272_v50 = vadd.f32 1.0, %v271_v42  ;;  %v261_v12 = vadd.f32 1.1283791, %v260_v16 }
 0x1c1   :  { %v473_v44 = vpop.eup %472  ;;  %v201_v46 = vsel %vm200_vm13, %v471_v20, %v197_v40 }
 0x1c2   :  { %v234_v47 = vmul.f32 %v473_v44, %v232_v25  ;;  %v206_v49 = vsel %vm203_vm14, %v205_v19, %v201_v46  ;;  %474 = vrcp.f32 %v272_v50  ;;  %vm239_vm15 = vweird.f32 %v473_v44 }
 0x1c3   :  { %v207_v56 = vmul.f32 %v206_v49, %v182_v51  ;;  %vm240_vm2 = vmor %vm238_vm1, %vm239_vm15  ;;  %v284_v13 = vand.u32 2147483648, %v272_v50  ;;  %v282_v17 = vand.u32 2147483647, %v272_v50  ;;  %vm278_vm5 = vweird.f32 %v272_v50 }
 0x1c4   :  { %v235_v53 = vsub.f32 1.0, %v234_v47  ;;  %v262_v22 = vmul.f32 %v261_v12, %v612_v43 }
 0x1c5   :  { %v404_v62 = vclamps-f32 %v207_v56, 1.0  ;;  %v285_v52 = vor.u32 1.1754944e-38, %v284_v13  ;;  %vm283_vm7 = vcmp.eq.f32.partialorder %v282_v17, 8.507059e+37 }
 0x1c6   :  { %v236_v57 = vmul.f32 %v473_v44, %v235_v53 }
 0x1c7   :  { %v290_v8 = vadd.f32 1.0, %v404_v62 }
 0x1c8   :  { %v237_v33 = vadd.f32 %v473_v44, %v236_v57  ;;  %v475_v2 = vpop.eup %474 }
 0x1c9   :  { %v274_v6 = vmul.f32 %v475_v2, %v272_v50  ;;  %vm279_vm4 = vweird.f32 %v475_v2  ;;  %v293_v18 = vmul.f32 %v290_v8, %v164_v10 }
 0x1ca   :  { %v241_v63 = vsel %vm240_vm2, %v473_v44, %v237_v33  ;;  %vm280_vm6 = vmor %vm278_vm5, %vm279_vm4 }
 0x1cb   :  { %v246_v3 = vsel %vm243_vm3, %v245_v60, %v241_v63  ;;  %v275_v9 = vsub.f32 1.0, %v274_v6 }
 0x1cc   :  { %v247_v5 = vmul.f32 %v246_v3, %v222_v61 }
 0x1cd   :  { %v276_v26 = vmul.f32 %v475_v2, %v275_v9 }
 0x1ce   :  { %v405_v7 = vclamps-f32 %v247_v5, 1.0 }
 0x1cf   :  { %v277_v21 = vadd.f32 %v475_v2, %v276_v26 }
 0x1d0   :  { %v291_v14 = vadd.f32 1.0, %v405_v7 }
 0x1d1   :  { %v281_v25 = vsel %vm280_vm6, %v475_v2, %v277_v21 }
 0x1d2   :  { %v294_v20 = vmul.f32 %v291_v14, %v165_v11  ;;  %v286_v15 = vsel %vm283_vm7, %v285_v52, %v281_v25 }
 0x1d3   :  { %v287_v23 = vmul.f32 %v286_v15, %v262_v22 }
 0x1d4   :  { %v296_v24 = vpack.c.bf16 %v294_v20, %v293_v18 }
 0x1d5   :  { %v406_v27 = vclamps-f32 %v287_v23, 1.0 }
 0x1d6   :  { %374 = vmatmul.bf16.vlgmr.msra.gmra.mxu1 %v296_v24 }
 0x1d7   :  { %v292_v29 = vadd.f32 1.0, %v406_v27 }
 0x1d9   :  { %v295_v30 = vmul.f32 %v292_v29, %v166_v28 }
 0x1db   :  { %v297_v31 = vpack.c.bf16 %v295_v30, %v295_v30 }
 0x1dd   :  { %379 = vmatmul.bf16.vlgmr.msra.gmra.mxu2 %v297_v31 }
 0x253   :  { %v375_v34 = vpop.f32.mrf.mxu1 }
 0x254   :  { %v376_v35 = vadd.f32 %v461_v32, %v375_v34 }
 0x256   :  { %v384_v43 = vadd.f32 %v376_v35, %v520_v0 }
 0x258   :  { %387 = vst.msk [vmem:[%s678_s7] sm:$0xff] %vm32_vm0, %v384_v43 }
 0x25b   :  { %v377_v36 = vpop.f32.mrf.mxu1 }
 0x25c   :  { %v378_v38 = vadd.f32 %v461_v32, %v377_v36 }
 0x25e   :  { %v385_v37 = vadd.f32 %v378_v38, %v534_v4 }
 0x260   :  { %388 = vst.msk [vmem:[%s678_s7 + $0x8] sm:$0xff] %vm32_vm0, %v385_v37  ;;  %v380_v39 = vpop.f32.mrf.mxu2 }
 0x261   :  { %v381_v40 = vadd.f32 %v461_v32, %v380_v39 }
 0x263   :  { %v386_v41 = vadd.f32 %v381_v40, %v525_v1 }
 0x265   :  { %389 = vst.msk [vmem:[%s678_s7 + $0x10] sm:$0xff] %vm32_vm0, %v386_v41 }
 0x268   :  { %v382_v0 = vpop.f32.mrf.mxu2 }

// kernel: block_forward.4
= control target key start
LH: loop header
LB: loop body
LE: loop exit
PB: predicated region body
PF: predicated region fallthrough
CT: control target
= control target key end

     0   :  { %vm30_vm0 = vcmask 261120   ;;  %v1422_v8 = vmov 32.0   ;;  %vm195_vm14 = vcmask 64512   ;;  %s1425_s12 = smov 88   ;;  %s1426_s13 = smov 120   ;;  %s1834_s0 = inlined_call_operand.vmem [shape: f32[4,8,32], index: 0, kind: input, shape index: {}]   ;;  %s1835_s1 = inlined_call_operand.vmem [shape: f32[1,32], index: 1, kind: input, shape index: {}]   ;;  %s1836_s2 = inlined_call_operand.vmem [shape: f32[1,32], index: 2, kind: input, shape index: {}]   ;;  %s1837_s3 = inlined_call_operand.vmem [shape: bf16[32,96], index: 3, kind: input, shape index: {}]   ;;  %s1838_s5 = inlined_call_operand.vmem [shape: f32[1,32], index: 5, kind: input, shape index: {}]   ;;  %s1839_s4 = inlined_call_operand.vmem [shape: bf16[32,32], index: 4, kind: input, shape index: {}]   ;;  %s1840_s6 = inlined_call_operand.vmem [shape: f32[4,8,32], index: 6, kind: output, shape index: {}]  }
   0x1   :  { %v26_v0 = vld [vmem:[%s1834_s0 + $0x10] sm:$0xff]  ;;  %v24_v1 = vld [vmem:[%s1834_s0] sm:$0xff]  ;;  %v27_v4 = vld [vmem:[%s1834_s0 + $0x18] sm:$0xff]  ;;  %1344 = vrcp.f32 %v1422_v8  ;;  %s1427_s14 = smov 56   ;;  %s1428_s15 = smov 112  }
   0x2   :  { %v37_v2 = vsel %vm30_vm0, %v26_v0, 0.0  ;;  %v31_v3 = vsel %vm30_vm0, %v24_v1, 0.0  ;;  %v25_v5 = vld [vmem:[%s1834_s0 + $0x8] sm:$0xff]  ;;  %v40_v6 = vsel %vm30_vm0, %v27_v4, 0.0  ;;  %v1292_v39 = vld [vmem:[%s1837_s3] sm:$0xff]  ;;  %s1429_s16 = smov 80  }
   0x3   :  { %38 = vadd.xlane.f32.xlu1 %v37_v2  ;;  %32 = vadd.xlane.f32.xlu0 %v31_v3  ;;  %v34_v7 = vsel %vm30_vm0, %v25_v5, 0.0  ;;  %v1293_v35 = vld [vmem:[%s1837_s3 + $0x8] sm:$0xff]  ;;  %s1430_s17 = smov 72   ;;  %s1431_s18 = smov 104  }
   0x4   :  { %170 = vmatpush.bf16.msra.mxu0 %v1293_v35  ;;  %s1432_s19 = smov 48   ;;  %s1433_s20 = smov 40  }
   0x5   :  { %s1434_s21 = smov 8   ;;  %s1435_s22 = smov 16  }
   0x6   :  { %s1436_s23 = smov 24  }
   0x7   :  { %v1345_v9 = vpop.eup %1344 }
   0x8   :  { %v44_v10 = vmul.f32 32.0, %v1345_v9  ;;  %vm48_vm1 = vweird.f32 %v1345_v9  ;;  %171 = vmatpush.bf16.msra.mxu0 %v1292_v39 }
   0xa   :  { %v45_v11 = vsub.f32 1.0, %v44_v10 }
   0xb   :  { %41 = vadd.xlane.f32.xlu1 %v40_v6  ;;  %35 = vadd.xlane.f32.xlu0 %v34_v7 }
   0xc   :  { %v46_v12 = vmul.f32 %v1345_v9, %v45_v11 }
   0xe   :  { %v47_v13 = vadd.f32 %v1345_v9, %v46_v12  ;;  %v1342_v12 = vld [vmem:[%s1836_s2] ss:$0 sm:$0xff]  ;;  %s1424_s2 = smov 64  }
  0x10   :  { %v49_v14 = vsel %vm48_vm1, %v1345_v9, %v47_v13  ;;  %vm346_vm1 = vcmask 1043456  }
  0x76   :  { %v39_v15 = vpop.xlane.xlu1 %38  ;;  %v33_v16 = vpop.xlane.xlu0 %32 }
  0x77   :  { %v52_v17 = vmul.f32 %v49_v14, %v39_v15  ;;  %v50_v18 = vmul.f32 %v49_v14, %v33_v16 }
  0x79   :  { %v1488_v19 = vsub.f32 %v26_v0, %v52_v17  ;;  %v1490_v20 = vsub.f32 %v24_v1, %v50_v18 }
  0x7b   :  { %v60_v21 = vmul.f32 %v1488_v19, %v1488_v19  ;;  %v58_v22 = vmul.f32 %v1490_v20, %v1490_v20 }
  0x7d   :  { %v68_v23 = vsel %vm30_vm0, %v60_v21, 0.0  ;;  %v62_v24 = vsel %vm30_vm0, %v58_v22, 0.0 }
  0x7e   :  { %v42_v25 = vpop.xlane.xlu1 %41  ;;  %69 = vadd.xlane.f32.xlu0 %v68_v23  ;;  %63 = vadd.xlane.f32.xlu2 %v62_v24  ;;  %v36_v26 = vpop.xlane.xlu0 %35 }
  0x7f   :  { %v53_v27 = vmul.f32 %v49_v14, %v42_v25  ;;  %v51_v28 = vmul.f32 %v49_v14, %v36_v26 }
  0x81   :  { %v1498_v29 = vsub.f32 %v27_v4, %v53_v27  ;;  %v55_v30 = vsub.f32 %v25_v5, %v51_v28  ;;  %v1341_v5 = vld [vmem:[%s1835_s1] ss:$0 sm:$0xff]  ;;  %s1423_s1 = smov 96  }
  0x83   :  { %v61_v31 = vmul.f32 %v1498_v29, %v1498_v29  ;;  %v59_v32 = vmul.f32 %v55_v30, %v55_v30 }
  0x85   :  { %v71_v33 = vsel %vm30_vm0, %v61_v31, 0.0  ;;  %v65_v34 = vsel %vm30_vm0, %v59_v32, 0.0 }
  0x86   :  { %72 = vadd.xlane.f32.xlu1 %v71_v33  ;;  %66 = vadd.xlane.f32.xlu2 %v65_v34 }
  0xf1   :  { %v64_v36 = vpop.xlane.xlu2 %63  ;;  %v70_v38 = vpop.xlane.xlu0 %69 }
  0xf2   :  { %v74_v37 = vmul.f32 %v64_v36, %v49_v14  ;;  %v76_v41 = vmul.f32 %v70_v38, %v49_v14 }
  0xf4   :  { %v78_v40 = vadd.f32 1e-05, %v74_v37  ;;  %v80_v42 = vadd.f32 1e-05, %v76_v41 }
  0xf6   :  { %1346 = vrsqrt.f32 %v78_v40  ;;  %vm88_vm3 = vweird.f32 %v78_v40  ;;  %vm108_vm10 = vweird.f32 %v80_v42 }
  0xf7   :  { %1348 = vrsqrt.f32 %v80_v42 }
  0xf9   :  { %v73_v43 = vpop.xlane.xlu1 %72  ;;  %v67_v44 = vpop.xlane.xlu2 %66 }
  0xfa   :  { %v77_v45 = vmul.f32 %v73_v43, %v49_v14  ;;  %v75_v46 = vmul.f32 %v67_v44, %v49_v14 }
  0xfc   :  { %v1347_v47 = vpop.eup %1346  ;;  %v81_v48 = vadd.f32 1e-05, %v77_v45  ;;  %v79_v49 = vadd.f32 1e-05, %v75_v46 }
  0xfd   :  { %v83_v50 = vmul.f32 %v1347_v47, %v78_v40  ;;  %v1349_v53 = vpop.eup %1348  ;;  %vm89_vm2 = vweird.f32 %v1347_v47 }
  0xfe   :  { %1350 = vrsqrt.f32 %v81_v48  ;;  %v103_v59 = vmul.f32 %v1349_v53, %v80_v42  ;;  %vm90_vm4 = vmor %vm88_vm3, %vm89_vm2  ;;  %vm98_vm6 = vweird.f32 %v79_v49  ;;  %vm118_vm8 = vweird.f32 %v81_v48 }
  0xff   :  { %v84_v51 = vmul.f32 %v1347_v47, %v83_v50  ;;  %1352 = vrsqrt.f32 %v79_v49  ;;  %vm109_vm11 = vweird.f32 %v1349_v53  ;;  %vm1162_vm2 = vcmask 130048  }
 0x100   :  { %v104_v0 = vmul.f32 %v1349_v53, %v103_v59  ;;  %vm110_vm13 = vmor %vm108_vm10, %vm109_vm11  ;;  %vm1167_vm3 = vcmask 195584  }
 0x101   :  { %v85_v52 = vmul.f32 0.5, %v84_v51 }
 0x102   :  { %v105_v6 = vmul.f32 0.5, %v104_v0 }
 0x103   :  { %v86_v54 = vsub.f32 1.5, %v85_v52 }
 0x104   :  { %v1351_v55 = vpop.eup %1350  ;;  %v106_v13 = vsub.f32 1.5, %v105_v6 }
 0x105   :  { %v1353_v56 = vpop.eup %1352  ;;  %v113_v57 = vmul.f32 %v1351_v55, %v81_v48  ;;  %v87_v58 = vmul.f32 %v1347_v47, %v86_v54  ;;  %vm119_vm9 = vweird.f32 %v1351_v55 }
 0x106   :  { %v93_v60 = vmul.f32 %v1353_v56, %v79_v49  ;;  %vm99_vm5 = vweird.f32 %v1353_v56  ;;  %vm120_vm12 = vmor %vm118_vm8, %vm119_vm9  ;;  %v107_v18 = vmul.f32 %v1349_v53, %v106_v13 }
 0x107   :  { %v114_v61 = vmul.f32 %v1351_v55, %v113_v57  ;;  %v91_v63 = vsel %vm90_vm4, %v1347_v47, %v87_v58  ;;  %vm100_vm7 = vmor %vm98_vm6, %vm99_vm5 }
 0x108   :  { %v94_v62 = vmul.f32 %v1353_v56, %v93_v60  ;;  %v122_v4 = vmul.f32 %v91_v63, %v1490_v20  ;;  %v111_v22 = vsel %vm110_vm13, %v1349_v53, %v107_v18  ;;  %v183_v53 = vlaneseq }
 0x109   :  { %v115_v2 = vmul.f32 0.5, %v114_v61  ;;  %v124_v24 = vmul.f32 %v111_v22, %v1488_v19 }
 0x10a   :  { %v95_v1 = vmul.f32 0.5, %v94_v62  ;;  %v129_v11 = vmul.f32 %v1341_v5, %v122_v4  ;;  %v1542_v54 = vand.u32 127, %v183_v53 }
 0x10b   :  { %v116_v8 = vsub.f32 1.5, %v115_v2  ;;  %v131_v26 = vmul.f32 %v1341_v5, %v124_v24 }
 0x10c   :  { %v96_v3 = vsub.f32 1.5, %v95_v1  ;;  %v136_v16 = vadd.f32 %v1342_v12, %v129_v11  ;;  %vm185_vm15 = vcmp.lt.s32.totalorder %v1542_v54, 5 }
 0x10d   :  { %v117_v15 = vmul.f32 %v1351_v55, %v116_v8  ;;  %v138_v28 = vadd.f32 %v1342_v12, %v131_v26 }
 0x10e   :  { %v97_v7 = vmul.f32 %v1353_v56, %v96_v3 }
 0x10f   :  { %v121_v21 = vsel %vm120_vm12, %v1351_v55, %v117_v15 }
 0x110   :  { %v101_v9 = vsel %vm100_vm7, %v1353_v56, %v97_v7  ;;  %v125_v23 = vmul.f32 %v121_v21, %v1498_v29 }
 0x111   :  { %v123_v10 = vmul.f32 %v101_v9, %v55_v30 }
 0x112   :  { %v132_v25 = vmul.f32 %v1341_v5, %v125_v23 }
 0x113   :  { %v130_v14 = vmul.f32 %v1341_v5, %v123_v10 }
 0x114   :  { %v139_v27 = vadd.f32 %v1342_v12, %v132_v25 }
 0x115   :  { %v137_v17 = vadd.f32 %v1342_v12, %v130_v14 }
 0x116   :  { %v141_v30 = vpack.c.bf16 %v139_v27, %v138_v28 }
 0x117   :  { %v140_v20 = vpack.c.bf16 %v137_v17, %v136_v16 }
 0x119   :  { %1248 = vmatmul.msk.bf16.vlgmr.msra.gmra.mxu0 %vm30_vm0, %v140_v20 }
 0x129   :  { %1249 = vmatmul.msk.bf16.gmra.mxu0 %vm30_vm0, %v141_v30 }
 0x196   :  { %v173_v31 = vpop.f32.mrf.mxu0 }
 0x197   :  { %v186_v32 = vpack.c.bf16 %v173_v31, %v173_v31 }
 0x199   :  { %v191_v33 = vunpack.c.l.b16 %v186_v32 }
 0x19b   :  { %v1521_v34 = vpack.c.b16 %v191_v33, %v191_v33 }
 0x19d   :  { %193 = vrot.lane.b32.xlu0 %v1521_v34, %s1423_s1 }
 0x19e   :  { %v175_v35 = vpop.f32.mrf.mxu0 }
 0x19f   :  { %v187_v36 = vpack.c.bf16 %v175_v35, %v175_v35 }
 0x1a1   :  { %v216_v29 = vunpack.c.l.b16 %v187_v36 }
 0x1a3   :  { %v1524_v37 = vpack.c.b16 %v216_v29, %v216_v29 }
 0x1a5   :  { %218 = vrot.lane.b32.xlu2 %v1524_v37, %s1423_s1 }
 0x1a6   :  { %v178_v19 = vpop.f32.mrf.mxu0 }
 0x1a7   :  { %v188_v38 = vpack.c.bf16 %v178_v19, %v178_v19 }
 0x1a9   :  { %v240_v39 = vunpack.c.l.b16 %v188_v38 }
 0x1ab   :  { %v1527_v40 = vpack.c.b16 %v240_v39, %v240_v39 }
 0x1ad   :  { %242 = vrot.lane.b32.xlu1 %v1527_v40, %s1423_s1 }
 0x1ae   :  { %v180_v41 = vpop.f32.mrf.mxu0 }
 0x1af   :  { %v189_v42 = vpack.c.bf16 %v180_v41, %v180_v41 }
 0x1b1   :  { %v264_v43 = vunpack.c.l.b16 %v189_v42 }
 0x1b3   :  { %v1530_v44 = vpack.c.b16 %v264_v43, %v264_v43 }
 0x1b5   :  { %266 = vrot.lane.b32.xlu2 %v1530_v44, %s1423_s1 }
 0x1ff   :  { %v219_v45 = vpop.permute.xlu2 %218 }
 0x200   :  { %v224_v46 = vsel %vm195_vm14, %v219_v45, 0 }
 0x201   :  { %233 = vmatpush.bf16.xpose.msra.mxu3 %v224_v46 }
 0x208   :  { %1251 = vmatmul.msk.bf16.vlgmr.msra.gmra.mxu3 %vm195_vm14, %v187_v36 }
 0x20f   :  { %v267_v47 = vpop.permute.xlu2 %266  ;;  %v194_v48 = vpop.permute.xlu0 %193 }
 0x210   :  { %v200_v49 = vsel %vm195_vm14, %v194_v48, 0  ;;  %v272_v50 = vsel %vm195_vm14, %v267_v47, 0 }
 0x211   :  { %209 = vmatpush.bf16.xpose.msra.mxu1 %v200_v49 }
 0x218   :  { %1250 = vmatmul.msk.bf16.vlgmr.msra.gmra.mxu1 %vm195_vm14, %v186_v32 }
 0x219   :  { %281 = vmatpush.bf16.xpose.msrb.mxu1 %v272_v50 }
 0x21f   :  { %v243_v51 = vpop.permute.xlu1 %242 }
 0x220   :  { %v248_v52 = vsel %vm195_vm14, %v243_v51, 0 }
 0x221   :  { %257 = vmatpush.bf16.xpose.msrb.mxu3 %v248_v52 }
 0x228   :  { %1252 = vmatmul.msk.bf16.vlgmr.msrb.gmra.mxu3 %vm195_vm14, %v188_v38  ;;  %1253 = vmatmul.msk.bf16.vlgmr.msrb.gmra.mxu1 %vm195_vm14, %v189_v42 }
 0x28b   :  { %v235_v55 = vpop.f32.mrf.mxu3 }
 0x28c   :  { %v290_v56 = vsel %vm185_vm15, %v235_v55, -1e+30 }
 0x28d   :  { %v296_v57 = vsel %vm195_vm14, %v290_v56, -inf }
 0x28e   :  { %297 = vmax.xlane.f32.xlu2 %v296_v57 }
 0x293   :  { %v237_v58 = vpop.f32.mrf.mxu3 }
 0x295   :  { %v211_v59 = vpop.f32.mrf.mxu1 }
 0x296   :  { %v289_v60 = vsel %vm185_vm15, %v211_v59, -1e+30 }
 0x297   :  { %v293_v61 = vsel %vm195_vm14, %v289_v60, -inf }
 0x298   :  { %294 = vmax.xlane.f32.xlu0 %v293_v61 }
 0x29d   :  { %v213_v62 = vpop.f32.mrf.mxu1 }
 0x2a5   :  { %v283_v63 = vpop.f32.mrf.mxu1 }
 0x2a6   :  { %363 = vrot.lane.b32.xlu2 %v1524_v37, %s1424_s2  ;;  %v292_v5 = vsel %vm185_vm15, %v283_v63, -1e+30 }
 0x2a7   :  { %v302_v6 = vsel %vm195_vm14, %v292_v5, -inf }
 0x2ab   :  { %v259_v0 = vpop.f32.mrf.mxu3 }
 0x2ac   :  { %v291_v1 = vsel %vm185_vm15, %v259_v0, -1e+30  ;;  %341 = vrot.lane.b32.xlu0 %v1521_v34, %s1424_s2 }
 0x2ad   :  { %v285_v2 = vpop.f32.mrf.mxu1  ;;  %v299_v3 = vsel %vm195_vm14, %v291_v1, -inf }
 0x2ae   :  { %300 = vmax.xlane.f32.xlu1 %v299_v3 }
 0x2b3   :  { %v261_v4 = vpop.f32.mrf.mxu3 }
 0x2d6   :  { %303 = vmax.xlane.f32.xlu0 %v302_v6 }
 0x2ea   :  { %451 = vrot.lane.b32.xlu0 %v1524_v37, %s1425_s12 }
 0x2f2   :  { %449 = vrot.lane.b32.xlu0 %v1524_v37, %s1426_s13 }
 0x2fa   :  { %384 = vrot.lane.b32.xlu0 %v1527_v40, %s1424_s2 }
 0x301   :  { %v298_v7 = vpop.xlane.xlu2 %297 }
 0x302   :  { %v306_v8 = vsub.f32 %v290_v56, %v298_v7  ;;  %405 = vrot.lane.b32.xlu0 %v1530_v44, %s1424_s2 }
 0x304   :  { %v311_v9 = vmul.f32 1.442695, %v306_v8 }
 0x306   :  { %1354 = vpow2.f32 %v311_v9 }
 0x309   :  { %v364_v10 = vpop.permute.xlu2 %363 }
 0x30a   :  { %v369_v11 = vsel %vm346_vm1, %v364_v10, 0  ;;  %474 = vrot.lane.b32.xlu0 %v1527_v40, %s1425_s12 }
 0x30b   :  { %378 = vmatpush.bf16.msra.mxu3 %v369_v11  ;;  %v295_v12 = vpop.xlane.xlu0 %294 }
 0x30c   :  { %v1355_v13 = vpop.eup %1354  ;;  %v305_v14 = vsub.f32 %v289_v60, %v295_v12 }
 0x30d   :  { %v320_v15 = vsel %vm195_vm14, %v1355_v13, 0.0 }
 0x30e   :  { %v309_v16 = vmul.f32 1.442695, %v305_v14  ;;  %321 = vadd.xlane.f32.xlu1 %v320_v15 }
 0x310   :  { %1356 = vpow2.f32 %v309_v16 }
 0x312   :  { %497 = vrot.lane.b32.xlu0 %v1530_v44, %s1425_s12 }
 0x316   :  { %v1357_v17 = vpop.eup %1356 }
 0x317   :  { %v317_v18 = vsel %vm195_vm14, %v1357_v17, 0.0 }
 0x318   :  { %318 = vadd.xlane.f32.xlu2 %v317_v18 }
 0x31a   :  { %472 = vrot.lane.b32.xlu0 %v1527_v40, %s1426_s13 }
 0x31e   :  { %v342_v20 = vpop.permute.xlu0 %341 }
 0x31f   :  { %v348_v21 = vsel %vm346_vm1, %v342_v20, 0 }
 0x320   :  { %357 = vmatpush.bf16.msra.mxu2 %v348_v21 }
 0x321   :  { %v301_v22 = vpop.xlane.xlu1 %300 }
 0x322   :  { %v307_v23 = vsub.f32 %v291_v1, %v301_v22 }
 0x324   :  { %v313_v24 = vmul.f32 1.442695, %v307_v23 }
 0x326   :  { %1358 = vpow2.f32 %v313_v24 }
 0x327   :  { %428 = vrot.lane.b32.xlu1 %v1521_v34, %s1425_s12 }
 0x32c   :  { %v1359_v28 = vpop.eup %1358 }
 0x32d   :  { %v323_v30 = vsel %vm195_vm14, %v1359_v28, 0.0 }
 0x330   :  { %426 = vrot.lane.b32.xlu2 %v1521_v34, %s1426_s13 }
 0x349   :  { %v304_v25 = vpop.xlane.xlu0 %303 }
 0x34a   :  { %v308_v26 = vsub.f32 %v292_v5, %v304_v25 }
 0x34c   :  { %v315_v27 = vmul.f32 1.442695, %v308_v26 }
 0x34e   :  { %1360 = vpow2.f32 %v315_v27 }
 0x351   :  { %324 = vadd.xlane.f32.xlu1 %v323_v30 }
 0x354   :  { %v1361_v31 = vpop.eup %1360 }
 0x355   :  { %v326_v32 = vsel %vm195_vm14, %v1361_v31, 0.0 }
 0x359   :  { %327 = vadd.xlane.f32.xlu2 %v326_v32 }
 0x35c   :  { %v452_v33 = vpop.permute.xlu0 %451 }
 0x35d   :  { %v457_v35 = vsel %vm195_vm14, %v452_v33, 0 }
 0x35e   :  { %466 = vmatpush.bf16.xpose.msrb.mxu3 %v457_v35 }
 0x364   :  { %v450_v36 = vpop.permute.xlu0 %449 }
 0x36a   :  { %495 = vrot.lane.b32.xlu1 %v1530_v44, %s1426_s13 }
 0x36c   :  { %v385_v29 = vpop.permute.xlu0 %384 }
 0x36d   :  { %v390_v19 = vsel %vm346_vm1, %v385_v29, 0 }
 0x36e   :  { %399 = vmatpush.bf16.msrb.mxu0 %v390_v19 }
 0x371   :  { %570 = vrot.lane.b32.xlu2 %v1521_v34, %s1427_s14 }
 0x372   :  { %654 = vrot.lane.b32.xlu1 %v1521_v34, %s1428_s15 }
 0x374   :  { %v406_v38 = vpop.permute.xlu0 %405 }
 0x375   :  { %v411_v39 = vsel %vm346_vm1, %v406_v38, 0 }
 0x376   :  { %420 = vmatpush.bf16.msra.mxu1 %v411_v39 }
 0x379   :  { %656 = vrot.lane.b32.xlu2 %v1521_v34, %s1429_s16 }
 0x37c   :  { %v475_v41 = vpop.permute.xlu0 %474 }
 0x37d   :  { %v480_v42 = vsel %vm195_vm14, %v475_v41, 0 }
 0x37e   :  { %489 = vmatpush.bf16.xpose.msra.mxu0 %v480_v42 }
 0x381   :  { %v322_v43 = vpop.xlane.xlu1 %321 }
 0x382   :  { %1362 = vrcp.f32 %v322_v43 }
 0x384   :  { %v498_v45 = vpop.permute.xlu0 %497 }
 0x385   :  { %v503_v46 = vsel %vm195_vm14, %v498_v45, 0 }
 0x386   :  { %512 = vmatpush.bf16.xpose.msrb.mxu1 %v503_v46 }
 0x388   :  { %v1363_v47 = vpop.eup %1362 }
 0x389   :  { %v334_v48 = vmul.f32 %v1363_v47, %v1355_v13 }
 0x38b   :  { %v338_v49 = vpack.c.bf16 %v334_v48, %v334_v48  ;;  %v319_v50 = vpop.xlane.xlu2 %318 }
 0x38c   :  { %1364 = vrcp.f32 %v319_v50  ;;  %v473_v7 = vpop.permute.xlu0 %472 }
 0x38d   :  { %1255 = vmatmul.msk.bf16.vlgmr.msra.gmra.mxu3 %vm195_vm14, %v338_v49 }
 0x392   :  { %v1365_v51 = vpop.eup %1364 }
 0x393   :  { %v333_v52 = vmul.f32 %v1365_v51, %v1357_v17  ;;  %v427_v58 = vpop.permute.xlu2 %426 }
 0x395   :  { %v337_v55 = vpack.c.bf16 %v333_v52, %v333_v52 }
 0x397   :  { %1254 = vmatmul.msk.bf16.vlgmr.msra.gmra.mxu2 %vm195_vm14, %v337_v55 }
 0x399   :  { %v429_v56 = vpop.permute.xlu1 %428 }
 0x39a   :  { %v434_v57 = vsel %vm195_vm14, %v429_v56, 0 }
 0x39b   :  { %443 = vmatpush.bf16.xpose.msrb.mxu2 %v434_v57 }
 0x39d   :  { %1259 = vmatmul.msk.bf16.vlgmr.msrb.gmra.mxu3 %vm195_vm14, %v450_v36 }
 0x3a7   :  { %1258 = vmatmul.msk.bf16.vlgmr.msrb.gmra.mxu2 %vm195_vm14, %v427_v58 }
 0x3c4   :  { %v325_v59 = vpop.xlane.xlu1 %324 }
 0x3c5   :  { %1366 = vrcp.f32 %v325_v59 }
 0x3cb   :  { %v1367_v60 = vpop.eup %1366 }
 0x3cc   :  { %v335_v61 = vmul.f32 %v1367_v60, %v1359_v28  ;;  %v328_v62 = vpop.xlane.xlu2 %327 }
 0x3cd   :  { %1368 = vrcp.f32 %v328_v62 }
 0x3ce   :  { %v339_v63 = vpack.c.bf16 %v335_v61, %v335_v61 }
 0x3d0   :  { %1256 = vmatmul.msk.bf16.vlgmr.msrb.gmra.mxu0 %vm195_vm14, %v339_v63 }
 0x3d3   :  { %v1369_v0 = vpop.eup %1368 }
 0x3d4   :  { %v336_v1 = vmul.f32 %v1369_v0, %v1361_v31  ;;  %v571_v2 = vpop.permute.xlu2 %570 }
 0x3d5   :  { %v576_v3 = vsel %vm346_vm1, %v571_v2, 0 }
 0x3d6   :  { %v340_v4 = vpack.c.bf16 %v336_v1, %v336_v1  ;;  %585 = vmatpush.bf16.msra.mxu2 %v576_v3 }
 0x3d8   :  { %1257 = vmatmul.msk.bf16.vlgmr.msra.gmra.mxu1 %vm195_vm14, %v340_v4 }
 0x3dc   :  { %v657_v5 = vpop.permute.xlu2 %656  ;;  %v496_v8 = vpop.permute.xlu1 %495 }
 0x3dd   :  { %v662_v6 = vsel %vm195_vm14, %v657_v5, 0 }
 0x3de   :  { %671 = vmatpush.bf16.xpose.msrb.mxu2 %v662_v6 }
 0x3e0   :  { %1260 = vmatmul.msk.bf16.vlgmr.msra.gmra.mxu0 %vm195_vm14, %v473_v7 }
 0x3e4   :  { %v655_v0 = vpop.permute.xlu1 %654 }
 0x3e8   :  { %1261 = vmatmul.msk.bf16.vlgmr.msrb.gmra.mxu1 %vm195_vm14, %v496_v8 }
 0x410   :  { %v1601_v9 = vpop.f32.mrf.mxu3 }
 0x418   :  { %v382_v10 = vpop.f32.mrf.mxu3 }
 0x41a   :  { %v1603_v11 = vpop.f32.mrf.mxu2 }
 0x420   :  { %v468_v12 = vpop.f32.mrf.mxu3 }
 0x421   :  { %v519_v13 = vsel %vm185_vm15, %v468_v12, -1e+30 }
 0x422   :  { %v361_v14 = vpop.f32.mrf.mxu2  ;;  %v525_v15 = vsel %vm195_vm14, %v519_v13, -inf }
 0x423   :  { %526 = vmax.xlane.f32.xlu2 %v525_v15 }
 0x428   :  { %v470_v16 = vpop.f32.mrf.mxu3 }
 0x42a   :  { %v445_v17 = vpop.f32.mrf.mxu2 }
 0x42b   :  { %v518_v18 = vsel %vm185_vm15, %v445_v17, -1e+30 }
 0x42c   :  { %v522_v20 = vsel %vm195_vm14, %v518_v18, -inf }
 0x42d   :  { %523 = vmax.xlane.f32.xlu0 %v522_v20 }
 0x432   :  { %v447_v21 = vpop.f32.mrf.mxu2 }
 0x441   :  { %591 = vrot.lane.b32.xlu0 %v1524_v37, %s1427_s14 }
 0x449   :  { %679 = vrot.lane.b32.xlu0 %v1524_v37, %s1429_s16 }
 0x44d   :  { %v1615_v22 = vpop.f32.mrf.mxu0 }
 0x455   :  { %v403_v23 = vpop.f32.mrf.mxu0  ;;  %v1617_v24 = vpop.f32.mrf.mxu1 }
 0x45d   :  { %v424_v25 = vpop.f32.mrf.mxu1  ;;  %v491_v26 = vpop.f32.mrf.mxu0 }
 0x45e   :  { %v520_v32 = vsel %vm185_vm15, %v491_v26, -1e+30 }
 0x45f   :  { %v528_v35 = vsel %vm195_vm14, %v520_v32, -inf }
 0x465   :  { %v493_v27 = vpop.f32.mrf.mxu0  ;;  %v514_v28 = vpop.f32.mrf.mxu1 }
 0x466   :  { %v521_v30 = vsel %vm185_vm15, %v514_v28, -1e+30 }
 0x467   :  { %v531_v31 = vsel %vm195_vm14, %v521_v30, -inf }
 0x468   :  { %532 = vmax.xlane.f32.xlu2 %v531_v31 }
 0x46d   :  { %v516_v33 = vpop.f32.mrf.mxu1 }
 0x470   :  { %529 = vmax.xlane.f32.xlu2 %v528_v35 }
 0x496   :  { %v527_v36 = vpop.xlane.xlu2 %526 }
 0x497   :  { %v535_v29 = vsub.f32 %v519_v13, %v527_v36 }
 0x499   :  { %v540_v19 = vmul.f32 1.442695, %v535_v29 }
 0x49b   :  { %1370 = vpow2.f32 %v540_v19 }
 0x4a0   :  { %v524_v38 = vpop.xlane.xlu0 %523 }
 0x4a1   :  { %v1371_v39 = vpop.eup %1370  ;;  %v534_v41 = vsub.f32 %v518_v18, %v524_v38 }
 0x4a2   :  { %v549_v42 = vsel %vm195_vm14, %v1371_v39, 0.0 }
 0x4a3   :  { %v538_v43 = vmul.f32 1.442695, %v534_v41  ;;  %550 = vadd.xlane.f32.xlu2 %v549_v42 }
 0x4a5   :  { %1372 = vpow2.f32 %v538_v43 }
 0x4ab   :  { %v1373_v45 = vpop.eup %1372 }
 0x4ac   :  { %v546_v46 = vsel %vm195_vm14, %v1373_v45, 0.0 }
 0x4ad   :  { %547 = vadd.xlane.f32.xlu1 %v546_v46 }
 0x4b3   :  { %v592_v47 = vpop.permute.xlu0 %591 }
 0x4b4   :  { %v597_v48 = vsel %vm346_vm1, %v592_v47, 0 }
 0x4b5   :  { %606 = vmatpush.bf16.msra.mxu3 %v597_v48 }
 0x4bb   :  { %v680_v49 = vpop.permute.xlu0 %679  ;;  %677 = vrot.lane.b32.xlu2 %v1524_v37, %s1428_s15 }
 0x4bc   :  { %v685_v50 = vsel %vm195_vm14, %v680_v49, 0 }
 0x4bd   :  { %694 = vmatpush.bf16.xpose.msrb.mxu3 %v685_v50 }
 0x4c6   :  { %612 = vrot.lane.b32.xlu1 %v1527_v40, %s1427_s14 }
 0x4ce   :  { %633 = vrot.lane.b32.xlu1 %v1530_v44, %s1427_s14 }
 0x4d6   :  { %702 = vrot.lane.b32.xlu1 %v1527_v40, %s1429_s16 }
 0x4db   :  { %v533_v51 = vpop.xlane.xlu2 %532 }
 0x4dc   :  { %v537_v52 = vsub.f32 %v521_v30, %v533_v51 }
 0x4de   :  { %v544_v55 = vmul.f32 1.442695, %v537_v52  ;;  %700 = vrot.lane.b32.xlu1 %v1527_v40, %s1428_s15 }
 0x4e0   :  { %1374 = vpow2.f32 %v544_v55 }
 0x4e3   :  { %v530_v56 = vpop.xlane.xlu2 %529 }
 0x4e4   :  { %v536_v57 = vsub.f32 %v520_v32, %v530_v56 }
 0x4e6   :  { %v1375_v58 = vpop.eup %1374  ;;  %v542_v59 = vmul.f32 1.442695, %v536_v57 }
 0x4e7   :  { %v555_v60 = vsel %vm195_vm14, %v1375_v58, 0.0 }
 0x4e8   :  { %1376 = vpow2.f32 %v542_v59  ;;  %556 = vadd.xlane.f32.xlu2 %v555_v60 }
 0x4ee   :  { %v1377_v61 = vpop.eup %1376 }
 0x4ef   :  { %v552_v62 = vsel %vm195_vm14, %v1377_v61, 0.0 }
 0x4f0   :  { %553 = vadd.xlane.f32.xlu0 %v552_v62 }
 0x500   :  { %723 = vrot.lane.b32.xlu2 %v1530_v44, %s1428_s15 }
 0x504   :  { %725 = vrot.lane.b32.xlu0 %v1530_v44, %s1429_s16 }
 0x516   :  { %v551_v63 = vpop.xlane.xlu2 %550 }
 0x517   :  { %1378 = vrcp.f32 %v551_v63 }
 0x51d   :  { %v1379_v1 = vpop.eup %1378 }
 0x51e   :  { %v563_v2 = vmul.f32 %v1379_v1, %v1371_v39  ;;  %v678_v8 = vpop.permute.xlu2 %677 }
 0x520   :  { %v567_v3 = vpack.c.bf16 %v563_v2, %v563_v2  ;;  %v548_v4 = vpop.xlane.xlu1 %547 }
 0x521   :  { %1380 = vrcp.f32 %v548_v4 }
 0x522   :  { %1263 = vmatmul.msk.bf16.vlgmr.msra.gmra.mxu3 %vm195_vm14, %v567_v3 }
 0x527   :  { %v1381_v5 = vpop.eup %1380 }
 0x528   :  { %v562_v6 = vmul.f32 %v1381_v5, %v1373_v45 }
 0x52a   :  { %v566_v7 = vpack.c.bf16 %v562_v6, %v562_v6 }
 0x52c   :  { %1262 = vmatmul.msk.bf16.vlgmr.msra.gmra.mxu2 %vm195_vm14, %v566_v7 }
 0x532   :  { %1267 = vmatmul.msk.bf16.vlgmr.msrb.gmra.mxu3 %vm195_vm14, %v678_v8 }
 0x538   :  { %v613_v10 = vpop.permute.xlu1 %612 }
 0x539   :  { %v618_v12 = vsel %vm346_vm1, %v613_v10, 0 }
 0x53a   :  { %627 = vmatpush.bf16.msrb.mxu0 %v618_v12 }
 0x53c   :  { %1266 = vmatmul.msk.bf16.vlgmr.msrb.gmra.mxu2 %vm195_vm14, %v655_v0 }
 0x540   :  { %v634_v13 = vpop.permute.xlu1 %633 }
 0x541   :  { %v639_v14 = vsel %vm346_vm1, %v634_v13, 0 }
 0x542   :  { %648 = vmatpush.bf16.msra.mxu1 %v639_v14 }
 0x548   :  { %v703_v15 = vpop.permute.xlu1 %702 }
 0x549   :  { %v708_v16 = vsel %vm195_vm14, %v703_v15, 0 }
 0x54a   :  { %717 = vmatpush.bf16.xpose.msra.mxu0 %v708_v16 }
 0x550   :  { %v701_v31 = vpop.permute.xlu1 %700 }
 0x55b   :  { %v557_v17 = vpop.xlane.xlu2 %556 }
 0x55c   :  { %1382 = vrcp.f32 %v557_v17 }
 0x562   :  { %v1383_v18 = vpop.eup %1382 }
 0x563   :  { %v565_v20 = vmul.f32 %v1383_v18, %v1375_v58  ;;  %v554_v21 = vpop.xlane.xlu0 %553  ;;  %v724_v32 = vpop.permute.xlu2 %723 }
 0x564   :  { %1384 = vrcp.f32 %v554_v21 }
 0x565   :  { %v569_v23 = vpack.c.bf16 %v565_v20, %v565_v20 }
 0x567   :  { %1265 = vmatmul.msk.bf16.vlgmr.msra.gmra.mxu1 %vm195_vm14, %v569_v23 }
 0x56a   :  { %v1385_v25 = vpop.eup %1384 }
 0x56b   :  { %v564_v26 = vmul.f32 %v1385_v25, %v1377_v61 }
 0x56d   :  { %v568_v27 = vpack.c.bf16 %v564_v26, %v564_v26 }
 0x56f   :  { %1264 = vmatmul.msk.bf16.vlgmr.msrb.gmra.mxu0 %vm195_vm14, %v568_v27 }
 0x576   :  { %v726_v28 = vpop.permute.xlu0 %725 }
 0x577   :  { %v731_v30 = vsel %vm195_vm14, %v726_v28, 0 }
 0x578   :  { %740 = vmatpush.bf16.xpose.msrb.mxu1 %v731_v30 }
 0x57f   :  { %1268 = vmatmul.msk.bf16.vlgmr.msra.gmra.mxu0 %vm195_vm14, %v701_v31  ;;  %1269 = vmatmul.msk.bf16.vlgmr.msrb.gmra.mxu1 %vm195_vm14, %v724_v32 }
 0x5a5   :  { %v1657_v33 = vpop.f32.mrf.mxu3 }
 0x5ad   :  { %v610_v35 = vpop.f32.mrf.mxu3 }
 0x5af   :  { %v1659_v36 = vpop.f32.mrf.mxu2 }
 0x5b0   :  { %v1311_v29 = vpack.i.bf16 %v1657_v33, %v1659_v36 }
 0x5b5   :  { %v696_v19 = vpop.f32.mrf.mxu3 }
 0x5b6   :  { %v747_v38 = vsel %vm185_vm15, %v696_v19, -1e+30 }
 0x5b7   :  { %v589_v39 = vpop.f32.mrf.mxu2  ;;  %v753_v41 = vsel %vm195_vm14, %v747_v38, -inf }
 0x5b8   :  { %754 = vmax.xlane.f32.xlu0 %v753_v41 }
 0x5bd   :  { %v698_v42 = vpop.f32.mrf.mxu3 }
 0x5bf   :  { %v673_v43 = vpop.f32.mrf.mxu2 }
 0x5c0   :  { %v746_v45 = vsel %vm185_vm15, %v673_v43, -1e+30 }
 0x5c1   :  { %v750_v46 = vsel %vm195_vm14, %v746_v45, -inf }
 0x5c2   :  { %751 = vmax.xlane.f32.xlu1 %v750_v46 }
 0x5c7   :  { %v675_v47 = vpop.f32.mrf.mxu2 }
 0x5cc   :  { %884 = vrot.lane.b32.xlu0 %v1521_v34, %s1430_s17 }
 0x5d4   :  { %907 = vrot.lane.b32.xlu0 %v1524_v37, %s1430_s17 }
 0x5dc   :  { %882 = vrot.lane.b32.xlu0 %v1521_v34, %s1431_s18 }
 0x5e4   :  { %905 = vrot.lane.b32.xlu0 %v1524_v37, %s1431_s18  ;;  %v1677_v48 = vpop.f32.mrf.mxu1 }
 0x5ec   :  { %v1679_v49 = vpop.f32.mrf.mxu0  ;;  %840 = vrot.lane.b32.xlu0 %v1527_v40, %s1432_s19  ;;  %v652_v50 = vpop.f32.mrf.mxu1 }
 0x5ed   :  { %v1326_v51 = vpack.i.bf16 %v1677_v48, %v1679_v49 }
 0x5f4   :  { %v631_v52 = vpop.f32.mrf.mxu0 }
 0x5fc   :  { %v719_v55 = vpop.f32.mrf.mxu0  ;;  %v742_v56 = vpop.f32.mrf.mxu1 }
 0x5fd   :  { %v748_v57 = vsel %vm185_vm15, %v719_v55, -1e+30  ;;  %v749_v58 = vsel %vm185_vm15, %v742_v56, -1e+30 }
 0x5fe   :  { %v756_v59 = vsel %vm195_vm14, %v748_v57, -inf  ;;  %v759_v60 = vsel %vm195_vm14, %v749_v58, -inf }
 0x5ff   :  { %757 = vmax.xlane.f32.xlu2 %v756_v59  ;;  %760 = vmax.xlane.f32.xlu1 %v759_v60 }
 0x604   :  { %v721_v61 = vpop.f32.mrf.mxu0  ;;  %v744_v62 = vpop.f32.mrf.mxu1 }
 0x617   :  { %819 = vrot.lane.b32.xlu2 %v1524_v37, %s1432_s19 }
 0x62b   :  { %v755_v63 = vpop.xlane.xlu0 %754 }
 0x62c   :  { %v763_v0 = vsub.f32 %v747_v38, %v755_v63 }
 0x62e   :  { %v768_v1 = vmul.f32 1.442695, %v763_v0 }
 0x630   :  { %1386 = vpow2.f32 %v768_v1 }
 0x635   :  { %v752_v2 = vpop.xlane.xlu1 %751 }
 0x636   :  { %v1387_v3 = vpop.eup %1386  ;;  %v762_v4 = vsub.f32 %v746_v45, %v752_v2 }
 0x637   :  { %v777_v5 = vsel %vm195_vm14, %v1387_v3, 0.0 }
 0x638   :  { %v766_v6 = vmul.f32 1.442695, %v762_v4  ;;  %778 = vadd.xlane.f32.xlu0 %v777_v5 }
 0x63a   :  { %1388 = vpow2.f32 %v766_v6 }
 0x63e   :  { %v885_v7 = vpop.permute.xlu0 %884 }
 0x640   :  { %v1389_v8 = vpop.eup %1388 }
 0x641   :  { %v774_v10 = vsel %vm195_vm14, %v1389_v8, 0.0 }
 0x642   :  { %775 = vadd.xlane.f32.xlu1 %v774_v10 }
 0x646   :  { %v908_v12 = vpop.permute.xlu0 %907 }
 0x647   :  { %v913_v28 = vsel %vm195_vm14, %v908_v12, 0 }
 0x64c   :  { %861 = vrot.lane.b32.xlu0 %v1530_v44, %s1432_s19 }
 0x64e   :  { %v883_v13 = vpop.permute.xlu0 %882 }
 0x654   :  { %930 = vrot.lane.b32.xlu0 %v1527_v40, %s1430_s17 }
 0x656   :  { %v906_v14 = vpop.permute.xlu0 %905 }
 0x65b   :  { %798 = vrot.lane.b32.xlu1 %v1521_v34, %s1432_s19 }
 0x65c   :  { %951 = vrot.lane.b32.xlu0 %v1530_v44, %s1431_s18 }
 0x65e   :  { %v841_v15 = vpop.permute.xlu0 %840 }
 0x65f   :  { %v846_v16 = vsel %vm346_vm1, %v841_v15, 0 }
 0x660   :  { %855 = vmatpush.bf16.msrb.mxu0 %v846_v16 }
 0x672   :  { %v758_v17 = vpop.xlane.xlu2 %757  ;;  %v761_v18 = vpop.xlane.xlu1 %760 }
 0x673   :  { %v764_v20 = vsub.f32 %v748_v57, %v758_v17  ;;  %v765_v21 = vsub.f32 %v749_v58, %v761_v18  ;;  %v890_v57 = vsel %vm195_vm14, %v885_v7, 0 }
 0x675   :  { %v770_v23 = vmul.f32 1.442695, %v764_v20  ;;  %v772_v25 = vmul.f32 1.442695, %v765_v21 }
 0x677   :  { %1390 = vpow2.f32 %v770_v23 }
 0x678   :  { %1392 = vpow2.f32 %v772_v25 }
 0x67a   :  { %v820_v26 = vpop.permute.xlu2 %819 }
 0x67b   :  { %v825_v27 = vsel %vm346_vm1, %v820_v26, 0 }
 0x67c   :  { %834 = vmatpush.bf16.msra.mxu3 %v825_v27 }
 0x67d   :  { %v1391_v30 = vpop.eup %1390 }
 0x67e   :  { %v780_v31 = vsel %vm195_vm14, %v1391_v30, 0.0  ;;  %v1393_v32 = vpop.eup %1392 }
 0x67f   :  { %781 = vadd.xlane.f32.xlu2 %v780_v31  ;;  %v783_v35 = vsel %vm195_vm14, %v1393_v32, 0.0 }
 0x680   :  { %922 = vmatpush.bf16.xpose.msrb.mxu3 %v913_v28 }
 0x685   :  { %784 = vadd.xlane.f32.xlu1 %v783_v35 }
 0x697   :  { %953 = vrot.lane.b32.xlu2 %v1530_v44, %s1430_s17 }
 0x69e   :  { %928 = vrot.lane.b32.xlu1 %v1527_v40, %s1431_s18 }
 0x6ab   :  { %v779_v19 = vpop.xlane.xlu0 %778 }
 0x6ac   :  { %1394 = vrcp.f32 %v779_v19 }
 0x6b2   :  { %v1395_v38 = vpop.eup %1394 }
 0x6b3   :  { %v791_v39 = vmul.f32 %v1395_v38, %v1387_v3 }
 0x6b5   :  { %v795_v41 = vpack.c.bf16 %v791_v39, %v791_v39  ;;  %v776_v45 = vpop.xlane.xlu1 %775 }
 0x6b6   :  { %1396 = vrcp.f32 %v776_v45 }
 0x6b7   :  { %1271 = vmatmul.msk.bf16.vlgmr.msra.gmra.mxu3 %vm195_vm14, %v795_v41 }
 0x6bc   :  { %v1397_v50 = vpop.eup %1396 }
 0x6bd   :  { %v790_v52 = vmul.f32 %v1397_v50, %v1389_v8 }
 0x6be   :  { %v862_v42 = vpop.permute.xlu0 %861 }
 0x6bf   :  { %v867_v43 = vsel %vm346_vm1, %v862_v42, 0  ;;  %v794_v58 = vpack.c.bf16 %v790_v52, %v790_v52 }
 0x6c0   :  { %876 = vmatpush.bf16.msra.mxu1 %v867_v43 }
 0x6c6   :  { %v931_v46 = vpop.permute.xlu0 %930 }
 0x6c7   :  { %v936_v47 = vsel %vm195_vm14, %v931_v46, 0  ;;  %1275 = vmatmul.msk.bf16.vlgmr.msrb.gmra.mxu3 %vm195_vm14, %v906_v14 }
 0x6c8   :  { %945 = vmatpush.bf16.xpose.msra.mxu0 %v936_v47 }
 0x6cd   :  { %v799_v55 = vpop.permute.xlu1 %798 }
 0x6ce   :  { %v804_v56 = vsel %vm346_vm1, %v799_v55, 0  ;;  %v952_v6 = vpop.permute.xlu0 %951 }
 0x6cf   :  { %813 = vmatpush.bf16.msra.mxu2 %v804_v56 }
 0x6d2   :  { %1270 = vmatmul.msk.bf16.vlgmr.msra.gmra.mxu2 %vm195_vm14, %v794_v58 }
 0x6d3   :  { %899 = vmatpush.bf16.xpose.msrb.mxu2 %v890_v57 }
 0x6e2   :  { %1274 = vmatmul.msk.bf16.vlgmr.msrb.gmra.mxu2 %vm195_vm14, %v883_v13 }
 0x6f2   :  { %v782_v59 = vpop.xlane.xlu2 %781 }
 0x6f3   :  { %1398 = vrcp.f32 %v782_v59 }
 0x6f8   :  { %v785_v60 = vpop.xlane.xlu1 %784 }
 0x6f9   :  { %v1399_v61 = vpop.eup %1398  ;;  %1400 = vrcp.f32 %v785_v60 }
 0x6fa   :  { %v792_v62 = vmul.f32 %v1399_v61, %v1391_v30  ;;  %v954_v63 = vpop.permute.xlu2 %953 }
 0x6fb   :  { %v959_v0 = vsel %vm195_vm14, %v954_v63, 0 }
 0x6fc   :  { %v796_v1 = vpack.c.bf16 %v792_v62, %v792_v62  ;;  %968 = vmatpush.bf16.xpose.msrb.mxu1 %v959_v0 }
 0x6fe   :  { %1272 = vmatmul.msk.bf16.vlgmr.msrb.gmra.mxu0 %vm195_vm14, %v796_v1 }
 0x6ff   :  { %v1401_v2 = vpop.eup %1400 }
 0x700   :  { %v793_v3 = vmul.f32 %v1401_v2, %v1393_v32 }
 0x702   :  { %v797_v4 = vpack.c.bf16 %v793_v3, %v793_v3 }
 0x704   :  { %1273 = vmatmul.msk.bf16.vlgmr.msra.gmra.mxu1 %vm195_vm14, %v797_v4 }
 0x710   :  { %v929_v5 = vpop.permute.xlu1 %928 }
 0x711   :  { %1276 = vmatmul.msk.bf16.vlgmr.msra.gmra.mxu0 %vm195_vm14, %v929_v5 }
 0x714   :  { %1277 = vmatmul.msk.bf16.vlgmr.msrb.gmra.mxu1 %vm195_vm14, %v952_v6 }
 0x73a   :  { %v836_v7 = vpop.f32.mrf.mxu3 }
 0x742   :  { %v838_v8 = vpop.f32.mrf.mxu3 }
 0x74a   :  { %v924_v10 = vpop.f32.mrf.mxu3 }
 0x74b   :  { %v975_v12 = vsel %vm185_vm15, %v924_v10, -1e+30 }
 0x74c   :  { %v981_v13 = vsel %vm195_vm14, %v975_v12, -inf }
 0x74d   :  { %982 = vmax.xlane.f32.xlu2 %v981_v13 }
 0x752   :  { %v926_v14 = vpop.f32.mrf.mxu3 }
 0x755   :  { %v815_v15 = vpop.f32.mrf.mxu2 }
 0x756   :  { %v1316_v16 = vpack.i.bf16 %v836_v7, %v815_v15 }
 0x75d   :  { %v817_v17 = vpop.f32.mrf.mxu2 }
 0x765   :  { %v901_v18 = vpop.f32.mrf.mxu2 }
 0x766   :  { %v974_v20 = vsel %vm185_vm15, %v901_v18, -1e+30 }
 0x767   :  { %v978_v21 = vsel %vm195_vm14, %v974_v20, -inf }
 0x768   :  { %979 = vmax.xlane.f32.xlu0 %v978_v21 }
 0x76d   :  { %v903_v23 = vpop.f32.mrf.mxu2 }
 0x77b   :  { %v1731_v25 = vpop.f32.mrf.mxu0 }
 0x781   :  { %v1733_v26 = vpop.f32.mrf.mxu1 }
 0x782   :  { %v1331_v27 = vpack.i.bf16 %v1733_v26, %v1731_v25 }
 0x783   :  { %v859_v28 = vpop.f32.mrf.mxu0 }
 0x789   :  { %v880_v30 = vpop.f32.mrf.mxu1 }
 0x78e   :  { %v947_v31 = vpop.f32.mrf.mxu0 }
 0x78f   :  { %v976_v32 = vsel %vm185_vm15, %v947_v31, -1e+30 }
 0x790   :  { %v984_v35 = vsel %vm195_vm14, %v976_v32, -inf }
 0x791   :  { %985 = vmax.xlane.f32.xlu1 %v984_v35  ;;  %v970_v19 = vpop.f32.mrf.mxu1 }
 0x792   :  { %v977_v38 = vsel %vm185_vm15, %v970_v19, -1e+30 }
 0x793   :  { %v987_v39 = vsel %vm195_vm14, %v977_v38, -inf }
 0x794   :  { %988 = vmax.xlane.f32.xlu0 %v987_v39 }
 0x796   :  { %v949_v41 = vpop.f32.mrf.mxu0 }
 0x797   :  { %v1295_v41 = vld [vmem:[%s1839_s4 + $0x8] sm:$0xff] }
 0x799   :  { %v972_v42 = vpop.f32.mrf.mxu1 }
 0x79a   :  { %v1294_v42 = vld [vmem:[%s1839_s4] sm:$0xff] }
 0x7a8   :  { %1047 = vrot.lane.b32.xlu0 %v1524_v37, %s1433_s20 }
 0x7aa   :  { %1026 = vrot.lane.b32.xlu1 %v1521_v34, %s1433_s20 }
 0x7b2   :  { %1312 = vrot.lane.b32.xlu1 %v1311_v29, %s1434_s21 }
 0x7c0   :  { %v983_v29 = vpop.xlane.xlu2 %982 }
 0x7c1   :  { %v991_v56 = vsub.f32 %v975_v12, %v983_v29 }
 0x7c3   :  { %v996_v57 = vmul.f32 1.442695, %v991_v56 }
 0x7db   :  { %v980_v43 = vpop.xlane.xlu0 %979 }
 0x7dc   :  { %v990_v54 = vsub.f32 %v974_v20, %v980_v43 }
 0x7de   :  { %v994_v45 = vmul.f32 1.442695, %v990_v54 }
 0x7e0   :  { %1402 = vpow2.f32 %v994_v45 }
 0x7e6   :  { %v1403_v46 = vpop.eup %1402 }
 0x7e7   :  { %v1002_v47 = vsel %vm195_vm14, %v1403_v46, 0.0 }
 0x7e8   :  { %1003 = vadd.xlane.f32.xlu0 %v1002_v47 }
 0x7fc   :  { %1089 = vrot.lane.b32.xlu0 %v1530_v44, %s1433_s20 }
 0x804   :  { %1317 = vrot.lane.b32.xlu0 %v1316_v16, %s1435_s22  ;;  %v986_v34 = vpop.xlane.xlu1 %985 }
 0x805   :  { %v992_v52 = vsub.f32 %v976_v32, %v986_v34 }
 0x807   :  { %v989_v37 = vpop.xlane.xlu0 %988  ;;  %v998_v36 = vmul.f32 1.442695, %v992_v52 }
 0x808   :  { %v993_v50 = vsub.f32 %v977_v38, %v989_v37 }
 0x80a   :  { %v1000_v33 = vmul.f32 1.442695, %v993_v50 }
 0x80c   :  { %1404 = vpow2.f32 %v1000_v33  ;;  %1327 = vrot.lane.b32.xlu0 %v1326_v51, %s1434_s21 }
 0x80d   :  { %1406 = vpow2.f32 %v998_v36 }
 0x80e   :  { %1408 = vpow2.f32 %v996_v57 }
 0x812   :  { %v1405_v55 = vpop.eup %1404 }
 0x813   :  { %v1011_v44 = vsel %vm195_vm14, %v1405_v55, 0.0  ;;  %v1407_v58 = vpop.eup %1406 }
 0x814   :  { %1012 = vadd.xlane.f32.xlu2 %v1011_v44  ;;  %v1008_v61 = vsel %vm195_vm14, %v1407_v58, 0.0  ;;  %v1409_v49 = vpop.eup %1408 }
 0x815   :  { %v1005_v51 = vsel %vm195_vm14, %v1409_v49, 0.0 }
 0x81a   :  { %v1048_v59 = vpop.permute.xlu0 %1047 }
 0x81b   :  { %v1053_v60 = vsel %vm346_vm1, %v1048_v59, 0 }
 0x81c   :  { %v1027_v62 = vpop.permute.xlu1 %1026  ;;  %1009 = vadd.xlane.f32.xlu2 %v1008_v61  ;;  %1062 = vmatpush.bf16.msra.mxu3 %v1053_v60 }
 0x81d   :  { %v1032_v48 = vsel %vm346_vm1, %v1027_v62, 0 }
 0x81e   :  { %1041 = vmatpush.bf16.msra.mxu2 %v1032_v48 }
 0x822   :  { %1206 = vmatpush.bf16.msrb.mxu2 %v1295_v41 }
 0x824   :  { %1006 = vadd.xlane.f32.xlu2 %v1005_v51  ;;  %v1313_v43 = vpop.permute.xlu1 %1312 }
 0x825   :  { %v1315_v45 = vunpack.i.h.bf16 %v1313_v43 }
 0x826   :  { %1207 = vmatpush.bf16.msrb.mxu2 %v1294_v42 }
 0x827   :  { %v1159_v26 = vsel %vm195_vm14, %v1601_v9, %v1315_v45 }
 0x83c   :  { %1068 = vrot.lane.b32.xlu2 %v1527_v40, %s1433_s20 }
 0x85b   :  { %v1004_v63 = vpop.xlane.xlu0 %1003 }
 0x85c   :  { %1410 = vrcp.f32 %v1004_v63 }
 0x862   :  { %v1411_v0 = vpop.eup %1410 }
 0x863   :  { %v1018_v1 = vmul.f32 %v1411_v0, %v1403_v46  ;;  %v1314_v46 = vunpack.i.l.bf16 %v1313_v43 }
 0x865   :  { %v1022_v2 = vpack.c.bf16 %v1018_v1, %v1018_v1 }
 0x867   :  { %1278 = vmatmul.msk.bf16.vlgmr.msra.gmra.mxu2 %vm195_vm14, %v1022_v2  ;;  %v1220_v2 = vshrl.u32 %v183_v53, 7 }
 0x869   :  { %vm1221_vm4 = vcmp.gt.s32.totalorder %v1220_v2, 0 }
 0x86e   :  { %v1090_v3 = vpop.permute.xlu0 %1089 }
 0x86f   :  { %v1095_v4 = vsel %vm346_vm1, %v1090_v3, 0  ;;  %v1418_v3 = vld [vmem:[%s1834_s0] sm:$0xff] }
 0x870   :  { %1104 = vmatpush.bf16.msra.mxu1 %v1095_v4  ;;  %v1224_v4 = vsel %vm1221_vm4, %v1418_v3, 0.0 }
 0x876   :  { %v1318_v54 = vpop.permute.xlu0 %1317 }
 0x877   :  { %v1320_v47 = vunpack.i.h.bf16 %v1318_v54  ;;  %v1319_v34 = vunpack.i.l.bf16 %v1318_v54 }
 0x879   :  { %v1164_v52 = vsel %vm1162_vm2, %v1159_v26, %v1320_v47 }
 0x87e   :  { %v1328_v56 = vpop.permute.xlu0 %1327 }
 0x87f   :  { %v1330_v57 = vunpack.i.h.bf16 %v1328_v56  ;;  %v1329_v9 = vunpack.i.l.bf16 %v1328_v56 }
 0x881   :  { %v1161_v60 = vsel %vm195_vm14, %v1617_v24, %v1330_v57  ;;  %v1160_v61 = vsel %vm195_vm14, %v1615_v22, %v1329_v9  ;;  %v1343_v24 = vld [vmem:[%s1838_s5] ss:$0 sm:$0xff] }
 0x887   :  { %v1013_v5 = vpop.xlane.xlu2 %1012 }
 0x888   :  { %1412 = vrcp.f32 %v1013_v5 }
 0x88e   :  { %v1413_v6 = vpop.eup %1412 }
 0x88f   :  { %v1021_v7 = vmul.f32 %v1413_v6, %v1405_v55  ;;  %v1010_v8 = vpop.xlane.xlu2 %1009 }
 0x890   :  { %1414 = vrcp.f32 %v1010_v8 }
 0x891   :  { %v1025_v10 = vpack.c.bf16 %v1021_v7, %v1021_v7  ;;  %v1419_v7 = vld [vmem:[%s1834_s0 + $0x8] sm:$0xff] }
 0x892   :  { %v1225_v8 = vsel %vm1221_vm4, %v1419_v7, 0.0 }
 0x893   :  { %1281 = vmatmul.msk.bf16.vlgmr.msra.gmra.mxu1 %vm195_vm14, %v1025_v10 }
 0x896   :  { %v1415_v12 = vpop.eup %1414 }
 0x897   :  { %v1007_v40 = vpop.xlane.xlu2 %1006  ;;  %v1020_v14 = vmul.f32 %v1415_v12, %v1407_v58 }
 0x898   :  { %1416 = vrcp.f32 %v1007_v40 }
 0x899   :  { %v1024_v20 = vpack.c.bf16 %v1020_v14, %v1020_v14 }
 0x89e   :  { %v1417_v13 = vpop.eup %1416 }
 0x89f   :  { %v1019_v15 = vmul.f32 %v1417_v13, %v1409_v49  ;;  %v1069_v16 = vpop.permute.xlu2 %1068  ;;  %v1420_v13 = vld [vmem:[%s1834_s0 + $0x10] sm:$0xff] }
 0x8a0   :  { %v1074_v17 = vsel %vm346_vm1, %v1069_v16, 0  ;;  %v1226_v14 = vsel %vm1221_vm4, %v1420_v13, 0.0 }
 0x8a1   :  { %v1023_v18 = vpack.c.bf16 %v1019_v15, %v1019_v15  ;;  %1083 = vmatpush.bf16.msrb.mxu0 %v1074_v17 }
 0x8a3   :  { %1279 = vmatmul.msk.bf16.vlgmr.msra.gmra.mxu3 %vm195_vm14, %v1023_v18  ;;  %v1421_v18 = vld [vmem:[%s1834_s0 + $0x18] sm:$0xff] }
 0x8a4   :  { %1280 = vmatmul.msk.bf16.vlgmr.msrb.gmra.mxu0 %vm195_vm14, %v1024_v20  ;;  %v1227_v20 = vsel %vm1221_vm4, %v1421_v18, 0.0 }
 0x8ea   :  { %v1043_v21 = vpop.f32.mrf.mxu2 }
 0x8f2   :  { %v1045_v23 = vpop.f32.mrf.mxu2 }
 0x910   :  { %v1106_v28 = vpop.f32.mrf.mxu1 }
 0x918   :  { %v1108_v30 = vpop.f32.mrf.mxu1 }
 0x921   :  { %v1085_v31 = vpop.f32.mrf.mxu0 }
 0x922   :  { %v1336_v32 = vpack.i.bf16 %v1106_v28, %v1085_v31 }
 0x924   :  { %1337 = vrot.lane.b32.xlu2 %v1336_v32, %s1436_s23 }
 0x926   :  { %v1064_v35 = vpop.f32.mrf.mxu3 }
 0x927   :  { %v1321_v19 = vpack.i.bf16 %v1064_v35, %v1043_v21 }
 0x929   :  { %v1087_v38 = vpop.f32.mrf.mxu0  ;;  %1322 = vrot.lane.b32.xlu1 %v1321_v19, %s1436_s23 }
 0x92e   :  { %v1066_v39 = vpop.f32.mrf.mxu3 }
 0x931   :  { %1332 = vrot.lane.b32.xlu1 %v1331_v27, %s1435_s22  ;;  %v1158_v27 = vsel %vm195_vm14, %v1603_v11, %v1314_v46 }
 0x932   :  { %v1163_v33 = vsel %vm1162_vm2, %v1158_v27, %v1319_v34 }
 0x97e   :  { %v1338_v11 = vpop.permute.xlu2 %1337 }
 0x97f   :  { %v1340_v49 = vunpack.i.h.bf16 %v1338_v11  ;;  %v1339_v51 = vunpack.i.l.bf16 %v1338_v11 }
 0x99b   :  { %v1323_v25 = vpop.permute.xlu1 %1322 }
 0x99c   :  { %v1325_v37 = vunpack.i.h.bf16 %v1323_v25  ;;  %v1324_v50 = vunpack.i.l.bf16 %v1323_v25 }
 0x99e   :  { %v1168_v36 = vsel %vm1167_vm3, %v1163_v33, %v1324_v50  ;;  %v1169_v29 = vsel %vm1167_vm3, %v1164_v52, %v1325_v37 }
 0x99f   :  { %v1172_v55 = vpack.c.bf16 %v1169_v29, %v1168_v36 }
 0x9a1   :  { %1290 = vmatmul.msk.bf16.vlgmr.msrb.gmra.mxu2 %vm30_vm0, %v1172_v55 }
 0x9a3   :  { %v1333_v44 = vpop.permute.xlu1 %1332 }
 0x9a4   :  { %v1335_v58 = vunpack.i.h.bf16 %v1333_v44  ;;  %v1334_v59 = vunpack.i.l.bf16 %v1333_v44 }
 0x9a6   :  { %v1165_v62 = vsel %vm1162_vm2, %v1160_v61, %v1334_v59  ;;  %v1166_v48 = vsel %vm1162_vm2, %v1161_v60, %v1335_v58 }
 0x9a7   :  { %v1170_v63 = vsel %vm1167_vm3, %v1165_v62, %v1339_v51  ;;  %v1171_v0 = vsel %vm1167_vm3, %v1166_v48, %v1340_v49 }
 0x9a8   :  { %v1173_v1 = vpack.c.bf16 %v1171_v0, %v1170_v63 }
 0x9b1   :  { %1291 = vmatmul.msk.bf16.gmra.mxu2 %vm30_vm0, %v1173_v1 }
 0xa24   :  { %v1209_v22 = vpop.f32.mrf.mxu2 }
 0xa25   :  { %v1210_v5 = vadd.f32 %v1343_v24, %v1209_v22 }
 0xa27   :  { %v1228_v6 = vadd.f32 %v1224_v4, %v1210_v5 }
 0xa29   :  { %1232 = vst.msk [vmem:[%s1840_s6] sm:$0xff] %vm30_vm0, %v1228_v6 }
 0xa2c   :  { %v1211_v53 = vpop.f32.mrf.mxu2 }
 0xa2d   :  { %v1212_v10 = vadd.f32 %v1343_v24, %v1211_v53 }
 0xa2f   :  { %v1229_v40 = vadd.f32 %v1225_v8, %v1212_v10 }
 0xa31   :  { %1233 = vst.msk [vmem:[%s1840_s6 + $0x8] sm:$0xff] %vm30_vm0, %v1229_v40 }
 0xa34   :  { %v1214_v12 = vpop.f32.mrf.mxu2 }
 0xa35   :  { %v1215_v15 = vadd.f32 %v1343_v24, %v1214_v12 }
 0xa37   :  { %v1230_v16 = vadd.f32 %v1226_v14, %v1215_v15 }
 0xa39   :  { %1234 = vst.msk [vmem:[%s1840_s6 + $0x10] sm:$0xff] %vm30_vm0, %v1230_v16 }
 0xa3c   :  { %v1216_v17 = vpop.f32.mrf.mxu2 }
 0xa3d   :  { %v1217_v21 = vadd.f32 %v1343_v24, %v1216_v17 }
 0xa3f   :  { %v1231_v23 = vadd.f32 %v1227_v20, %v1217_v21 }
 0xa41   :  { %1235 = vst.msk [vmem:[%s1840_s6 + $0x18] sm:$0xff] %vm30_vm0, %v1231_v23 }

// kernel: block_forward.3
= control target key start
LH: loop header
LB: loop body
LE: loop exit
PB: predicated region body
PF: predicated region fallthrough
CT: control target
= control target key end

     0   :  { %vm40_vm0 = vcmask 261120   ;;  %v2769_v16 = vmov 32.0   ;;  %s2771_s27 = smov 64   ;;  %s2772_s28 = smov 88   ;;  %s3862_s0 = inlined_call_operand.vmem [shape: f32[8,8,32], index: 0, kind: input, shape index: {}]   ;;  %s3863_s1 = inlined_call_operand.vmem [shape: f32[1,32], index: 1, kind: input, shape index: {}]   ;;  %s3864_s2 = inlined_call_operand.vmem [shape: f32[1,32], index: 2, kind: input, shape index: {}]   ;;  %s3865_s3 = inlined_call_operand.vmem [shape: bf16[32,96], index: 3, kind: input, shape index: {}]   ;;  %s3866_s5 = inlined_call_operand.vmem [shape: f32[1,32], index: 5, kind: input, shape index: {}]   ;;  %s3867_s4 = inlined_call_operand.vmem [shape: bf16[32,32], index: 4, kind: input, shape index: {}]   ;;  %s3868_s7 = inlined_call_operand.vmem [shape: f32[1,32], index: 7, kind: input, shape index: {}]   ;;  %s3869_s6 = inlined_call_operand.vmem [shape: bf16[32,32], index: 6, kind: input, shape index: {}]   ;;  %s3870_s8 = inlined_call_operand.vmem [shape: f32[8,8,32], index: 8, kind: output, shape index: {}]  }
   0x1   :  { %v34_v0 = vld [vmem:[%s3862_s0 + $0x20] sm:$0xff]  ;;  %v32_v1 = vld [vmem:[%s3862_s0 + $0x10] sm:$0xff]  ;;  %v35_v6 = vld [vmem:[%s3862_s0 + $0x28] sm:$0xff]  ;;  %2615 = vrcp.f32 %v2769_v16  ;;  %s2773_s29 = smov 120   ;;  %s2774_s30 = smov 56  }
   0x2   :  { %v30_v2 = vld [vmem:[%s3862_s0] sm:$0xff]  ;;  %v53_v3 = vsel %vm40_vm0, %v34_v0, 0.0  ;;  %v47_v4 = vsel %vm40_vm0, %v32_v1, 0.0  ;;  %v33_v7 = vld [vmem:[%s3862_s0 + $0x18] sm:$0xff]  ;;  %v31_v8 = vld [vmem:[%s3862_s0 + $0x8] sm:$0xff]  ;;  %v56_v9 = vsel %vm40_vm0, %v35_v6, 0.0 }
   0x3   :  { %v41_v5 = vsel %vm40_vm0, %v30_v2, 0.0  ;;  %54 = vadd.xlane.f32.xlu1 %v53_v3  ;;  %48 = vadd.xlane.f32.xlu2 %v47_v4  ;;  %v50_v10 = vsel %vm40_vm0, %v33_v7, 0.0  ;;  %v44_v11 = vsel %vm40_vm0, %v31_v8, 0.0  ;;  %v37_v12 = vld [vmem:[%s3862_s0 + $0x38] sm:$0xff]  ;;  %v36_v13 = vld [vmem:[%s3862_s0 + $0x30] sm:$0xff]  ;;  %s2775_s9 = smov 80  }
   0x4   :  { %42 = vadd.xlane.f32.xlu0 %v41_v5  ;;  %v62_v14 = vsel %vm40_vm0, %v37_v12, 0.0  ;;  %v59_v15 = vsel %vm40_vm0, %v36_v13, 0.0  ;;  %s2776_s10 = smov 112   ;;  %s2777_s11 = smov 48  }
   0x5   :  { %s2778_s12 = smov 72   ;;  %s2779_s13 = smov 104  }
   0x6   :  { %s2780_s14 = smov 40   ;;  %s2781_s15 = smov 16  }
   0x7   :  { %v2616_v17 = vpop.eup %2615  ;;  %s2782_s16 = smov 8   ;;  %s2783_s17 = smov 24  }
   0x8   :  { %v66_v18 = vmul.f32 32.0, %v2616_v17  ;;  %vm70_vm1 = vweird.f32 %v2616_v17 }
   0xa   :  { %v67_v19 = vsub.f32 1.0, %v66_v18 }
   0xb   :  { %57 = vadd.xlane.f32.xlu1 %v56_v9  ;;  %51 = vadd.xlane.f32.xlu2 %v50_v10 }
   0xc   :  { %45 = vadd.xlane.f32.xlu0 %v44_v11  ;;  %v68_v20 = vmul.f32 %v2616_v17, %v67_v19 }
   0xe   :  { %v69_v21 = vadd.f32 %v2616_v17, %v68_v20 }
  0x10   :  { %v2861_v22 = vsel %vm70_vm1, %v2616_v17, %v69_v21 }
  0x13   :  { %63 = vadd.xlane.f32.xlu1 %v62_v14 }
  0x14   :  { %60 = vadd.xlane.f32.xlu0 %v59_v15 }
  0x76   :  { %v55_v23 = vpop.xlane.xlu1 %54  ;;  %v49_v24 = vpop.xlane.xlu2 %48 }
  0x77   :  { %v76_v25 = vmul.f32 %v2861_v22, %v55_v23  ;;  %v43_v26 = vpop.xlane.xlu0 %42  ;;  %v74_v39 = vmul.f32 %v2861_v22, %v49_v24 }
  0x78   :  { %v72_v27 = vmul.f32 %v2861_v22, %v43_v26 }
  0x79   :  { %v2865_v28 = vsub.f32 %v34_v0, %v76_v25  ;;  %v2889_v46 = vsub.f32 %v32_v1, %v74_v39 }
  0x7a   :  { %v2867_v29 = vsub.f32 %v30_v2, %v72_v27  ;;  %v2527_v2 = vld [vmem:[%s3865_s3 + $0x8] sm:$0xff] }
  0x7b   :  { %v92_v30 = vmul.f32 %v2865_v28, %v2865_v28  ;;  %v90_v55 = vmul.f32 %v2889_v46, %v2889_v46  ;;  %284 = vmatpush.bf16.msra.mxu0 %v2527_v2  ;;  %2532 = vmatpush.bf16.msra.mxu2 %v2527_v2 }
  0x7c   :  { %v88_v31 = vmul.f32 %v2867_v29, %v2867_v29 }
  0x7d   :  { %v108_v32 = vsel %vm40_vm0, %v92_v30, 0.0  ;;  %v102_v58 = vsel %vm40_vm0, %v90_v55, 0.0 }
  0x7e   :  { %109 = vadd.xlane.f32.xlu1 %v108_v32  ;;  %v58_v33 = vpop.xlane.xlu1 %57  ;;  %v52_v34 = vpop.xlane.xlu2 %51  ;;  %v96_v35 = vsel %vm40_vm0, %v88_v31, 0.0 }
  0x7f   :  { %v77_v36 = vmul.f32 %v2861_v22, %v58_v33  ;;  %v75_v37 = vmul.f32 %v2861_v22, %v52_v34  ;;  %97 = vadd.xlane.f32.xlu2 %v96_v35  ;;  %v46_v38 = vpop.xlane.xlu0 %45 }
  0x80   :  { %v73_v40 = vmul.f32 %v2861_v22, %v46_v38 }
  0x81   :  { %v2879_v41 = vsub.f32 %v35_v6, %v77_v36  ;;  %v2881_v42 = vsub.f32 %v33_v7, %v75_v37  ;;  %v2526_v6 = vld [vmem:[%s3865_s3] sm:$0xff] }
  0x82   :  { %v2883_v43 = vsub.f32 %v31_v8, %v73_v40  ;;  %285 = vmatpush.bf16.msra.mxu0 %v2526_v6  ;;  %2533 = vmatpush.bf16.msra.mxu2 %v2526_v6 }
  0x83   :  { %v91_v44 = vmul.f32 %v2881_v42, %v2881_v42  ;;  %v93_v45 = vmul.f32 %v2879_v41, %v2879_v41 }
  0x84   :  { %v89_v47 = vmul.f32 %v2883_v43, %v2883_v43 }
  0x85   :  { %v105_v48 = vsel %vm40_vm0, %v91_v44, 0.0  ;;  %v111_v49 = vsel %vm40_vm0, %v93_v45, 0.0 }
  0x86   :  { %106 = vadd.xlane.f32.xlu1 %v105_v48  ;;  %v99_v50 = vsel %vm40_vm0, %v89_v47, 0.0  ;;  %v64_v51 = vpop.xlane.xlu1 %63 }
  0x87   :  { %112 = vadd.xlane.f32.xlu2 %v111_v49  ;;  %100 = vadd.xlane.f32.xlu0 %v99_v50  ;;  %v61_v52 = vpop.xlane.xlu0 %60  ;;  %v79_v54 = vmul.f32 %v2861_v22, %v64_v51 }
  0x88   :  { %v78_v53 = vmul.f32 %v2861_v22, %v61_v52 }
  0x89   :  { %v2902_v57 = vsub.f32 %v37_v12, %v79_v54 }
  0x8a   :  { %v2900_v56 = vsub.f32 %v36_v13, %v78_v53 }
  0x8b   :  { %v95_v61 = vmul.f32 %v2902_v57, %v2902_v57 }
  0x8c   :  { %v94_v59 = vmul.f32 %v2900_v56, %v2900_v56 }
  0x8d   :  { %v117_v62 = vsel %vm40_vm0, %v95_v61, 0.0 }
  0x8e   :  { %v114_v60 = vsel %vm40_vm0, %v94_v59, 0.0 }
  0x8f   :  { %103 = vadd.xlane.f32.xlu0 %v102_v58  ;;  %115 = vadd.xlane.f32.xlu2 %v114_v60 }
  0x97   :  { %118 = vadd.xlane.f32.xlu0 %v117_v62 }
  0xf1   :  { %v110_v63 = vpop.xlane.xlu1 %109 }
  0xf2   :  { %v124_v0 = vmul.f32 %v110_v63, %v2861_v22  ;;  %v98_v1 = vpop.xlane.xlu2 %97 }
  0xf3   :  { %v120_v3 = vmul.f32 %v98_v1, %v2861_v22  ;;  %v2958_v1 = vld [vmem:[%s3863_s1] ss:$0 sm:$0xff] }
  0xf4   :  { %v132_v4 = vadd.f32 1e-05, %v124_v0 }
  0xf5   :  { %v128_v5 = vadd.f32 1e-05, %v120_v3 }
  0xf6   :  { %2617 = vrsqrt.f32 %v132_v4  ;;  %vm182_vm2 = vweird.f32 %v132_v4 }
  0xf7   :  { %2619 = vrsqrt.f32 %v128_v5  ;;  %vm142_vm6 = vweird.f32 %v128_v5 }
  0xf9   :  { %v107_v7 = vpop.xlane.xlu1 %106 }
  0xfa   :  { %v123_v8 = vmul.f32 %v107_v7, %v2861_v22  ;;  %v113_v9 = vpop.xlane.xlu2 %112  ;;  %v101_v10 = vpop.xlane.xlu0 %100 }
  0xfb   :  { %v125_v11 = vmul.f32 %v113_v9, %v2861_v22  ;;  %v121_v12 = vmul.f32 %v101_v10, %v2861_v22 }
  0xfc   :  { %v2618_v13 = vpop.eup %2617  ;;  %v2922_v14 = vadd.f32 1e-05, %v123_v8 }
  0xfd   :  { %v2620_v15 = vpop.eup %2619  ;;  %v177_v16 = vmul.f32 %v2618_v13, %v132_v4  ;;  %v133_v17 = vadd.f32 1e-05, %v125_v11  ;;  %v129_v18 = vadd.f32 1e-05, %v121_v12  ;;  %vm183_vm3 = vweird.f32 %v2618_v13 }
  0xfe   :  { %v137_v19 = vmul.f32 %v2620_v15, %v128_v5  ;;  %2621 = vrsqrt.f32 %v2922_v14  ;;  %vm2935_vm4 = vmor %vm182_vm2, %vm183_vm3  ;;  %vm143_vm5 = vweird.f32 %v2620_v15  ;;  %vm172_vm14 = vweird.f32 %v2922_v14 }
  0xff   :  { %v178_v20 = vmul.f32 %v2618_v13, %v177_v16  ;;  %2623 = vrsqrt.f32 %v133_v17  ;;  %vm2944_vm7 = vmor %vm142_vm6, %vm143_vm5  ;;  %vm192_vm8 = vweird.f32 %v133_v17  ;;  %vm152_vm12 = vweird.f32 %v129_v18 }
 0x100   :  { %v138_v21 = vmul.f32 %v2620_v15, %v137_v19  ;;  %2625 = vrsqrt.f32 %v129_v18 }
 0x101   :  { %v179_v23 = vmul.f32 0.5, %v178_v20 }
 0x102   :  { %v139_v24 = vmul.f32 0.5, %v138_v21  ;;  %v116_v25 = vpop.xlane.xlu2 %115  ;;  %v104_v26 = vpop.xlane.xlu0 %103 }
 0x103   :  { %v180_v27 = vsub.f32 1.5, %v179_v23  ;;  %v126_v30 = vmul.f32 %v116_v25, %v2861_v22  ;;  %v122_v31 = vmul.f32 %v104_v26, %v2861_v22 }
 0x104   :  { %v2927_v32 = vpop.eup %2621  ;;  %v140_v33 = vsub.f32 1.5, %v139_v24 }
 0x105   :  { %v2624_v34 = vpop.eup %2623  ;;  %v167_v35 = vmul.f32 %v2927_v32, %v2922_v14  ;;  %v2931_v36 = vadd.f32 1e-05, %v126_v30  ;;  %v181_v38 = vmul.f32 %v2618_v13, %v180_v27  ;;  %v2933_v40 = vadd.f32 1e-05, %v122_v31 }
 0x106   :  { %v2626_v37 = vpop.eup %2625  ;;  %v187_v39 = vmul.f32 %v2624_v34, %v133_v17  ;;  %v141_v45 = vmul.f32 %v2620_v15, %v140_v33  ;;  %vm193_vm9 = vweird.f32 %v2624_v34  ;;  %vm173_vm15 = vweird.f32 %v2927_v32 }
 0x107   :  { %v147_v47 = vmul.f32 %v2626_v37, %v129_v18  ;;  %v168_v48 = vmul.f32 %v2927_v32, %v167_v35  ;;  %2627 = vrsqrt.f32 %v2931_v36  ;;  %v185_v51 = vsel %vm2935_vm4, %v2618_v13, %v181_v38  ;;  %vm2951_vm10 = vmor %vm192_vm8, %vm193_vm9 }
 0x108   :  { %v188_v49 = vmul.f32 %v2624_v34, %v187_v39  ;;  %2629 = vrsqrt.f32 %v2933_v40  ;;  %v145_v55 = vsel %vm2944_vm7, %v2620_v15, %v141_v45  ;;  %vm153_vm11 = vweird.f32 %v2626_v37  ;;  %vm2983_vm4 = vmor %vm172_vm14, %vm173_vm15 }
 0x109   :  { %v148_v50 = vmul.f32 %v2626_v37, %v147_v47  ;;  %v169_v60 = vmul.f32 0.5, %v168_v48  ;;  %v220_v2 = vmul.f32 %v185_v51, %v2865_v28  ;;  %vm154_vm13 = vmor %vm152_vm12, %vm153_vm11  ;;  %v2612_v28 = vld [vmem:[%s3864_s2] ss:$0 sm:$0xff]  ;;  %vm202_vm1 = vweird.f32 %v2931_v36  ;;  %s2770_s2 = smov 96  }
 0x10a   :  { %v189_v53 = vmul.f32 0.5, %v188_v49  ;;  %v119_v54 = vpop.xlane.xlu0 %118  ;;  %vm162_vm6 = vweird.f32 %v2933_v40  ;;  %vm323_vm11 = vcmask 64512   ;;  %vm622_vm12 = vcmask 1043456  }
 0x10b   :  { %v149_v58 = vmul.f32 0.5, %v148_v50  ;;  %v127_v59 = vmul.f32 %v119_v54, %v2861_v22  ;;  %v216_v22 = vmul.f32 %v145_v55, %v2867_v29  ;;  %v170_v8 = vsub.f32 1.5, %v169_v60 }
 0x10c   :  { %v190_v61 = vsub.f32 1.5, %v189_v53  ;;  %v231_v13 = vmul.f32 %v2958_v1, %v220_v2  ;;  %vm2258_vm14 = vcmask 130048   ;;  %vm2267_vm15 = vcmask 195584  }
 0x10d   :  { %v150_v63 = vsub.f32 1.5, %v149_v58  ;;  %v135_v0 = vadd.f32 1e-05, %v127_v59  ;;  %v2628_v3 = vpop.eup %2627  ;;  %v227_v17 = vmul.f32 %v2958_v1, %v216_v22  ;;  %v171_v20 = vmul.f32 %v2927_v32, %v170_v8 }
 0x10e   :  { %v191_v4 = vmul.f32 %v2624_v34, %v190_v61  ;;  %v2630_v5 = vpop.eup %2629  ;;  %v197_v7 = vmul.f32 %v2628_v3, %v2931_v36  ;;  %vm203_vm2 = vweird.f32 %v2628_v3  ;;  %v242_v24 = vadd.f32 %v2612_v28, %v231_v13 }
 0x10f   :  { %v151_v6 = vmul.f32 %v2626_v37, %v150_v63  ;;  %v157_v10 = vmul.f32 %v2630_v5, %v2933_v40  ;;  %2631 = vrsqrt.f32 %v135_v0  ;;  %vm163_vm3 = vweird.f32 %v2630_v5  ;;  %vm2989_vm5 = vmor %vm202_vm1, %vm203_vm2 }
 0x110   :  { %v195_v9 = vsel %vm2951_vm10, %v2624_v34, %v191_v4  ;;  %v198_v12 = vmul.f32 %v2628_v3, %v197_v7  ;;  %v238_v27 = vadd.f32 %v2612_v28, %v227_v17  ;;  %vm164_vm7 = vmor %vm162_vm6, %vm163_vm3  ;;  %v175_v14 = vsel %vm2983_vm4, %v2927_v32, %v171_v20 }
 0x111   :  { %v155_v11 = vsel %vm154_vm13, %v2626_v37, %v151_v6  ;;  %v221_v29 = vmul.f32 %v195_v9, %v2879_v41  ;;  %v158_v15 = vmul.f32 %v2630_v5, %v157_v10  ;;  %vm212_vm8 = vweird.f32 %v135_v0 }
 0x112   :  { %v217_v16 = vmul.f32 %v155_v11, %v2883_v43  ;;  %v199_v18 = vmul.f32 0.5, %v198_v12  ;;  %v219_v49 = vmul.f32 %v175_v14, %v2881_v42 }
 0x113   :  { %v232_v19 = vmul.f32 %v2958_v1, %v221_v29  ;;  %v159_v21 = vmul.f32 0.5, %v158_v15 }
 0x114   :  { %v228_v41 = vmul.f32 %v2958_v1, %v217_v16  ;;  %v200_v23 = vsub.f32 1.5, %v199_v18  ;;  %v230_v53 = vmul.f32 %v2958_v1, %v219_v49 }
 0x115   :  { %v243_v43 = vadd.f32 %v2612_v28, %v232_v19  ;;  %v2632_v25 = vpop.eup %2631  ;;  %v160_v26 = vsub.f32 1.5, %v159_v21 }
 0x116   :  { %v239_v30 = vadd.f32 %v2612_v28, %v228_v41  ;;  %v201_v33 = vmul.f32 %v2628_v3, %v200_v23  ;;  %v207_v34 = vmul.f32 %v2632_v25, %v135_v0  ;;  %vm213_vm9 = vweird.f32 %v2632_v25 }
 0x117   :  { %v248_v35 = vpack.c.bf16 %v243_v43, %v242_v24  ;;  %v161_v38 = vmul.f32 %v2630_v5, %v160_v26  ;;  %vm214_vm10 = vmor %vm212_vm8, %vm213_vm9 }
 0x118   :  { %v246_v39 = vpack.c.bf16 %v239_v30, %v238_v27  ;;  %v208_v44 = vmul.f32 %v2632_v25, %v207_v34  ;;  %v205_v36 = vsel %vm2989_vm5, %v2628_v3, %v201_v33 }
 0x119   :  { %2436 = vmatmul.msk.bf16.vlgmr.msra.gmra.mxu2 %vm40_vm0, %v248_v35  ;;  %v165_v45 = vsel %vm164_vm7, %v2630_v5, %v161_v38  ;;  %v222_v50 = vmul.f32 %v205_v36, %v2900_v56 }
 0x11a   :  { %2434 = vmatmul.msk.bf16.vlgmr.msra.gmra.mxu0 %vm40_vm0, %v246_v39  ;;  %v209_v47 = vmul.f32 0.5, %v208_v44  ;;  %v218_v40 = vmul.f32 %v165_v45, %v2889_v46  ;;  %v241_v46 = vadd.f32 %v2612_v28, %v230_v53 }
 0x11b   :  { %v233_v55 = vmul.f32 %v2958_v1, %v222_v50 }
 0x11c   :  { %v210_v48 = vsub.f32 1.5, %v209_v47  ;;  %v229_v32 = vmul.f32 %v2958_v1, %v218_v40 }
 0x11d   :  { %v244_v60 = vadd.f32 %v2612_v28, %v233_v55 }
 0x11e   :  { %v211_v51 = vmul.f32 %v2632_v25, %v210_v48  ;;  %v240_v58 = vadd.f32 %v2612_v28, %v229_v32 }
 0x120   :  { %v215_v52 = vsel %vm214_vm10, %v2632_v25, %v211_v51  ;;  %v247_v62 = vpack.c.bf16 %v241_v46, %v240_v58 }
 0x121   :  { %v223_v54 = vmul.f32 %v215_v52, %v2902_v57 }
 0x123   :  { %v234_v59 = vmul.f32 %v2958_v1, %v223_v54 }
 0x125   :  { %v245_v61 = vadd.f32 %v2612_v28, %v234_v59 }
 0x127   :  { %v249_v42 = vpack.c.bf16 %v245_v61, %v244_v60 }
 0x129   :  { %2437 = vmatmul.msk.bf16.gmra.mxu2 %vm40_vm0, %v249_v42 }
 0x12a   :  { %2435 = vmatmul.msk.bf16.gmra.mxu0 %vm40_vm0, %v247_v62 }
 0x197   :  { %v287_v56 = vpop.f32.mrf.mxu0 }
 0x198   :  { %v310_v63 = vpack.c.bf16 %v287_v56, %v287_v56 }
 0x19a   :  { %v319_v0 = vunpack.c.l.b16 %v310_v63 }
 0x19c   :  { %v3011_v2 = vpack.c.b16 %v319_v0, %v319_v0  ;;  %v297_v57 = vpop.f32.mrf.mxu2 }
 0x19d   :  { %v3013_v3 = vpack.c.bf16 %v297_v57, %v297_v57 }
 0x19e   :  { %321 = vrot.lane.b32.xlu2 %v3011_v2, %s2770_s2 }
 0x19f   :  { %v289_v1 = vpop.f32.mrf.mxu0  ;;  %v416_v4 = vunpack.c.l.b16 %v3013_v3 }
 0x1a0   :  { %v311_v22 = vpack.c.bf16 %v289_v1, %v289_v1 }
 0x1a1   :  { %v3018_v6 = vpack.c.b16 %v416_v4, %v416_v4 }
 0x1a2   :  { %v344_v5 = vunpack.c.l.b16 %v311_v22 }
 0x1a4   :  { %v3020_v7 = vpack.c.b16 %v344_v5, %v344_v5  ;;  %v299_v8 = vpop.f32.mrf.mxu2 }
 0x1a5   :  { %v3035_v19 = vpack.c.bf16 %v299_v8, %v299_v8 }
 0x1a6   :  { %418 = vrot.lane.b32.xlu2 %v3018_v6, %s2770_s2  ;;  %346 = vrot.lane.b32.xlu1 %v3020_v7, %s2770_s2 }
 0x1a7   :  { %v292_v9 = vpop.f32.mrf.mxu0  ;;  %v440_v23 = vunpack.c.l.b16 %v3035_v19 }
 0x1a8   :  { %v312_v10 = vpack.c.bf16 %v292_v9, %v292_v9 }
 0x1a9   :  { %v3049_v25 = vpack.c.b16 %v440_v23, %v440_v23 }
 0x1aa   :  { %v368_v11 = vunpack.c.l.b16 %v312_v10 }
 0x1ac   :  { %v3026_v12 = vpack.c.b16 %v368_v11, %v368_v11  ;;  %v302_v28 = vpop.f32.mrf.mxu2 }
 0x1ad   :  { %v3028_v29 = vpack.c.bf16 %v302_v28, %v302_v28 }
 0x1ae   :  { %370 = vrot.lane.b32.xlu0 %v3026_v12, %s2770_s2 }
 0x1af   :  { %v294_v13 = vpop.f32.mrf.mxu0  ;;  %v464_v15 = vunpack.c.l.b16 %v3028_v29 }
 0x1b0   :  { %v313_v16 = vpack.c.bf16 %v294_v13, %v294_v13 }
 0x1b1   :  { %v3033_v17 = vpack.c.b16 %v464_v15, %v464_v15 }
 0x1b2   :  { %v392_v18 = vunpack.c.l.b16 %v313_v16 }
 0x1b3   :  { %466 = vrot.lane.b32.xlu2 %v3033_v17, %s2770_s2 }
 0x1b4   :  { %v3037_v20 = vpack.c.b16 %v392_v18, %v392_v18  ;;  %v304_v21 = vpop.f32.mrf.mxu2 }
 0x1b5   :  { %v3041_v41 = vpack.c.bf16 %v304_v21, %v304_v21 }
 0x1b6   :  { %394 = vrot.lane.b32.xlu1 %v3037_v20, %s2770_s2 }
 0x1b7   :  { %v488_v24 = vunpack.c.l.b16 %v3041_v41 }
 0x1b9   :  { %v3047_v43 = vpack.c.b16 %v488_v24, %v488_v24 }
 0x1bb   :  { %681 = vrot.lane.b32.xlu2 %v3037_v20, %s2771_s27  ;;  %490 = vrot.lane.b32.xlu0 %v3047_v43, %s2770_s2 }
 0x1be   :  { %442 = vrot.lane.b32.xlu1 %v3049_v25, %s2770_s2 }
 0x1c3   :  { %639 = vrot.lane.b32.xlu2 %v3020_v7, %s2771_s27  ;;  %617 = vrot.lane.b32.xlu0 %v3011_v2, %s2771_s27 }
 0x1c6   :  { %660 = vrot.lane.b32.xlu1 %v3026_v12, %s2771_s27 }
 0x1cb   :  { %723 = vrot.lane.b32.xlu2 %v3049_v25, %s2771_s27  ;;  %744 = vrot.lane.b32.xlu0 %v3033_v17, %s2771_s27 }
 0x1ce   :  { %857 = vrot.lane.b32.xlu1 %v3037_v20, %s2772_s28 }
 0x1d3   :  { %855 = vrot.lane.b32.xlu2 %v3037_v20, %s2773_s29  ;;  %702 = vrot.lane.b32.xlu0 %v3018_v6, %s2771_s27 }
 0x1d6   :  { %811 = vrot.lane.b32.xlu1 %v3020_v7, %s2772_s28 }
 0x1db   :  { %834 = vrot.lane.b32.xlu0 %v3026_v12, %s2772_s28 }
 0x1de   :  { %765 = vrot.lane.b32.xlu1 %v3047_v43, %s2771_s27 }
 0x1e3   :  { %788 = vrot.lane.b32.xlu0 %v3011_v2, %s2772_s28 }
 0x1eb   :  { %832 = vrot.lane.b32.xlu0 %v3026_v12, %s2773_s29 }
 0x1f8   :  { %v322_v26 = vpop.permute.xlu2 %321 }
 0x1f9   :  { %v328_v27 = vsel %vm323_vm11, %v322_v26, 0 }
 0x1fa   :  { %337 = vmatpush.bf16.xpose.msra.mxu1 %v328_v27 }
 0x200   :  { %v419_v30 = vpop.permute.xlu2 %418 }
 0x201   :  { %2438 = vmatmul.msk.bf16.vlgmr.msra.gmra.mxu1 %vm323_vm11, %v310_v63  ;;  %v424_v34 = vsel %vm323_vm11, %v419_v30, 0  ;;  %v307_v63 = vlaneseq }
 0x203   :  { %v3105_v0 = vand.u32 127, %v307_v63 }
 0x205   :  { %vm309_vm13 = vcmp.lt.s32.totalorder %v3105_v0, 2 }
 0x20d   :  { %v467_v35 = vpop.permute.xlu2 %466 }
 0x20e   :  { %v472_v45 = vsel %vm323_vm11, %v467_v35, 0 }
 0x215   :  { %v682_v39 = vpop.permute.xlu2 %681 }
 0x216   :  { %v687_v53 = vsel %vm622_vm12, %v682_v39, 0 }
 0x218   :  { %v347_v31 = vpop.permute.xlu1 %346 }
 0x219   :  { %v352_v33 = vsel %vm323_vm11, %v347_v31, 0 }
 0x21a   :  { %361 = vmatpush.bf16.xpose.msrb.mxu2 %v352_v33 }
 0x21d   :  { %v640_v36 = vpop.permute.xlu2 %639 }
 0x21e   :  { %v645_v49 = vsel %vm622_vm12, %v640_v36, 0 }
 0x220   :  { %v371_v37 = vpop.permute.xlu0 %370 }
 0x221   :  { %2439 = vmatmul.msk.bf16.vlgmr.msrb.gmra.mxu2 %vm323_vm11, %v311_v22  ;;  %v376_v38 = vsel %vm323_vm11, %v371_v37, 0 }
 0x222   :  { %433 = vmatpush.bf16.xpose.msra.mxu2 %v424_v34  ;;  %385 = vmatpush.bf16.xpose.msra.mxu3 %v376_v38 }
 0x225   :  { %v724_v55 = vpop.permute.xlu2 %723 }
 0x226   :  { %v729_v46 = vsel %vm622_vm12, %v724_v55, 0 }
 0x228   :  { %v395_v44 = vpop.permute.xlu1 %394 }
 0x229   :  { %2440 = vmatmul.msk.bf16.vlgmr.msra.gmra.mxu3 %vm323_vm11, %v312_v10  ;;  %v400_v14 = vsel %vm323_vm11, %v395_v44, 0 }
 0x22a   :  { %409 = vmatpush.bf16.xpose.msrb.mxu1 %v400_v14 }
 0x22d   :  { %v491_v47 = vpop.permute.xlu0 %490 }
 0x22e   :  { %v496_v40 = vsel %vm323_vm11, %v491_v47, 0 }
 0x22f   :  { %505 = vmatpush.bf16.xpose.msrb.mxu2 %v496_v40 }
 0x230   :  { %v443_v48 = vpop.permute.xlu1 %442 }
 0x231   :  { %2441 = vmatmul.msk.bf16.vlgmr.msrb.gmra.mxu1 %vm323_vm11, %v313_v16  ;;  %2442 = vmatmul.msk.bf16.vlgmr.msra.gmra.mxu2 %vm323_vm11, %v3013_v3  ;;  %v448_v50 = vsel %vm323_vm11, %v443_v48, 0 }
 0x232   :  { %481 = vmatpush.bf16.xpose.msra.mxu1 %v472_v45  ;;  %457 = vmatpush.bf16.xpose.msrb.mxu3 %v448_v50 }
 0x235   :  { %v618_v51 = vpop.permute.xlu0 %617 }
 0x236   :  { %v624_v32 = vsel %vm622_vm12, %v618_v51, 0  ;;  %v3150_v51 = vpop.permute.xlu2 %855 }
 0x238   :  { %v661_v52 = vpop.permute.xlu1 %660 }
 0x239   :  { %v666_v54 = vsel %vm622_vm12, %v661_v52, 0  ;;  %2443 = vmatmul.msk.bf16.vlgmr.msrb.gmra.mxu3 %vm323_vm11, %v3035_v19 }
 0x23a   :  { %654 = vmatpush.bf16.msrb.mxu1 %v645_v49  ;;  %633 = vmatpush.bf16.msra.mxu3 %v624_v32 }
 0x23b   :  { %675 = vmatpush.bf16.msra.mxu2 %v666_v54 }
 0x23d   :  { %v745_v58 = vpop.permute.xlu0 %744 }
 0x23e   :  { %696 = vmatpush.bf16.msrb.mxu3 %v687_v53  ;;  %v750_v59 = vsel %vm622_vm12, %v745_v58, 0 }
 0x240   :  { %v3146_v49 = vpop.permute.xlu1 %857 }
 0x241   :  { %2444 = vmatmul.msk.bf16.vlgmr.msra.gmra.mxu1 %vm323_vm11, %v3028_v29  ;;  %2445 = vmatmul.msk.bf16.vlgmr.msrb.gmra.mxu2 %vm323_vm11, %v3041_v41 }
 0x242   :  { %738 = vmatpush.bf16.msra.mxu1 %v729_v46  ;;  %759 = vmatpush.bf16.msrb.mxu2 %v750_v59 }
 0x245   :  { %v703_v60 = vpop.permute.xlu0 %702 }
 0x246   :  { %v708_v61 = vsel %vm622_vm12, %v703_v60, 0 }
 0x247   :  { %717 = vmatpush.bf16.msrb.mxu0 %v708_v61 }
 0x248   :  { %v3148_v50 = vpop.permute.xlu1 %811 }
 0x24d   :  { %v3102_v62 = vpop.permute.xlu0 %834 }
 0x250   :  { %v766_v53 = vpop.permute.xlu1 %765 }
 0x255   :  { %v789_v42 = vpop.permute.xlu0 %788 }
 0x256   :  { %v794_v56 = vsel %vm323_vm11, %v789_v42, 0 }
 0x257   :  { %803 = vmatpush.bf16.xpose.msra.mxu0 %v794_v56 }
 0x25d   :  { %v3140_v14 = vpop.permute.xlu0 %832 }
 0x27e   :  { %v339_v57 = vpop.f32.mrf.mxu1 }
 0x27f   :  { %v513_v3 = vsel %vm309_vm13, %v339_v57, -1e+30 }
 0x280   :  { %v521_v1 = vsel %vm323_vm11, %v513_v3, -inf }
 0x281   :  { %522 = vmax.xlane.f32.xlu0 %v521_v1 }
 0x286   :  { %v341_v4 = vpop.f32.mrf.mxu1 }
 0x2a4   :  { %v363_v22 = vpop.f32.mrf.mxu2 }
 0x2a5   :  { %v514_v5 = vsel %vm309_vm13, %v363_v22, -1e+30 }
 0x2a6   :  { %v524_v8 = vsel %vm323_vm11, %v514_v5, -inf }
 0x2a7   :  { %525 = vmax.xlane.f32.xlu0 %v524_v8 }
 0x2ac   :  { %v365_v9 = vpop.f32.mrf.mxu2  ;;  %v387_v10 = vpop.f32.mrf.mxu3 }
 0x2ad   :  { %v515_v11 = vsel %vm309_vm13, %v387_v10, -1e+30 }
 0x2ae   :  { %v411_v28 = vpop.f32.mrf.mxu1  ;;  %v527_v29 = vsel %vm323_vm11, %v515_v11, -inf }
 0x2af   :  { %v516_v13 = vsel %vm309_vm13, %v411_v28, -1e+30  ;;  %528 = vmax.xlane.f32.xlu2 %v527_v29 }
 0x2b0   :  { %v530_v15 = vsel %vm323_vm11, %v516_v13, -inf }
 0x2b1   :  { %531 = vmax.xlane.f32.xlu1 %v530_v15 }
 0x2b4   :  { %v389_v16 = vpop.f32.mrf.mxu3  ;;  %v435_v18 = vpop.f32.mrf.mxu2 }
 0x2b5   :  { %v3122_v19 = vsel %vm309_vm13, %v435_v18, -1e+30 }
 0x2b6   :  { %v413_v21 = vpop.f32.mrf.mxu1  ;;  %v533_v41 = vsel %vm323_vm11, %v3122_v19, -inf }
 0x2b7   :  { %534 = vmax.xlane.f32.xlu0 %v533_v41 }
 0x2bc   :  { %v437_v23 = vpop.f32.mrf.mxu2  ;;  %v459_v24 = vpop.f32.mrf.mxu3 }
 0x2bd   :  { %v518_v26 = vsel %vm309_vm13, %v459_v24, -1e+30 }
 0x2be   :  { %v483_v27 = vpop.f32.mrf.mxu1  ;;  %v536_v30 = vsel %vm323_vm11, %v518_v26, -inf }
 0x2bf   :  { %537 = vmax.xlane.f32.xlu2 %v536_v30  ;;  %v519_v31 = vsel %vm309_vm13, %v483_v27, -1e+30 }
 0x2c0   :  { %v539_v38 = vsel %vm323_vm11, %v519_v31, -inf }
 0x2c4   :  { %v461_v33 = vpop.f32.mrf.mxu3  ;;  %v507_v34 = vpop.f32.mrf.mxu2 }
 0x2c5   :  { %v3133_v35 = vsel %vm309_vm13, %v507_v34, -1e+30 }
 0x2c6   :  { %v485_v37 = vpop.f32.mrf.mxu1  ;;  %v542_v39 = vsel %vm323_vm11, %v3133_v35, -inf }
 0x2c7   :  { %540 = vmax.xlane.f32.xlu2 %v539_v38  ;;  %543 = vmax.xlane.f32.xlu1 %v542_v39 }
 0x2cb   :  { %809 = vrot.lane.b32.xlu0 %v3020_v7, %s2773_s29 }
 0x2cc   :  { %v509_v44 = vpop.f32.mrf.mxu2 }
 0x2f4   :  { %v523_v45 = vpop.xlane.xlu0 %522 }
 0x2f5   :  { %v545_v36 = vsub.f32 %v513_v3, %v523_v45 }
 0x2f7   :  { %v553_v47 = vmul.f32 1.442695, %v545_v36 }
 0x2f9   :  { %2633 = vpow2.f32 %v553_v47  ;;  %v817_v47 = vsel %vm323_vm11, %v3148_v50, 0  ;;  %v840_v50 = vsel %vm323_vm11, %v3102_v62, 0 }
 0x2ff   :  { %v3142_v40 = vpop.eup %2633 }
 0x300   :  { %v569_v48 = vsel %vm323_vm11, %v3142_v40, 0.0 }
 0x301   :  { %570 = vadd.xlane.f32.xlu1 %v569_v48 }
 0x31a   :  { %v526_v32 = vpop.xlane.xlu0 %525 }
 0x31b   :  { %v546_v52 = vsub.f32 %v514_v5, %v526_v32 }
 0x31d   :  { %v555_v54 = vmul.f32 1.442695, %v546_v52 }
 0x31f   :  { %2635 = vpow2.f32 %v555_v54 }
 0x322   :  { %v529_v55 = vpop.xlane.xlu2 %528 }
 0x323   :  { %v547_v58 = vsub.f32 %v515_v11, %v529_v55 }
 0x324   :  { %v532_v59 = vpop.xlane.xlu1 %531 }
 0x325   :  { %v3152_v46 = vpop.eup %2635  ;;  %v557_v60 = vmul.f32 1.442695, %v547_v58  ;;  %v548_v61 = vsub.f32 %v516_v13, %v532_v59  ;;  %v863_v58 = vsel %vm323_vm11, %v3146_v49, 0 }
 0x326   :  { %v572_v42 = vsel %vm323_vm11, %v3152_v46, 0.0 }
 0x327   :  { %2637 = vpow2.f32 %v557_v60  ;;  %v559_v56 = vmul.f32 1.442695, %v548_v61  ;;  %573 = vadd.xlane.f32.xlu2 %v572_v42 }
 0x329   :  { %2639 = vpow2.f32 %v559_v56 }
 0x32a   :  { %v535_v15 = vpop.xlane.xlu0 %534 }
 0x32b   :  { %v549_v16 = vsub.f32 %v3122_v19, %v535_v15 }
 0x32d   :  { %v3156_v63 = vpop.eup %2637  ;;  %v561_v21 = vmul.f32 1.442695, %v549_v16 }
 0x32e   :  { %v575_v57 = vsel %vm323_vm11, %v3156_v63, 0.0 }
 0x32f   :  { %v3160_v3 = vpop.eup %2639  ;;  %576 = vadd.xlane.f32.xlu2 %v575_v57 }
 0x330   :  { %v578_v1 = vsel %vm323_vm11, %v3160_v3, 0.0 }
 0x331   :  { %579 = vadd.xlane.f32.xlu1 %v578_v1 }
 0x332   :  { %v538_v4 = vpop.xlane.xlu2 %537 }
 0x333   :  { %v550_v22 = vsub.f32 %v518_v26, %v538_v4 }
 0x335   :  { %v563_v5 = vmul.f32 1.442695, %v550_v22 }
 0x337   :  { %2641 = vpow2.f32 %v563_v5 }
 0x33a   :  { %v541_v8 = vpop.xlane.xlu2 %540  ;;  %v544_v18 = vpop.xlane.xlu1 %543 }
 0x33b   :  { %v551_v9 = vsub.f32 %v519_v31, %v541_v8  ;;  %v552_v41 = vsub.f32 %v3133_v35, %v544_v18  ;;  %v771_v35 = vsel %vm622_vm12, %v766_v53, 0 }
 0x33d   :  { %v3164_v10 = vpop.eup %2641  ;;  %v565_v11 = vmul.f32 1.442695, %v551_v9  ;;  %v567_v23 = vmul.f32 1.442695, %v552_v41  ;;  %v810_v48 = vpop.permute.xlu0 %809 }
 0x33e   :  { %v584_v28 = vsel %vm323_vm11, %v3164_v10, 0.0 }
 0x33f   :  { %2643 = vpow2.f32 %v565_v11  ;;  %585 = vadd.xlane.f32.xlu0 %v584_v28 }
 0x340   :  { %2645 = vpow2.f32 %v561_v21 }
 0x341   :  { %2647 = vpow2.f32 %v567_v23 }
 0x345   :  { %v3168_v29 = vpop.eup %2643 }
 0x346   :  { %v587_v13 = vsel %vm323_vm11, %v3168_v29, 0.0  ;;  %v3184_v24 = vpop.eup %2645 }
 0x347   :  { %588 = vadd.xlane.f32.xlu0 %v587_v13  ;;  %926 = vrot.lane.b32.xlu2 %v3033_v17, %s2772_s28  ;;  %v581_v26 = vsel %vm323_vm11, %v3184_v24, 0.0  ;;  %v3188_v19 = vpop.eup %2647 }
 0x348   :  { %v590_v27 = vsel %vm323_vm11, %v3188_v19, 0.0 }
 0x34a   :  { %786 = vrot.lane.b32.xlu1 %v3011_v2, %s2773_s29 }
 0x35b   :  { %880 = vrot.lane.b32.xlu0 %v3018_v6, %s2772_s28 }
 0x363   :  { %947 = vrot.lane.b32.xlu0 %v3047_v43, %s2773_s29 }
 0x36b   :  { %1116 = vrot.lane.b32.xlu0 %v3026_v12, %s2774_s30 }
 0x370   :  { %582 = vadd.xlane.f32.xlu2 %v581_v26 }
 0x373   :  { %1095 = vrot.lane.b32.xlu0 %v3020_v7, %s2774_s30 }
 0x374   :  { %591 = vadd.xlane.f32.xlu1 %v590_v27  ;;  %v571_v30 = vpop.xlane.xlu1 %570 }
 0x375   :  { %2649 = vrcp.f32 %v571_v30 }
 0x37b   :  { %v2650_v31 = vpop.eup %2649  ;;  %1200 = vrot.lane.b32.xlu0 %v3033_v17, %s2774_s30 }
 0x37c   :  { %v601_v33 = vmul.f32 %v2650_v31, %v3142_v40 }
 0x37e   :  { %v609_v34 = vpack.c.bf16 %v601_v33, %v601_v33 }
 0x380   :  { %2446 = vmatmul.msk.bf16.vlgmr.msra.gmra.mxu3 %vm323_vm11, %v609_v34 }
 0x381   :  { %780 = vmatpush.bf16.msra.mxu3 %v771_v35 }
 0x383   :  { %1179 = vrot.lane.b32.xlu0 %v3049_v25, %s2774_s30 }
 0x388   :  { %903 = vrot.lane.b32.xlu2 %v3049_v25, %s2772_s28 }
 0x38b   :  { %1290 = vrot.lane.b32.xlu0 %v3026_v12, %s2775_s9 }
 0x38d   :  { %949 = vrot.lane.b32.xlu1 %v3047_v43, %s2772_s28 }
 0x390   :  { %878 = vrot.lane.b32.xlu2 %v3018_v6, %s2773_s29 }
 0x393   :  { %1267 = vrot.lane.b32.xlu0 %v3020_v7, %s2775_s9 }
 0x395   :  { %924 = vrot.lane.b32.xlu1 %v3033_v17, %s2773_s29 }
 0x398   :  { %1137 = vrot.lane.b32.xlu2 %v3037_v20, %s2774_s30 }
 0x39a   :  { %v574_v37 = vpop.xlane.xlu2 %573 }
 0x39b   :  { %2651 = vrcp.f32 %v574_v37  ;;  %1242 = vrot.lane.b32.xlu0 %v3011_v2, %s2776_s10 }
 0x39d   :  { %901 = vrot.lane.b32.xlu1 %v3049_v25, %s2773_s29 }
 0x3a0   :  { %1158 = vrot.lane.b32.xlu2 %v3018_v6, %s2774_s30 }
 0x3a1   :  { %v2652_v38 = vpop.eup %2651 }
 0x3a2   :  { %v602_v39 = vmul.f32 %v2652_v38, %v3152_v46  ;;  %v577_v44 = vpop.xlane.xlu2 %576 }
 0x3a3   :  { %2653 = vrcp.f32 %v577_v44 }
 0x3a4   :  { %v610_v45 = vpack.c.bf16 %v602_v39, %v602_v39  ;;  %v580_v36 = vpop.xlane.xlu1 %579 }
 0x3a5   :  { %2655 = vrcp.f32 %v580_v36  ;;  %1074 = vrot.lane.b32.xlu1 %v3011_v2, %s2774_s30 }
 0x3a6   :  { %2447 = vmatmul.msk.bf16.vlgmr.msrb.gmra.mxu1 %vm323_vm11, %v610_v45 }
 0x3a7   :  { %826 = vmatpush.bf16.xpose.msrb.mxu1 %v817_v47 }
 0x3a8   :  { %1313 = vrot.lane.b32.xlu2 %v3037_v20, %s2775_s9 }
 0x3a9   :  { %v2654_v40 = vpop.eup %2653 }
 0x3aa   :  { %v603_v32 = vmul.f32 %v2654_v40, %v3156_v63  ;;  %v927_v56 = vpop.permute.xlu2 %926 }
 0x3ab   :  { %v2656_v52 = vpop.eup %2655  ;;  %v932_v57 = vsel %vm323_vm11, %v927_v56, 0 }
 0x3ac   :  { %v611_v53 = vpack.c.bf16 %v603_v32, %v603_v32  ;;  %v604_v54 = vmul.f32 %v2656_v52, %v3160_v3 }
 0x3ad   :  { %1221 = vrot.lane.b32.xlu1 %v3047_v43, %s2774_s30 }
 0x3ae   :  { %v612_v55 = vpack.c.bf16 %v604_v54, %v604_v54  ;;  %2448 = vmatmul.msk.bf16.vlgmr.msra.gmra.mxu2 %vm323_vm11, %v611_v53 }
 0x3af   :  { %849 = vmatpush.bf16.xpose.msra.mxu2 %v840_v50 }
 0x3b0   :  { %2449 = vmatmul.msk.bf16.vlgmr.msrb.gmra.mxu3 %vm323_vm11, %v612_v55  ;;  %1288 = vrot.lane.b32.xlu2 %v3026_v12, %s2776_s10 }
 0x3b1   :  { %872 = vmatpush.bf16.xpose.msrb.mxu3 %v863_v58 }
 0x3b2   :  { %v586_v59 = vpop.xlane.xlu0 %585 }
 0x3b3   :  { %2657 = vrcp.f32 %v586_v59 }
 0x3b5   :  { %1244 = vrot.lane.b32.xlu1 %v3011_v2, %s2775_s9 }
 0x3b9   :  { %v2658_v46 = vpop.eup %2657 }
 0x3ba   :  { %v606_v62 = vmul.f32 %v2658_v46, %v3164_v10  ;;  %v589_v60 = vpop.xlane.xlu0 %588 }
 0x3bb   :  { %2659 = vrcp.f32 %v589_v60 }
 0x3bc   :  { %v614_v61 = vpack.c.bf16 %v606_v62, %v606_v62  ;;  %v787_v5 = vpop.permute.xlu1 %786 }
 0x3bd   :  { %1311 = vrot.lane.b32.xlu1 %v3037_v20, %s2776_s10 }
 0x3be   :  { %2451 = vmatmul.msk.bf16.vlgmr.msra.gmra.mxu1 %vm323_vm11, %v614_v61 }
 0x3c1   :  { %v2660_v49 = vpop.eup %2659 }
 0x3c2   :  { %v607_v42 = vmul.f32 %v2660_v49, %v3168_v29 }
 0x3c4   :  { %v615_v63 = vpack.c.bf16 %v607_v42, %v607_v42 }
 0x3c6   :  { %2452 = vmatmul.msk.bf16.vlgmr.msrb.gmra.mxu2 %vm323_vm11, %v615_v63 }
 0x3c7   :  { %941 = vmatpush.bf16.xpose.msrb.mxu2 %v932_v57 }
 0x3cd   :  { %v881_v3 = vpop.permute.xlu0 %880 }
 0x3ce   :  { %2455 = vmatmul.msk.bf16.vlgmr.msrb.gmra.mxu1 %vm323_vm11, %v810_v48  ;;  %v886_v18 = vsel %vm323_vm11, %v881_v3, 0 }
 0x3d5   :  { %v948_v1 = vpop.permute.xlu0 %947 }
 0x3d6   :  { %2456 = vmatmul.msk.bf16.vlgmr.msra.gmra.mxu2 %vm323_vm11, %v3140_v14 }
 0x3dd   :  { %v1117_v4 = vpop.permute.xlu0 %1116 }
 0x3de   :  { %v1122_v22 = vsel %vm622_vm12, %v1117_v4, 0 }
 0x3df   :  { %1131 = vmatpush.bf16.msra.mxu2 %v1122_v22 }
 0x3e3   :  { %v583_v8 = vpop.xlane.xlu2 %582 }
 0x3e4   :  { %2661 = vrcp.f32 %v583_v8 }
 0x3e5   :  { %v1096_v11 = vpop.permute.xlu0 %1095 }
 0x3e6   :  { %v1101_v15 = vsel %vm622_vm12, %v1096_v11, 0 }
 0x3e7   :  { %v592_v9 = vpop.xlane.xlu1 %591 }
 0x3e8   :  { %2663 = vrcp.f32 %v592_v9 }
 0x3ea   :  { %v2662_v10 = vpop.eup %2661 }
 0x3eb   :  { %v605_v28 = vmul.f32 %v2662_v10, %v3184_v24  ;;  %v904_v29 = vpop.permute.xlu2 %903 }
 0x3ec   :  { %v909_v13 = vsel %vm323_vm11, %v904_v29, 0 }
 0x3ed   :  { %918 = vmatpush.bf16.xpose.msra.mxu1 %v909_v13  ;;  %v613_v14 = vpack.c.bf16 %v605_v28, %v605_v28  ;;  %v1201_v30 = vpop.permute.xlu0 %1200 }
 0x3ee   :  { %v2664_v16 = vpop.eup %2663  ;;  %v1206_v34 = vsel %vm622_vm12, %v1201_v30, 0 }
 0x3ef   :  { %v608_v21 = vmul.f32 %v2664_v16, %v3188_v19  ;;  %2450 = vmatmul.msk.bf16.vlgmr.msrb.gmra.mxu0 %vm323_vm11, %v613_v14 }
 0x3f0   :  { %895 = vmatpush.bf16.xpose.msrb.mxu0 %v886_v18 }
 0x3f1   :  { %v616_v41 = vpack.c.bf16 %v608_v21, %v608_v21 }
 0x3f3   :  { %2453 = vmatmul.msk.bf16.vlgmr.msra.gmra.mxu3 %vm323_vm11, %v616_v41  ;;  %v879_v23 = vpop.permute.xlu2 %878 }
 0x3f5   :  { %1110 = vmatpush.bf16.msrb.mxu1 %v1101_v15  ;;  %v1180_v37 = vpop.permute.xlu0 %1179 }
 0x3f6   :  { %v1185_v39 = vsel %vm622_vm12, %v1180_v37, 0 }
 0x3fb   :  { %v1138_v26 = vpop.permute.xlu2 %1137 }
 0x3fc   :  { %v1143_v31 = vsel %vm622_vm12, %v1138_v26, 0 }
 0x3ff   :  { %v950_v24 = vpop.permute.xlu1 %949  ;;  %2454 = vmatmul.msk.bf16.vlgmr.msra.gmra.mxu0 %vm323_vm11, %v787_v5 }
 0x400   :  { %v955_v27 = vsel %vm323_vm11, %v950_v24, 0 }
 0x401   :  { %964 = vmatpush.bf16.xpose.msra.mxu3 %v955_v27 }
 0x403   :  { %v3264_v33 = vpop.f32.mrf.mxu3  ;;  %2457 = vmatmul.msk.bf16.vlgmr.msrb.gmra.mxu3 %vm323_vm11, %v3150_v51  ;;  %v1159_v51 = vpop.permute.xlu2 %1158 }
 0x404   :  { %v1164_v36 = vsel %vm622_vm12, %v1159_v51, 0 }
 0x407   :  { %v925_v19 = vpop.permute.xlu1 %924 }
 0x408   :  { %2460 = vmatmul.msk.bf16.vlgmr.msrb.gmra.mxu2 %vm323_vm11, %v925_v19 }
 0x409   :  { %1152 = vmatpush.bf16.msrb.mxu3 %v1143_v31  ;;  %1215 = vmatpush.bf16.msrb.mxu2 %v1206_v34 }
 0x40b   :  { %v637_v35 = vpop.f32.mrf.mxu3 }
 0x40f   :  { %v902_v38 = vpop.permute.xlu1 %901  ;;  %2458 = vmatmul.msk.bf16.vlgmr.msrb.gmra.mxu0 %vm323_vm11, %v879_v23 }
 0x410   :  { %2459 = vmatmul.msk.bf16.vlgmr.msra.gmra.mxu1 %vm323_vm11, %v902_v38  ;;  %v3321_v38 = vpop.permute.xlu0 %1290 }
 0x411   :  { %1194 = vmatpush.bf16.msra.mxu1 %v1185_v39 }
 0x413   :  { %2461 = vmatmul.msk.bf16.vlgmr.msra.gmra.mxu3 %vm323_vm11, %v948_v1 }
 0x417   :  { %v1075_v44 = vpop.permute.xlu1 %1074 }
 0x418   :  { %v1080_v45 = vsel %vm622_vm12, %v1075_v44, 0  ;;  %v3323_v39 = vpop.permute.xlu0 %1267 }
 0x419   :  { %1089 = vmatpush.bf16.msra.mxu0 %v1080_v45 }
 0x41d   :  { %1173 = vmatpush.bf16.msrb.mxu0 %v1164_v36 }
 0x41f   :  { %v1222_v47 = vpop.permute.xlu1 %1221 }
 0x420   :  { %v1227_v40 = vsel %vm622_vm12, %v1222_v47, 0  ;;  %v3327_v51 = vpop.permute.xlu0 %1242 }
 0x421   :  { %1236 = vmatpush.bf16.msra.mxu3 %v1227_v40 }
 0x423   :  { %v3277_v48 = vpop.f32.mrf.mxu1 }
 0x42b   :  { %v658_v32 = vpop.f32.mrf.mxu1 }
 0x431   :  { %v3279_v52 = vpop.f32.mrf.mxu2 }
 0x433   :  { %v3281_v53 = vpop.f32.mrf.mxu3 }
 0x439   :  { %v679_v54 = vpop.f32.mrf.mxu2 }
 0x43b   :  { %v700_v50 = vpop.f32.mrf.mxu3  ;;  %v3283_v55 = vpop.f32.mrf.mxu1 }
 0x443   :  { %v742_v58 = vpop.f32.mrf.mxu1 }
 0x449   :  { %v3285_v59 = vpop.f32.mrf.mxu2 }
 0x44b   :  { %v828_v46 = vpop.f32.mrf.mxu1 }
 0x44c   :  { %v971_v62 = vsel %vm309_vm13, %v828_v46, -1e+30 }
 0x44d   :  { %v981_v60 = vsel %vm323_vm11, %v971_v62, -inf }
 0x44e   :  { %982 = vmax.xlane.f32.xlu0 %v981_v60  ;;  %v3337_v60 = vpop.permute.xlu1 %1244 }
 0x451   :  { %v763_v61 = vpop.f32.mrf.mxu2 }
 0x453   :  { %v830_v49 = vpop.f32.mrf.mxu1 }
 0x456   :  { %v3341_v61 = vpop.permute.xlu1 %1311 }
 0x459   :  { %v851_v42 = vpop.f32.mrf.mxu2 }
 0x45a   :  { %v972_v56 = vsel %vm309_vm13, %v851_v42, -1e+30 }
 0x45b   :  { %v984_v63 = vsel %vm323_vm11, %v972_v56, -inf }
 0x45c   :  { %985 = vmax.xlane.f32.xlu0 %v984_v63 }
 0x461   :  { %v853_v57 = vpop.f32.mrf.mxu2 }
 0x46c   :  { %v3293_v3 = vpop.f32.mrf.mxu0 }
 0x474   :  { %v721_v1 = vpop.f32.mrf.mxu0 }
 0x476   :  { %v3295_v4 = vpop.f32.mrf.mxu3 }
 0x47c   :  { %v805_v22 = vpop.f32.mrf.mxu0 }
 0x47d   :  { %v970_v5 = vsel %vm309_vm13, %v805_v22, -1e+30 }
 0x47e   :  { %v784_v8 = vpop.f32.mrf.mxu3  ;;  %v978_v9 = vsel %vm323_vm11, %v970_v5, -inf }
 0x47f   :  { %979 = vmax.xlane.f32.xlu1 %v978_v9 }
 0x484   :  { %v807_v10 = vpop.f32.mrf.mxu0 }
 0x486   :  { %v874_v11 = vpop.f32.mrf.mxu3 }
 0x487   :  { %v973_v28 = vsel %vm309_vm13, %v874_v11, -1e+30 }
 0x488   :  { %v987_v29 = vsel %vm323_vm11, %v973_v28, -inf }
 0x489   :  { %988 = vmax.xlane.f32.xlu2 %v987_v29 }
 0x48b   :  { %v943_v13 = vpop.f32.mrf.mxu2 }
 0x48c   :  { %v897_v15 = vpop.f32.mrf.mxu0  ;;  %v976_v27 = vsel %vm309_vm13, %v943_v13, -1e+30 }
 0x48d   :  { %v3305_v14 = vsel %vm309_vm13, %v897_v15, -1e+30  ;;  %v920_v16 = vpop.f32.mrf.mxu1  ;;  %v996_v34 = vsel %vm323_vm11, %v976_v27, -inf }
 0x48e   :  { %v975_v18 = vsel %vm309_vm13, %v920_v16, -1e+30  ;;  %v876_v21 = vpop.f32.mrf.mxu3  ;;  %v990_v41 = vsel %vm323_vm11, %v3305_v14, -inf }
 0x48f   :  { %991 = vmax.xlane.f32.xlu0 %v990_v41  ;;  %v993_v23 = vsel %vm323_vm11, %v975_v18, -inf }
 0x491   :  { %994 = vmax.xlane.f32.xlu2 %v993_v23 }
 0x493   :  { %v945_v24 = vpop.f32.mrf.mxu2 }
 0x494   :  { %v899_v26 = vpop.f32.mrf.mxu0 }
 0x495   :  { %v922_v30 = vpop.f32.mrf.mxu1 }
 0x496   :  { %v966_v31 = vpop.f32.mrf.mxu3 }
 0x497   :  { %v3316_v19 = vsel %vm309_vm13, %v966_v31, -1e+30 }
 0x498   :  { %v999_v35 = vsel %vm323_vm11, %v3316_v19, -inf }
 0x499   :  { %997 = vmax.xlane.f32.xlu2 %v996_v34  ;;  %1000 = vmax.xlane.f32.xlu1 %v999_v35 }
 0x49e   :  { %v968_v37 = vpop.f32.mrf.mxu3 }
 0x4b1   :  { %1265 = vrot.lane.b32.xlu2 %v3020_v7, %s2776_s10 }
 0x4c1   :  { %v983_v44 = vpop.xlane.xlu0 %982 }
 0x4c2   :  { %v1003_v45 = vsub.f32 %v971_v62, %v983_v44  ;;  %v3339_v62 = vpop.permute.xlu2 %1313 }
 0x4c4   :  { %v1012_v36 = vmul.f32 1.442695, %v1003_v45 }
 0x4c6   :  { %2665 = vpow2.f32 %v1012_v36 }
 0x4ca   :  { %v3343_v63 = vpop.permute.xlu2 %1288 }
 0x4cc   :  { %v3329_v47 = vpop.eup %2665 }
 0x4cd   :  { %v1029_v40 = vsel %vm323_vm11, %v3329_v47, 0.0 }
 0x4ce   :  { %1030 = vadd.xlane.f32.xlu1 %v1029_v40 }
 0x4cf   :  { %v986_v32 = vpop.xlane.xlu0 %985 }
 0x4d0   :  { %v1004_v54 = vsub.f32 %v972_v56, %v986_v32  ;;  %v1273_v32 = vsel %vm323_vm11, %v3323_v39, 0 }
 0x4d2   :  { %v1014_v50 = vmul.f32 1.442695, %v1004_v54 }
 0x4d4   :  { %2667 = vpow2.f32 %v1014_v50 }
 0x4da   :  { %v3333_v58 = vpop.eup %2667 }
 0x4db   :  { %v1032_v46 = vsel %vm323_vm11, %v3333_v58, 0.0 }
 0x4dc   :  { %1033 = vadd.xlane.f32.xlu1 %v1032_v46 }
 0x4f2   :  { %v980_v49 = vpop.xlane.xlu1 %979 }
 0x4f3   :  { %v1002_v42 = vsub.f32 %v970_v5, %v980_v49  ;;  %v1296_v49 = vsel %vm323_vm11, %v3321_v38, 0 }
 0x4f5   :  { %v1010_v57 = vmul.f32 1.442695, %v1002_v42  ;;  %1382 = vrot.lane.b32.xlu1 %v3033_v17, %s2775_s9 }
 0x4f7   :  { %2669 = vpow2.f32 %v1010_v57 }
 0x4fc   :  { %v989_v56 = vpop.xlane.xlu2 %988 }
 0x4fd   :  { %v3347_v1 = vpop.eup %2669  ;;  %v1005_v22 = vsub.f32 %v973_v28, %v989_v56 }
 0x4fe   :  { %v1026_v8 = vsel %vm323_vm11, %v3347_v1, 0.0 }
 0x4ff   :  { %v1016_v9 = vmul.f32 1.442695, %v1005_v22  ;;  %1027 = vadd.xlane.f32.xlu2 %v1026_v8  ;;  %v1250_v22 = vsel %vm323_vm11, %v3337_v60, 0 }
 0x501   :  { %2671 = vpow2.f32 %v1016_v9 }
 0x502   :  { %v992_v15 = vpop.xlane.xlu0 %991 }
 0x503   :  { %v1006_v28 = vsub.f32 %v3305_v14, %v992_v15 }
 0x504   :  { %v995_v10 = vpop.xlane.xlu2 %994 }
 0x505   :  { %v1007_v11 = vsub.f32 %v975_v18, %v995_v10  ;;  %v1018_v18 = vmul.f32 1.442695, %v1006_v28 }
 0x507   :  { %v3351_v5 = vpop.eup %2671  ;;  %v1020_v29 = vmul.f32 1.442695, %v1007_v11  ;;  %v1319_v11 = vsel %vm323_vm11, %v3339_v62, 0 }
 0x508   :  { %v1035_v13 = vsel %vm323_vm11, %v3351_v5, 0.0 }
 0x509   :  { %2673 = vpow2.f32 %v1020_v29  ;;  %1036 = vadd.xlane.f32.xlu0 %v1035_v13 }
 0x50c   :  { %v998_v16 = vpop.xlane.xlu2 %997 }
 0x50d   :  { %v1008_v21 = vsub.f32 %v976_v27, %v998_v16  ;;  %v1001_v27 = vpop.xlane.xlu1 %1000 }
 0x50e   :  { %v1009_v34 = vsub.f32 %v3316_v19, %v1001_v27 }
 0x50f   :  { %v3356_v41 = vpop.eup %2673  ;;  %v1022_v23 = vmul.f32 1.442695, %v1008_v21 }
 0x510   :  { %v1041_v24 = vsel %vm323_vm11, %v3356_v41, 0.0  ;;  %v1024_v35 = vmul.f32 1.442695, %v1009_v34 }
 0x511   :  { %2675 = vpow2.f32 %v1022_v23  ;;  %1042 = vadd.xlane.f32.xlu2 %v1041_v24 }
 0x512   :  { %2677 = vpow2.f32 %v1018_v18 }
 0x513   :  { %2679 = vpow2.f32 %v1024_v35 }
 0x514   :  { %v1266_v39 = vpop.permute.xlu2 %1265 }
 0x517   :  { %v3360_v26 = vpop.eup %2675 }
 0x518   :  { %v1044_v30 = vsel %vm323_vm11, %v3360_v26, 0.0  ;;  %v3364_v31 = vpop.eup %2677 }
 0x519   :  { %1045 = vadd.xlane.f32.xlu2 %v1044_v30  ;;  %v1038_v14 = vsel %vm323_vm11, %v3364_v31, 0.0  ;;  %v3381_v44 = vpop.eup %2679 }
 0x51a   :  { %v1047_v19 = vsel %vm323_vm11, %v3381_v44, 0.0 }
 0x51d   :  { %1405 = vrot.lane.b32.xlu0 %v3047_v43, %s2775_s9 }
 0x51f   :  { %1039 = vadd.xlane.f32.xlu1 %v1038_v14 }
 0x531   :  { %1336 = vrot.lane.b32.xlu2 %v3018_v6, %s2775_s9 }
 0x538   :  { %1359 = vrot.lane.b32.xlu1 %v3049_v25, %s2775_s9 }
 0x539   :  { %1403 = vrot.lane.b32.xlu2 %v3047_v43, %s2776_s10 }
 0x540   :  { %1334 = vrot.lane.b32.xlu1 %v3018_v6, %s2776_s10 }
 0x541   :  { %1572 = vrot.lane.b32.xlu2 %v3026_v12, %s2777_s11  ;;  %v1031_v37 = vpop.xlane.xlu1 %1030 }
 0x542   :  { %2681 = vrcp.f32 %v1031_v37 }
 0x547   :  { %1048 = vadd.xlane.f32.xlu0 %v1047_v19 }
 0x548   :  { %v2682_v45 = vpop.eup %2681  ;;  %1551 = vrot.lane.b32.xlu1 %v3020_v7, %s2777_s11 }
 0x549   :  { %v1059_v36 = vmul.f32 %v2682_v45, %v3329_v47  ;;  %1635 = vrot.lane.b32.xlu2 %v3049_v25, %s2777_s11 }
 0x54b   :  { %v1067_v40 = vpack.c.bf16 %v1059_v36, %v1059_v36 }
 0x54d   :  { %2463 = vmatmul.msk.bf16.vlgmr.msrb.gmra.mxu1 %vm323_vm11, %v1067_v40 }
 0x54e   :  { %1282 = vmatpush.bf16.xpose.msrb.mxu1 %v1273_v32 }
 0x54f   :  { %v1034_v54 = vpop.xlane.xlu1 %1033 }
 0x550   :  { %2683 = vrcp.f32 %v1034_v54  ;;  %1656 = vrot.lane.b32.xlu1 %v3033_v17, %s2777_s11 }
 0x551   :  { %1700 = vrot.lane.b32.xlu2 %v3011_v2, %s2778_s12 }
 0x556   :  { %v2684_v47 = vpop.eup %2683 }
 0x557   :  { %v1060_v50 = vmul.f32 %v2684_v47, %v3333_v58 }
 0x559   :  { %v1068_v46 = vpack.c.bf16 %v1060_v50, %v1060_v50 }
 0x55b   :  { %1380 = vrot.lane.b32.xlu0 %v3033_v17, %s2776_s10  ;;  %2464 = vmatmul.msk.bf16.vlgmr.msra.gmra.mxu2 %vm323_vm11, %v1068_v46 }
 0x55c   :  { %1305 = vmatpush.bf16.xpose.msra.mxu2 %v1296_v49 }
 0x563   :  { %1357 = vrot.lane.b32.xlu0 %v3049_v25, %s2776_s10 }
 0x567   :  { %v1383_v29 = vpop.permute.xlu1 %1382 }
 0x568   :  { %v1388_v24 = vsel %vm323_vm11, %v1383_v29, 0 }
 0x56b   :  { %1530 = vrot.lane.b32.xlu0 %v3011_v2, %s2777_s11 }
 0x572   :  { %v1028_v42 = vpop.xlane.xlu2 %1027 }
 0x573   :  { %2685 = vrcp.f32 %v1028_v42  ;;  %1593 = vrot.lane.b32.xlu0 %v3037_v20, %s2777_s11 }
 0x579   :  { %v2686_v58 = vpop.eup %2685 }
 0x57a   :  { %v1058_v38 = vmul.f32 %v2686_v58, %v3347_v1 }
 0x57b   :  { %1614 = vrot.lane.b32.xlu0 %v3018_v6, %s2777_s11 }
 0x57c   :  { %v1066_v57 = vpack.c.bf16 %v1058_v38, %v1058_v38  ;;  %v1037_v56 = vpop.xlane.xlu0 %1036 }
 0x57d   :  { %2687 = vrcp.f32 %v1037_v56 }
 0x57e   :  { %2462 = vmatmul.msk.bf16.vlgmr.msra.gmra.mxu0 %vm323_vm11, %v1066_v57 }
 0x57f   :  { %1259 = vmatpush.bf16.xpose.msra.mxu0 %v1250_v22 }
 0x583   :  { %v2688_v8 = vpop.eup %2687  ;;  %1677 = vrot.lane.b32.xlu0 %v3047_v43, %s2777_s11 }
 0x584   :  { %v1061_v9 = vmul.f32 %v2688_v8, %v3351_v5  ;;  %v1043_v10 = vpop.xlane.xlu2 %1042 }
 0x585   :  { %2689 = vrcp.f32 %v1043_v10 }
 0x586   :  { %v1069_v1 = vpack.c.bf16 %v1061_v9, %v1061_v9 }
 0x588   :  { %2465 = vmatmul.msk.bf16.vlgmr.msrb.gmra.mxu3 %vm323_vm11, %v1069_v1 }
 0x589   :  { %1328 = vmatpush.bf16.xpose.msrb.mxu3 %v1319_v11 }
 0x58b   :  { %v2690_v60 = vpop.eup %2689  ;;  %1723 = vrot.lane.b32.xlu0 %v3020_v7, %s2778_s12 }
 0x58c   :  { %v1063_v13 = vmul.f32 %v2690_v60, %v3356_v41  ;;  %v1046_v15 = vpop.xlane.xlu2 %1045 }
 0x58d   :  { %2691 = vrcp.f32 %v1046_v15 }
 0x58e   :  { %v1071_v16 = vpack.c.bf16 %v1063_v13, %v1063_v13 }
 0x590   :  { %2467 = vmatmul.msk.bf16.vlgmr.msra.gmra.mxu1 %vm323_vm11, %v1071_v16 }
 0x592   :  { %v1040_v5 = vpop.xlane.xlu1 %1039 }
 0x593   :  { %v2692_v28 = vpop.eup %2691  ;;  %2693 = vrcp.f32 %v1040_v5 }
 0x594   :  { %v1064_v62 = vmul.f32 %v2692_v28, %v3360_v26  ;;  %v1337_v21 = vpop.permute.xlu2 %1336 }
 0x595   :  { %v1342_v27 = vsel %vm323_vm11, %v1337_v21, 0 }
 0x596   :  { %v1072_v23 = vpack.c.bf16 %v1064_v62, %v1064_v62 }
 0x598   :  { %2468 = vmatmul.msk.bf16.vlgmr.msrb.gmra.mxu2 %vm323_vm11, %v1072_v23 }
 0x599   :  { %v2694_v18 = vpop.eup %2693  ;;  %1397 = vmatpush.bf16.xpose.msrb.mxu2 %v1388_v24 }
 0x59a   :  { %v1062_v41 = vmul.f32 %v2694_v18, %v3364_v31  ;;  %v1406_v31 = vpop.permute.xlu0 %1405 }
 0x59b   :  { %v1411_v47 = vsel %vm323_vm11, %v1406_v31, 0 }
 0x59c   :  { %v1070_v30 = vpack.c.bf16 %v1062_v41, %v1062_v41  ;;  %v1404_v14 = vpop.permute.xlu2 %1403 }
 0x59e   :  { %2466 = vmatmul.msk.bf16.vlgmr.msrb.gmra.mxu0 %vm323_vm11, %v1070_v30 }
 0x59f   :  { %1351 = vmatpush.bf16.xpose.msrb.mxu0 %v1342_v27 }
 0x5a0   :  { %2471 = vmatmul.msk.bf16.vlgmr.msrb.gmra.mxu1 %vm323_vm11, %v1266_v39 }
 0x5a4   :  { %v1573_v26 = vpop.permute.xlu2 %1572 }
 0x5a5   :  { %v1578_v34 = vsel %vm622_vm12, %v1573_v26, 0 }
 0x5a8   :  { %2472 = vmatmul.msk.bf16.vlgmr.msra.gmra.mxu2 %vm323_vm11, %v3343_v63 }
 0x5a9   :  { %1587 = vmatpush.bf16.msra.mxu2 %v1578_v34 }
 0x5aa   :  { %v1360_v35 = vpop.permute.xlu1 %1359 }
 0x5ab   :  { %v1365_v37 = vsel %vm323_vm11, %v1360_v35, 0 }
 0x5ac   :  { %1374 = vmatpush.bf16.xpose.msra.mxu1 %v1365_v37  ;;  %v1636_v42 = vpop.permute.xlu2 %1635 }
 0x5ae   :  { %2470 = vmatmul.msk.bf16.vlgmr.msra.gmra.mxu0 %vm323_vm11, %v3327_v51 }
 0x5b2   :  { %v1335_v19 = vpop.permute.xlu1 %1334 }
 0x5ba   :  { %v1552_v45 = vpop.permute.xlu1 %1551  ;;  %v1049_v36 = vpop.xlane.xlu0 %1048 }
 0x5bb   :  { %v1557_v40 = vsel %vm622_vm12, %v1552_v45, 0  ;;  %2695 = vrcp.f32 %v1049_v36 }
 0x5bc   :  { %1566 = vmatpush.bf16.msrb.mxu1 %v1557_v40 }
 0x5be   :  { %2474 = vmatmul.msk.bf16.vlgmr.msrb.gmra.mxu0 %vm323_vm11, %v1335_v19 }
 0x5c1   :  { %v2696_v32 = vpop.eup %2695 }
 0x5c2   :  { %v1065_v63 = vmul.f32 %v2696_v32, %v3381_v44  ;;  %v1657_v50 = vpop.permute.xlu1 %1656  ;;  %v1641_v44 = vsel %vm622_vm12, %v1636_v42, 0 }
 0x5c3   :  { %v1662_v49 = vsel %vm622_vm12, %v1657_v50, 0 }
 0x5c4   :  { %v1073_v54 = vpack.c.bf16 %v1065_v63, %v1065_v63 }
 0x5c6   :  { %2469 = vmatmul.msk.bf16.vlgmr.msra.gmra.mxu3 %vm323_vm11, %v1073_v54 }
 0x5c7   :  { %1420 = vmatpush.bf16.xpose.msra.mxu3 %v1411_v47 }
 0x5ca   :  { %v3443_v51 = vpop.f32.mrf.mxu1 }
 0x5cd   :  { %v1381_v46 = vpop.permute.xlu0 %1380 }
 0x5ce   :  { %2476 = vmatmul.msk.bf16.vlgmr.msrb.gmra.mxu2 %vm323_vm11, %v1381_v46 }
 0x5cf   :  { %1671 = vmatpush.bf16.msrb.mxu2 %v1662_v49 }
 0x5d2   :  { %v1114_v39 = vpop.f32.mrf.mxu1 }
 0x5d5   :  { %v1358_v58 = vpop.permute.xlu0 %1357 }
 0x5d6   :  { %2473 = vmatmul.msk.bf16.vlgmr.msrb.gmra.mxu3 %vm323_vm11, %v3341_v61  ;;  %2475 = vmatmul.msk.bf16.vlgmr.msra.gmra.mxu1 %vm323_vm11, %v1358_v58 }
 0x5d7   :  { %1650 = vmatpush.bf16.msra.mxu1 %v1641_v44 }
 0x5dd   :  { %v1531_v38 = vpop.permute.xlu0 %1530 }
 0x5de   :  { %v1536_v57 = vsel %vm622_vm12, %v1531_v38, 0  ;;  %v3452_v56 = vpop.f32.mrf.mxu2 }
 0x5df   :  { %1545 = vmatpush.bf16.msra.mxu0 %v1536_v57 }
 0x5e5   :  { %v1594_v22 = vpop.permute.xlu0 %1593 }
 0x5e6   :  { %v1599_v8 = vsel %vm622_vm12, %v1594_v22, 0  ;;  %v1135_v9 = vpop.f32.mrf.mxu2  ;;  %2477 = vmatmul.msk.bf16.vlgmr.msra.gmra.mxu3 %vm323_vm11, %v1404_v14 }
 0x5e7   :  { %1608 = vmatpush.bf16.msrb.mxu3 %v1599_v8 }
 0x5ed   :  { %v1615_v10 = vpop.permute.xlu0 %1614 }
 0x5ee   :  { %v1620_v1 = vsel %vm622_vm12, %v1615_v10, 0 }
 0x5ef   :  { %1629 = vmatpush.bf16.msrb.mxu0 %v1620_v1 }
 0x5f5   :  { %v1678_v61 = vpop.permute.xlu0 %1677 }
 0x5f6   :  { %v1683_v11 = vsel %vm622_vm12, %v1678_v61, 0 }
 0x5f7   :  { %1692 = vmatpush.bf16.msra.mxu3 %v1683_v11 }
 0x5fb   :  { %v3458_v29 = vpop.f32.mrf.mxu0 }
 0x5fc   :  { %v2551_v60 = vpack.i.bf16 %v3443_v51, %v3458_v29 }
 0x603   :  { %v1093_v13 = vpop.f32.mrf.mxu0 }
 0x60b   :  { %v3462_v15 = vpop.f32.mrf.mxu3 }
 0x60c   :  { %v2566_v16 = vpack.i.bf16 %v3462_v15, %v3452_v56 }
 0x60d   :  { %v3466_v5 = vpop.f32.mrf.mxu1 }
 0x613   :  { %v1156_v28 = vpop.f32.mrf.mxu3 }
 0x615   :  { %v1198_v62 = vpop.f32.mrf.mxu1 }
 0x61b   :  { %v3468_v21 = vpop.f32.mrf.mxu0  ;;  %v3470_v23 = vpop.f32.mrf.mxu2 }
 0x61c   :  { %v2581_v24 = vpack.i.bf16 %v3466_v5, %v3468_v21  ;;  %v2529_v5 = vld [vmem:[%s3867_s4 + $0x8] sm:$0xff]  ;;  %v2528_v21 = vld [vmem:[%s3867_s4] sm:$0xff] }
 0x61d   :  { %v1284_v18 = vpop.f32.mrf.mxu1 }
 0x61e   :  { %v1427_v41 = vsel %vm309_vm13, %v1284_v18, -1e+30 }
 0x61f   :  { %v1437_v30 = vsel %vm323_vm11, %v1427_v41, -inf }
 0x620   :  { %1438 = vmax.xlane.f32.xlu1 %v1437_v30 }
 0x623   :  { %v1177_v14 = vpop.f32.mrf.mxu0  ;;  %v1219_v27 = vpop.f32.mrf.mxu2 }
 0x624   :  { %v3511_v27 = vpop.permute.xlu2 %1700 }
 0x625   :  { %v1286_v26 = vpop.f32.mrf.mxu1 }
 0x62b   :  { %v1261_v34 = vpop.f32.mrf.mxu0  ;;  %v1307_v35 = vpop.f32.mrf.mxu2 }
 0x62c   :  { %v1426_v37 = vsel %vm309_vm13, %v1261_v34, -1e+30  ;;  %v1428_v31 = vsel %vm309_vm13, %v1307_v35, -1e+30 }
 0x62d   :  { %v1440_v19 = vsel %vm323_vm11, %v1428_v31, -inf  ;;  %v1434_v45 = vsel %vm323_vm11, %v1426_v37, -inf }
 0x62e   :  { %1441 = vmax.xlane.f32.xlu0 %v1440_v19  ;;  %1435 = vmax.xlane.f32.xlu2 %v1434_v45 }
 0x633   :  { %v1263_v36 = vpop.f32.mrf.mxu0  ;;  %v1309_v40 = vpop.f32.mrf.mxu2 }
 0x634   :  { %v3517_v36 = vpop.permute.xlu0 %1723 }
 0x63b   :  { %v1353_v32 = vpop.f32.mrf.mxu0 }
 0x63c   :  { %v1430_v63 = vsel %vm309_vm13, %v1353_v32, -1e+30 }
 0x63d   :  { %v1446_v54 = vsel %vm323_vm11, %v1430_v63, -inf }
 0x63e   :  { %1447 = vmax.xlane.f32.xlu1 %v1446_v54 }
 0x643   :  { %v1355_v47 = vpop.f32.mrf.mxu0 }
 0x649   :  { %v3486_v50 = vpop.f32.mrf.mxu3 }
 0x64a   :  { %v2596_v46 = vpack.i.bf16 %v3486_v50, %v3470_v23 }
 0x651   :  { %v1240_v49 = vpop.f32.mrf.mxu3  ;;  %v1399_v39 = vpop.f32.mrf.mxu2 }
 0x652   :  { %v3492_v42 = vsel %vm309_vm13, %v1399_v39, -1e+30 }
 0x653   :  { %v1376_v58 = vpop.f32.mrf.mxu1  ;;  %v1452_v44 = vsel %vm323_vm11, %v3492_v42, -inf }
 0x654   :  { %v1431_v38 = vsel %vm309_vm13, %v1376_v58, -1e+30  ;;  %1453 = vmax.xlane.f32.xlu0 %v1452_v44 }
 0x655   :  { %v1449_v57 = vsel %vm323_vm11, %v1431_v38, -inf }
 0x656   :  { %1450 = vmax.xlane.f32.xlu2 %v1449_v57 }
 0x659   :  { %v1330_v22 = vpop.f32.mrf.mxu3  ;;  %v1401_v8 = vpop.f32.mrf.mxu2 }
 0x65a   :  { %v1429_v9 = vsel %vm309_vm13, %v1330_v22, -1e+30 }
 0x65b   :  { %v1378_v10 = vpop.f32.mrf.mxu1  ;;  %v1443_v1 = vsel %vm323_vm11, %v1429_v9, -inf }
 0x65e   :  { %1444 = vmax.xlane.f32.xlu2 %v1443_v1 }
 0x661   :  { %v1332_v61 = vpop.f32.mrf.mxu3 }
 0x668   :  { %1698 = vrot.lane.b32.xlu0 %v3011_v2, %s2779_s13 }
 0x669   :  { %v1422_v11 = vpop.f32.mrf.mxu3 }
 0x66a   :  { %v1433_v13 = vsel %vm309_vm13, %v1422_v11, -1e+30 }
 0x66b   :  { %v1455_v28 = vsel %vm323_vm11, %v1433_v13, -inf }
 0x66c   :  { %1456 = vmax.xlane.f32.xlu1 %v1455_v28 }
 0x671   :  { %v1424_v62 = vpop.f32.mrf.mxu3 }
 0x676   :  { %1769 = vrot.lane.b32.xlu2 %v3037_v20, %s2778_s12 }
 0x685   :  { %1746 = vrot.lane.b32.xlu1 %v3026_v12, %s2778_s12 }
 0x693   :  { %v1439_v18 = vpop.xlane.xlu1 %1438 }
 0x694   :  { %v1459_v30 = vsub.f32 %v1427_v41, %v1439_v18 }
 0x696   :  { %v1468_v14 = vmul.f32 1.442695, %v1459_v30 }
 0x698   :  { %2697 = vpow2.f32 %v1468_v14 }
 0x69e   :  { %v3513_v26 = vpop.eup %2697 }
 0x69f   :  { %v1485_v34 = vsel %vm323_vm11, %v3513_v26, 0.0 }
 0x6a0   :  { %1486 = vadd.xlane.f32.xlu0 %v1485_v34 }
 0x6a1   :  { %v1436_v35 = vpop.xlane.xlu2 %1435  ;;  %v1442_v32 = vpop.xlane.xlu0 %1441 }
 0x6a2   :  { %v1458_v19 = vsub.f32 %v1426_v37, %v1436_v35  ;;  %v1460_v49 = vsub.f32 %v1428_v31, %v1442_v32 }
 0x6a4   :  { %v1466_v45 = vmul.f32 1.442695, %v1458_v19  ;;  %v1470_v58 = vmul.f32 1.442695, %v1460_v49 }
 0x6a6   :  { %2699 = vpow2.f32 %v1466_v45 }
 0x6ac   :  { %v3519_v40 = vpop.eup %2699 }
 0x6ad   :  { %v1482_v41 = vsel %vm323_vm11, %v3519_v40, 0.0 }
 0x6ae   :  { %1483 = vadd.xlane.f32.xlu2 %v1482_v41 }
 0x6b1   :  { %v1448_v54 = vpop.xlane.xlu1 %1447 }
 0x6b2   :  { %v1462_v47 = vsub.f32 %v1430_v63, %v1448_v54 }
 0x6b4   :  { %v1474_v39 = vmul.f32 1.442695, %v1462_v47 }
 0x6b6   :  { %2701 = vpow2.f32 %v1474_v39 }
 0x6b7   :  { %2703 = vpow2.f32 %v1470_v58  ;;  %v1729_v58 = vsel %vm323_vm11, %v3517_v36, 0 }
 0x6bc   :  { %v3523_v44 = vpop.eup %2701 }
 0x6bd   :  { %v1494_v37 = vsel %vm323_vm11, %v3523_v44, 0.0  ;;  %v3527_v57 = vpop.eup %2703 }
 0x6be   :  { %1495 = vadd.xlane.f32.xlu1 %v1494_v37  ;;  %v1488_v22 = vsel %vm323_vm11, %v3527_v57, 0.0 }
 0x6c6   :  { %1489 = vadd.xlane.f32.xlu1 %v1488_v22 }
 0x6c7   :  { %v1454_v31 = vpop.xlane.xlu0 %1453 }
 0x6c8   :  { %v1464_v28 = vsub.f32 %v3492_v42, %v1454_v31 }
 0x6c9   :  { %v1451_v8 = vpop.xlane.xlu2 %1450 }
 0x6ca   :  { %v1463_v10 = vsub.f32 %v1431_v38, %v1451_v8  ;;  %v1478_v30 = vmul.f32 1.442695, %v1464_v28 }
 0x6cc   :  { %v1476_v63 = vmul.f32 1.442695, %v1463_v10 }
 0x6ce   :  { %2705 = vpow2.f32 %v1476_v63  ;;  %v1706_v63 = vsel %vm323_vm11, %v3511_v27, 0 }
 0x6d1   :  { %v1445_v1 = vpop.xlane.xlu2 %1444 }
 0x6d2   :  { %v1461_v61 = vsub.f32 %v1429_v9, %v1445_v1 }
 0x6d4   :  { %v3531_v11 = vpop.eup %2705  ;;  %v1472_v62 = vmul.f32 1.442695, %v1461_v61 }
 0x6d5   :  { %v1497_v18 = vsel %vm323_vm11, %v3531_v11, 0.0 }
 0x6d6   :  { %2707 = vpow2.f32 %v1472_v62  ;;  %1498 = vadd.xlane.f32.xlu0 %v1497_v18 }
 0x6d7   :  { %2709 = vpow2.f32 %v1478_v30 }
 0x6d9   :  { %v1770_v54 = vpop.permute.xlu2 %1769 }
 0x6dc   :  { %v3536_v14 = vpop.eup %2707 }
 0x6dd   :  { %v1491_v38 = vsel %vm323_vm11, %v3536_v14, 0.0  ;;  %v3540_v35 = vpop.eup %2709 }
 0x6de   :  { %1492 = vadd.xlane.f32.xlu2 %v1491_v38  ;;  %v1500_v42 = vsel %vm323_vm11, %v3540_v35, 0.0 }
 0x6df   :  { %v1457_v34 = vpop.xlane.xlu1 %1456 }
 0x6e0   :  { %v1465_v9 = vsub.f32 %v1433_v13, %v1457_v34  ;;  %v1699_v13 = vpop.permute.xlu0 %1698 }
 0x6e2   :  { %v1480_v19 = vmul.f32 1.442695, %v1465_v9 }
 0x6e4   :  { %2711 = vpow2.f32 %v1480_v19 }
 0x6e6   :  { %1501 = vadd.xlane.f32.xlu2 %v1500_v42 }
 0x6ea   :  { %v3544_v45 = vpop.eup %2711  ;;  %1767 = vrot.lane.b32.xlu0 %v3037_v20, %s2779_s13 }
 0x6eb   :  { %v1503_v41 = vsel %vm323_vm11, %v3544_v45, 0.0 }
 0x6ec   :  { %1504 = vadd.xlane.f32.xlu1 %v1503_v41 }
 0x6f2   :  { %1838 = vrot.lane.b32.xlu0 %v3033_v17, %s2778_s12 }
 0x6f7   :  { %v1747_v8 = vpop.permute.xlu1 %1746 }
 0x6f8   :  { %v1752_v18 = vsel %vm323_vm11, %v1747_v8, 0 }
 0x6fa   :  { %1813 = vrot.lane.b32.xlu0 %v3049_v25, %s2779_s13 }
 0x6fe   :  { %1744 = vrot.lane.b32.xlu2 %v3026_v12, %s2779_s13 }
 0x705   :  { %1721 = vrot.lane.b32.xlu1 %v3020_v7, %s2779_s13 }
 0x706   :  { %1815 = vrot.lane.b32.xlu2 %v3049_v25, %s2778_s12 }
 0x70d   :  { %1792 = vrot.lane.b32.xlu1 %v3018_v6, %s2778_s12 }
 0x70e   :  { %1790 = vrot.lane.b32.xlu2 %v3018_v6, %s2779_s13 }
 0x713   :  { %v1487_v32 = vpop.xlane.xlu0 %1486 }
 0x714   :  { %2713 = vrcp.f32 %v1487_v32  ;;  %v1775_v32 = vsel %vm323_vm11, %v1770_v54, 0 }
 0x715   :  { %1861 = vrot.lane.b32.xlu1 %v3047_v43, %s2778_s12 }
 0x716   :  { %1859 = vrot.lane.b32.xlu2 %v3047_v43, %s2779_s13 }
 0x71a   :  { %v2714_v47 = vpop.eup %2713 }
 0x71b   :  { %v1515_v49 = vmul.f32 %v2714_v47, %v3513_v26 }
 0x71d   :  { %v1523_v39 = vpack.c.bf16 %v1515_v49, %v1515_v49  ;;  %1836 = vrot.lane.b32.xlu1 %v3033_v17, %s2779_s13 }
 0x71f   :  { %2479 = vmatmul.msk.bf16.vlgmr.msrb.gmra.mxu1 %vm323_vm11, %v1523_v39 }
 0x720   :  { %1738 = vmatpush.bf16.xpose.msrb.mxu1 %v1729_v58 }
 0x721   :  { %v1484_v37 = vpop.xlane.xlu2 %1483 }
 0x722   :  { %2715 = vrcp.f32 %v1484_v37 }
 0x725   :  { %1986 = vrot.lane.b32.xlu1 %v3011_v2, %s2780_s14 }
 0x728   :  { %v2716_v22 = vpop.eup %2715 }
 0x729   :  { %v1514_v26 = vmul.f32 %v2716_v22, %v3519_v40 }
 0x72b   :  { %v1522_v10 = vpack.c.bf16 %v1514_v26, %v1514_v26 }
 0x72d   :  { %2478 = vmatmul.msk.bf16.vlgmr.msra.gmra.mxu0 %vm323_vm11, %v1522_v10 }
 0x72e   :  { %1715 = vmatpush.bf16.xpose.msra.mxu0 %v1706_v63 }
 0x731   :  { %v1496_v36 = vpop.xlane.xlu1 %1495 }
 0x732   :  { %2717 = vrcp.f32 %v1496_v36 }
 0x738   :  { %v2718_v31 = vpop.eup %2717 }
 0x739   :  { %v1518_v1 = vmul.f32 %v2718_v31, %v3523_v44  ;;  %v1490_v61 = vpop.xlane.xlu1 %1489 }
 0x73a   :  { %2719 = vrcp.f32 %v1490_v61 }
 0x73b   :  { %v1526_v28 = vpack.c.bf16 %v1518_v1, %v1518_v1 }
 0x73d   :  { %2482 = vmatmul.msk.bf16.vlgmr.msrb.gmra.mxu0 %vm323_vm11, %v1526_v28 }
 0x740   :  { %v2720_v2 = vpop.eup %2719 }
 0x741   :  { %v1516_v40 = vmul.f32 %v2720_v2, %v3527_v57 }
 0x743   :  { %v1524_v62 = vpack.c.bf16 %v1516_v40, %v1516_v40 }
 0x745   :  { %2480 = vmatmul.msk.bf16.vlgmr.msra.gmra.mxu2 %vm323_vm11, %v1524_v62 }
 0x746   :  { %1761 = vmatpush.bf16.xpose.msra.mxu2 %v1752_v18 }
 0x749   :  { %v1499_v27 = vpop.xlane.xlu0 %1498 }
 0x74a   :  { %2721 = vrcp.f32 %v1499_v27 }
 0x74d   :  { %2486 = vmatmul.msk.bf16.vlgmr.msra.gmra.mxu0 %vm323_vm11, %v1699_v13 }
 0x750   :  { %v2722_v30 = vpop.eup %2721 }
 0x751   :  { %v1519_v44 = vmul.f32 %v2722_v30, %v3531_v11  ;;  %v1493_v38 = vpop.xlane.xlu2 %1492 }
 0x752   :  { %2723 = vrcp.f32 %v1493_v38 }
 0x753   :  { %v1527_v34 = vpack.c.bf16 %v1519_v44, %v1519_v44 }
 0x755   :  { %2483 = vmatmul.msk.bf16.vlgmr.msra.gmra.mxu1 %vm323_vm11, %v1527_v34 }
 0x758   :  { %v2724_v9 = vpop.eup %2723 }
 0x759   :  { %v1517_v57 = vmul.f32 %v2724_v9, %v3536_v14  ;;  %v1502_v19 = vpop.xlane.xlu2 %1501 }
 0x75a   :  { %2725 = vrcp.f32 %v1502_v19 }
 0x75b   :  { %v1525_v42 = vpack.c.bf16 %v1517_v57, %v1517_v57 }
 0x75c   :  { %v1768_v41 = vpop.permute.xlu0 %1767 }
 0x75d   :  { %2481 = vmatmul.msk.bf16.vlgmr.msrb.gmra.mxu3 %vm323_vm11, %v1525_v42 }
 0x75e   :  { %1784 = vmatpush.bf16.xpose.msrb.mxu3 %v1775_v32 }
 0x75f   :  { %v1505_v13 = vpop.xlane.xlu1 %1504 }
 0x760   :  { %v2726_v47 = vpop.eup %2725  ;;  %2727 = vrcp.f32 %v1505_v13 }
 0x761   :  { %v1520_v11 = vmul.f32 %v2726_v47, %v3540_v35  ;;  %v1745_v49 = vpop.permute.xlu2 %1744 }
 0x763   :  { %v1528_v39 = vpack.c.bf16 %v1520_v11, %v1520_v11 }
 0x764   :  { %v1839_v58 = vpop.permute.xlu0 %1838 }
 0x765   :  { %v1844_v37 = vsel %vm323_vm11, %v1839_v58, 0  ;;  %2484 = vmatmul.msk.bf16.vlgmr.msrb.gmra.mxu2 %vm323_vm11, %v1528_v39 }
 0x766   :  { %v2728_v14 = vpop.eup %2727  ;;  %1853 = vmatpush.bf16.xpose.msrb.mxu2 %v1844_v37 }
 0x767   :  { %v1521_v22 = vmul.f32 %v2728_v14, %v3544_v45 }
 0x769   :  { %v1816_v54 = vpop.permute.xlu2 %1815  ;;  %v1529_v26 = vpack.c.bf16 %v1521_v22, %v1521_v22 }
 0x76a   :  { %v1821_v8 = vsel %vm323_vm11, %v1816_v54, 0 }
 0x76b   :  { %1830 = vmatpush.bf16.xpose.msra.mxu1 %v1821_v8 }
 0x76c   :  { %v1814_v45 = vpop.permute.xlu0 %1813 }
 0x76d   :  { %2485 = vmatmul.msk.bf16.vlgmr.msra.gmra.mxu3 %vm323_vm11, %v1529_v26 }
 0x771   :  { %v1791_v36 = vpop.permute.xlu2 %1790 }
 0x775   :  { %2488 = vmatmul.msk.bf16.vlgmr.msra.gmra.mxu2 %vm323_vm11, %v1745_v49 }
 0x777   :  { %v1722_v35 = vpop.permute.xlu1 %1721 }
 0x778   :  { %2487 = vmatmul.msk.bf16.vlgmr.msrb.gmra.mxu1 %vm323_vm11, %v1722_v35 }
 0x779   :  { %v1860_v61 = vpop.permute.xlu2 %1859 }
 0x77d   :  { %2489 = vmatmul.msk.bf16.vlgmr.msrb.gmra.mxu3 %vm323_vm11, %v1768_v41 }
 0x77f   :  { %v1793_v10 = vpop.permute.xlu1 %1792 }
 0x780   :  { %v1798_v63 = vsel %vm323_vm11, %v1793_v10, 0 }
 0x781   :  { %1807 = vmatpush.bf16.xpose.msrb.mxu0 %v1798_v63 }
 0x787   :  { %v1862_v31 = vpop.permute.xlu1 %1861 }
 0x788   :  { %v1867_v1 = vsel %vm323_vm11, %v1862_v31, 0  ;;  %2490 = vmatmul.msk.bf16.vlgmr.msrb.gmra.mxu0 %vm323_vm11, %v1791_v36  ;;  %2491 = vmatmul.msk.bf16.vlgmr.msra.gmra.mxu1 %vm323_vm11, %v1814_v45 }
 0x789   :  { %1876 = vmatpush.bf16.xpose.msra.mxu3 %v1867_v1 }
 0x78f   :  { %v1837_v28 = vpop.permute.xlu1 %1836 }
 0x790   :  { %2492 = vmatmul.msk.bf16.vlgmr.msrb.gmra.mxu2 %vm323_vm11, %v1837_v28  ;;  %2493 = vmatmul.msk.bf16.vlgmr.msra.gmra.mxu3 %vm323_vm11, %v1860_v61 }
 0x797   :  { %v1987_v2 = vpop.permute.xlu1 %1986 }
 0x798   :  { %v1992_v40 = vsel %vm622_vm12, %v1987_v2, 0 }
 0x799   :  { %2001 = vmatpush.bf16.msra.mxu0 %v1992_v40 }
 0x79c   :  { %v3607_v62 = vpop.f32.mrf.mxu1 }
 0x7a4   :  { %v1570_v18 = vpop.f32.mrf.mxu1 }
 0x7aa   :  { %v3609_v27 = vpop.f32.mrf.mxu0 }
 0x7ab   :  { %v2556_v30 = vpack.i.bf16 %v3607_v62, %v3609_v27 }
 0x7b2   :  { %v1549_v44 = vpop.f32.mrf.mxu0 }
 0x7ba   :  { %v3613_v38 = vpop.f32.mrf.mxu0 }
 0x7c2   :  { %v1633_v34 = vpop.f32.mrf.mxu0 }
 0x7c8   :  { %v3615_v9 = vpop.f32.mrf.mxu2 }
 0x7ca   :  { %v1717_v57 = vpop.f32.mrf.mxu0 }
 0x7cb   :  { %v1882_v19 = vsel %vm309_vm13, %v1717_v57, -1e+30 }
 0x7cc   :  { %v1890_v42 = vsel %vm323_vm11, %v1882_v19, -inf }
 0x7cd   :  { %1891 = vmax.xlane.f32.xlu0 %v1890_v42 }
 0x7d0   :  { %v1591_v41 = vpop.f32.mrf.mxu2 }
 0x7d2   :  { %v3620_v32 = vpop.f32.mrf.mxu1  ;;  %v1719_v13 = vpop.f32.mrf.mxu0 }
 0x7d3   :  { %v2586_v47 = vpack.i.bf16 %v3620_v32, %v3613_v38 }
 0x7da   :  { %v1654_v11 = vpop.f32.mrf.mxu1 }
 0x7e0   :  { %v3624_v49 = vpop.f32.mrf.mxu3 }
 0x7e1   :  { %v2571_v39 = vpack.i.bf16 %v3624_v49, %v3615_v9  ;;  %2028 = vrot.lane.b32.xlu0 %v3026_v12, %s2780_s14 }
 0x7e8   :  { %v1612_v58 = vpop.f32.mrf.mxu3  ;;  %v3630_v37 = vpop.f32.mrf.mxu2 }
 0x7f0   :  { %v1675_v14 = vpop.f32.mrf.mxu2  ;;  %v3632_v22 = vpop.f32.mrf.mxu3 }
 0x7f1   :  { %v2601_v54 = vpack.i.bf16 %v3632_v22, %v3630_v37 }
 0x7f5   :  { %v1740_v8 = vpop.f32.mrf.mxu1 }
 0x7f6   :  { %v1883_v26 = vsel %vm309_vm13, %v1740_v8, -1e+30 }
 0x7f7   :  { %v1893_v35 = vsel %vm323_vm11, %v1883_v26, -inf }
 0x7f8   :  { %v1696_v10 = vpop.f32.mrf.mxu3  ;;  %v1763_v63 = vpop.f32.mrf.mxu2  ;;  %1894 = vmax.xlane.f32.xlu1 %v1893_v35 }
 0x7f9   :  { %v1884_v57 = vsel %vm309_vm13, %v1763_v63, -1e+30 }
 0x7fa   :  { %v1896_v13 = vsel %vm323_vm11, %v1884_v57, -inf }
 0x7fd   :  { %v1742_v36 = vpop.f32.mrf.mxu1 }
 0x800   :  { %v1765_v12 = vpop.f32.mrf.mxu2  ;;  %v1786_v45 = vpop.f32.mrf.mxu3 }
 0x801   :  { %v1885_v2 = vsel %vm309_vm13, %v1786_v45, -1e+30 }
 0x802   :  { %v1899_v34 = vsel %vm323_vm11, %v1885_v2, -inf }
 0x805   :  { %v1809_v31 = vpop.f32.mrf.mxu0  ;;  %v1832_v1 = vpop.f32.mrf.mxu1 }
 0x806   :  { %v1886_v61 = vsel %vm309_vm13, %v1809_v31, -1e+30  ;;  %v1887_v28 = vsel %vm309_vm13, %v1832_v1, -1e+30 }
 0x807   :  { %v1902_v40 = vsel %vm323_vm11, %v1886_v61, -inf  ;;  %v1905_v18 = vsel %vm323_vm11, %v1887_v28, -inf }
 0x808   :  { %1903 = vmax.xlane.f32.xlu1 %v1902_v40  ;;  %v1788_v44 = vpop.f32.mrf.mxu3  ;;  %1906 = vmax.xlane.f32.xlu2 %v1905_v18 }
 0x80b   :  { %1900 = vmax.xlane.f32.xlu0 %v1899_v34 }
 0x80d   :  { %v1811_v42 = vpop.f32.mrf.mxu0  ;;  %v1834_v41 = vpop.f32.mrf.mxu1 }
 0x810   :  { %1897 = vmax.xlane.f32.xlu2 %v1896_v13 }
 0x813   :  { %v1855_v11 = vpop.f32.mrf.mxu2  ;;  %v1878_v58 = vpop.f32.mrf.mxu3 }
 0x814   :  { %v3653_v14 = vsel %vm309_vm13, %v1855_v11, -1e+30  ;;  %v1889_v8 = vsel %vm309_vm13, %v1878_v58, -1e+30 }
 0x815   :  { %v1908_v35 = vsel %vm323_vm11, %v3653_v14, -inf  ;;  %v1911_v10 = vsel %vm323_vm11, %v1889_v8, -inf }
 0x816   :  { %1912 = vmax.xlane.f32.xlu1 %v1911_v10  ;;  %1909 = vmax.xlane.f32.xlu0 %v1908_v35 }
 0x81b   :  { %v1857_v63 = vpop.f32.mrf.mxu2  ;;  %v1880_v36 = vpop.f32.mrf.mxu3 }
 0x828   :  { %2007 = vrot.lane.b32.xlu2 %v3020_v7, %s2780_s14 }
 0x82a   :  { %2070 = vrot.lane.b32.xlu0 %v3018_v6, %s2780_s14 }
 0x82f   :  { %2049 = vrot.lane.b32.xlu1 %v3037_v20, %s2780_s14 }
 0x840   :  { %v1892_v0 = vpop.xlane.xlu0 %1891 }
 0x841   :  { %v1914_v12 = vsub.f32 %v1882_v19, %v1892_v0 }
 0x843   :  { %v1922_v45 = vmul.f32 1.442695, %v1914_v12 }
 0x845   :  { %2729 = vpow2.f32 %v1922_v45 }
 0x84b   :  { %v3666_v31 = vpop.eup %2729 }
 0x84c   :  { %v1938_v1 = vsel %vm323_vm11, %v3666_v31, 0.0 }
 0x851   :  { %1939 = vadd.xlane.f32.xlu2 %v1938_v1 }
 0x853   :  { %v2029_v40 = vpop.permute.xlu0 %2028 }
 0x854   :  { %v2034_v18 = vsel %vm622_vm12, %v2029_v40, 0 }
 0x855   :  { %2043 = vmatpush.bf16.msra.mxu2 %v2034_v18 }
 0x86b   :  { %v1895_v7 = vpop.xlane.xlu1 %1894 }
 0x86c   :  { %v1915_v44 = vsub.f32 %v1883_v26, %v1895_v7 }
 0x86e   :  { %v1924_v6 = vmul.f32 1.442695, %v1915_v44 }
 0x870   :  { %2731 = vpow2.f32 %v1924_v6 }
 0x876   :  { %v3671_v34 = vpop.eup %2731 }
 0x877   :  { %v1941_v20 = vsel %vm323_vm11, %v3671_v34, 0.0 }
 0x878   :  { %1942 = vadd.xlane.f32.xlu0 %v1941_v20 }
 0x87b   :  { %v1904_v19 = vpop.xlane.xlu1 %1903  ;;  %v1907_v42 = vpop.xlane.xlu2 %1906 }
 0x87c   :  { %v1918_v41 = vsub.f32 %v1886_v61, %v1904_v19  ;;  %v1919_v13 = vsub.f32 %v1887_v28, %v1907_v42 }
 0x87e   :  { %v1930_v11 = vmul.f32 1.442695, %v1918_v41  ;;  %v1932_v58 = vmul.f32 1.442695, %v1919_v13  ;;  %v1901_v35 = vpop.xlane.xlu0 %1900 }
 0x87f   :  { %v1917_v26 = vsub.f32 %v1885_v2, %v1901_v35 }
 0x880   :  { %2733 = vpow2.f32 %v1930_v11 }
 0x881   :  { %2735 = vpow2.f32 %v1932_v58  ;;  %v1928_v28 = vmul.f32 1.442695, %v1917_v26 }
 0x883   :  { %v1898_v10 = vpop.xlane.xlu2 %1897 }
 0x884   :  { %v1916_v63 = vsub.f32 %v1884_v57, %v1898_v10 }
 0x886   :  { %v3675_v36 = vpop.eup %2733  ;;  %v1926_v0 = vmul.f32 1.442695, %v1916_v63 }
 0x887   :  { %v3677_v12 = vpop.eup %2735  ;;  %v1950_v45 = vsel %vm323_vm11, %v3675_v36, 0.0 }
 0x888   :  { %2737 = vpow2.f32 %v1926_v0  ;;  %v1953_v61 = vsel %vm323_vm11, %v3677_v12, 0.0  ;;  %1951 = vadd.xlane.f32.xlu2 %v1950_v45 }
 0x889   :  { %1954 = vadd.xlane.f32.xlu1 %v1953_v61  ;;  %v1913_v1 = vpop.xlane.xlu1 %1912  ;;  %2739 = vpow2.f32 %v1928_v28  ;;  %v1910_v19 = vpop.xlane.xlu0 %1909 }
 0x88a   :  { %v1921_v40 = vsub.f32 %v1889_v8, %v1913_v1 }
 0x88b   :  { %v2008_v18 = vpop.permute.xlu2 %2007 }
 0x88c   :  { %v1936_v57 = vmul.f32 1.442695, %v1921_v40  ;;  %v2013_v2 = vsel %vm622_vm12, %v2008_v18, 0 }
 0x88d   :  { %2022 = vmatpush.bf16.msrb.mxu1 %v2013_v2 }
 0x88e   :  { %v2738_v7 = vpop.eup %2737  ;;  %2741 = vpow2.f32 %v1936_v57 }
 0x88f   :  { %v1944_v44 = vsel %vm323_vm11, %v2738_v7, 0.0  ;;  %v2740_v6 = vpop.eup %2739 }
 0x890   :  { %1945 = vadd.xlane.f32.xlu0 %v1944_v44  ;;  %v1947_v8 = vsel %vm323_vm11, %v2740_v6, 0.0 }
 0x894   :  { %v3685_v20 = vpop.eup %2741 }
 0x895   :  { %v1959_v42 = vsel %vm323_vm11, %v3685_v20, 0.0 }
 0x896   :  { %1960 = vadd.xlane.f32.xlu2 %v1959_v42 }
 0x898   :  { %1948 = vadd.xlane.f32.xlu0 %v1947_v8 }
 0x89c   :  { %v2071_v41 = vpop.permute.xlu0 %2070 }
 0x89d   :  { %v2076_v13 = vsel %vm622_vm12, %v2071_v41, 0 }
 0x89e   :  { %2085 = vmatpush.bf16.msrb.mxu0 %v2076_v13 }
 0x8a1   :  { %v2050_v11 = vpop.permute.xlu1 %2049 }
 0x8a2   :  { %v2055_v58 = vsel %vm622_vm12, %v2050_v11, 0  ;;  %2112 = vrot.lane.b32.xlu1 %v3033_v17, %s2780_s14  ;;  %v1920_v17 = vsub.f32 %v3653_v14, %v1910_v19 }
 0x8a3   :  { %2064 = vmatpush.bf16.msrb.mxu3 %v2055_v58 }
 0x8ac   :  { %2091 = vrot.lane.b32.xlu0 %v3049_v25, %s2780_s14  ;;  %v1934_v25 = vmul.f32 1.442695, %v1920_v17 }
 0x8ae   :  { %2133 = vrot.lane.b32.xlu2 %v3047_v43, %s2780_s14 }
 0x8b6   :  { %2557 = vrot.lane.b32.xlu2 %v2556_v30, %s2781_s15 }
 0x8be   :  { %2567 = vrot.lane.b32.xlu2 %v2566_v16, %s2782_s16 }
 0x8c4   :  { %v1940_v35 = vpop.xlane.xlu2 %1939 }
 0x8c5   :  { %2743 = vrcp.f32 %v1940_v35 }
 0x8c6   :  { %2745 = vpow2.f32 %v1934_v25 }
 0x8cb   :  { %v2744_v10 = vpop.eup %2743 }
 0x8cc   :  { %v1970_v43 = vmul.f32 %v2744_v10, %v3666_v31  ;;  %v2746_v62 = vpop.eup %2745 }
 0x8cd   :  { %v1956_v27 = vsel %vm323_vm11, %v2746_v62, 0.0 }
 0x8ce   :  { %v1978_v63 = vpack.c.bf16 %v1970_v43, %v1970_v43 }
 0x8d0   :  { %2494 = vmatmul.msk.bf16.vlgmr.msra.gmra.mxu0 %vm323_vm11, %v1978_v63 }
 0x8d1   :  { %2318 = vmatpush.bf16.msra.mxu0 %v2529_v5 }
 0x8d5   :  { %2319 = vmatpush.bf16.msra.mxu0 %v2528_v21 }
 0x8d6   :  { %1957 = vadd.xlane.f32.xlu0 %v1956_v27 }
 0x8ea   :  { %2552 = vrot.lane.b32.xlu0 %v2551_v60, %s2782_s16 }
 0x8eb   :  { %v1943_v56 = vpop.xlane.xlu0 %1942 }
 0x8ec   :  { %2747 = vrcp.f32 %v1943_v56 }
 0x8f2   :  { %v2748_v15 = vpop.eup %2747  ;;  %2587 = vrot.lane.b32.xlu0 %v2586_v47, %s2781_s15 }
 0x8f3   :  { %v1971_v16 = vmul.f32 %v2748_v15, %v3671_v34 }
 0x8f5   :  { %v1979_v30 = vpack.c.bf16 %v1971_v16, %v1971_v16 }
 0x8f7   :  { %2495 = vmatmul.msk.bf16.vlgmr.msrb.gmra.mxu1 %vm323_vm11, %v1979_v30 }
 0x8fa   :  { %2602 = vrot.lane.b32.xlu0 %v2601_v54, %s2781_s15 }
 0x8fb   :  { %v1952_v51 = vpop.xlane.xlu2 %1951 }
 0x8fc   :  { %2749 = vrcp.f32 %v1952_v51  ;;  %v1955_v26 = vpop.xlane.xlu1 %1954 }
 0x902   :  { %v2750_v29 = vpop.eup %2749 }
 0x903   :  { %v1974_v60 = vmul.f32 %v2750_v29, %v3675_v36  ;;  %v1946_v14 = vpop.xlane.xlu0 %1945 }
 0x904   :  { %2751 = vrcp.f32 %v1946_v14 }
 0x905   :  { %v1982_v31 = vpack.c.bf16 %v1974_v60, %v1974_v60 }
 0x907   :  { %2498 = vmatmul.msk.bf16.vlgmr.msrb.gmra.mxu0 %vm323_vm11, %v1982_v31 }
 0x909   :  { %v1961_v38 = vpop.xlane.xlu2 %1960 }
 0x90a   :  { %v2752_v32 = vpop.eup %2751 }
 0x90b   :  { %v1972_v47 = vmul.f32 %v2752_v32, %v2738_v7  ;;  %v1949_v34 = vpop.xlane.xlu0 %1948 }
 0x90c   :  { %2753 = vrcp.f32 %v1949_v34 }
 0x90d   :  { %v1980_v0 = vpack.c.bf16 %v1972_v47, %v1972_v47  ;;  %2755 = vrcp.f32 %v1955_v26 }
 0x90e   :  { %2757 = vrcp.f32 %v1961_v38 }
 0x90f   :  { %2496 = vmatmul.msk.bf16.vlgmr.msra.gmra.mxu2 %vm323_vm11, %v1980_v0 }
 0x911   :  { %v2134_v37 = vpop.permute.xlu2 %2133 }
 0x912   :  { %v2754_v22 = vpop.eup %2753  ;;  %v2139_v54 = vsel %vm622_vm12, %v2134_v37, 0 }
 0x913   :  { %v1973_v45 = vmul.f32 %v2754_v22, %v2740_v6  ;;  %2148 = vmatpush.bf16.msra.mxu3 %v2139_v54  ;;  %v2756_v1 = vpop.eup %2755 }
 0x914   :  { %v2113_v36 = vpop.permute.xlu1 %2112  ;;  %v1975_v40 = vmul.f32 %v2756_v1, %v3677_v12  ;;  %v2758_v18 = vpop.eup %2757 }
 0x915   :  { %v1981_v61 = vpack.c.bf16 %v1973_v45, %v1973_v45  ;;  %v2118_v28 = vsel %vm622_vm12, %v2113_v36, 0  ;;  %v1977_v44 = vmul.f32 %v2758_v18, %v3685_v20 }
 0x916   :  { %2127 = vmatpush.bf16.msrb.mxu2 %v2118_v28  ;;  %v1983_v7 = vpack.c.bf16 %v1975_v40, %v1975_v40 }
 0x917   :  { %2497 = vmatmul.msk.bf16.vlgmr.msrb.gmra.mxu3 %vm323_vm11, %v1981_v61  ;;  %v1985_v6 = vpack.c.bf16 %v1977_v44, %v1977_v44 }
 0x919   :  { %v2558_v30 = vpop.permute.xlu2 %2557 }
 0x91a   :  { %v2560_v60 = vunpack.i.h.bf16 %v2558_v30  ;;  %v2559_v14 = vunpack.i.l.bf16 %v2558_v30  ;;  %v2613_v30 = vld [vmem:[%s3866_s5] ss:$0 sm:$0xff] }
 0x91e   :  { %v2092_v57 = vpop.permute.xlu0 %2091 }
 0x91f   :  { %v2097_v2 = vsel %vm622_vm12, %v2092_v57, 0 }
 0x920   :  { %2106 = vmatpush.bf16.msra.mxu1 %v2097_v2 }
 0x923   :  { %2499 = vmatmul.msk.bf16.vlgmr.msra.gmra.mxu1 %vm323_vm11, %v1983_v7 }
 0x927   :  { %2501 = vmatmul.msk.bf16.vlgmr.msra.gmra.mxu3 %vm323_vm11, %v1985_v6 }
 0x949   :  { %v1958_v19 = vpop.xlane.xlu0 %1957 }
 0x94a   :  { %2759 = vrcp.f32 %v1958_v19 }
 0x94d   :  { %v2003_v42 = vpop.f32.mrf.mxu0 }
 0x950   :  { %v2760_v8 = vpop.eup %2759 }
 0x951   :  { %v1976_v41 = vmul.f32 %v2760_v8, %v2746_v62 }
 0x953   :  { %v1984_v13 = vpack.c.bf16 %v1976_v41, %v1976_v41 }
 0x955   :  { %v2005_v12 = vpop.f32.mrf.mxu0  ;;  %2500 = vmatmul.msk.bf16.vlgmr.msrb.gmra.mxu2 %vm323_vm11, %v1984_v13 }
 0x974   :  { %v2024_v11 = vpop.f32.mrf.mxu1 }
 0x975   :  { %v2561_v58 = vpack.i.bf16 %v2024_v11, %v2003_v42 }
 0x977   :  { %2562 = vrot.lane.b32.xlu1 %v2561_v58, %s2783_s17 }
 0x97c   :  { %v2026_v17 = vpop.f32.mrf.mxu1 }
 0x97f   :  { %2572 = vrot.lane.b32.xlu1 %v2571_v39, %s2781_s15 }
 0x984   :  { %v2087_v20 = vpop.f32.mrf.mxu0 }
 0x987   :  { %2582 = vrot.lane.b32.xlu1 %v2581_v24, %s2782_s16 }
 0x98c   :  { %v2089_v35 = vpop.f32.mrf.mxu0 }
 0x98f   :  { %2597 = vrot.lane.b32.xlu1 %v2596_v46, %s2782_s16  ;;  %v2553_v46 = vpop.permute.xlu0 %2552 }
 0x990   :  { %v2555_v15 = vunpack.i.h.bf16 %v2553_v46  ;;  %v2554_v16 = vunpack.i.l.bf16 %v2553_v46 }
 0x992   :  { %v2045_v25 = vpop.f32.mrf.mxu2  ;;  %v2251_v51 = vsel %vm323_vm11, %v3277_v48, %v2555_v15  ;;  %v2250_v29 = vsel %vm323_vm11, %v3264_v33, %v2554_v16  ;;  %v2568_v48 = vpop.permute.xlu2 %2567 }
 0x993   :  { %v2259_v47 = vsel %vm2258_vm14, %v2250_v29, %v2559_v14  ;;  %v2260_v34 = vsel %vm2258_vm14, %v2251_v51, %v2560_v60  ;;  %v2570_v22 = vunpack.i.h.bf16 %v2568_v48  ;;  %v2569_v54 = vunpack.i.l.bf16 %v2568_v48 }
 0x995   :  { %v2253_v28 = vsel %vm323_vm11, %v3281_v53, %v2570_v22  ;;  %v2252_v1 = vsel %vm323_vm11, %v3279_v52, %v2569_v54 }
 0x997   :  { %v2588_v41 = vpop.permute.xlu0 %2587 }
 0x998   :  { %v2590_v58 = vunpack.i.h.bf16 %v2588_v41  ;;  %v2589_v17 = vunpack.i.l.bf16 %v2588_v41 }
 0x99a   :  { %v2047_v10 = vpop.f32.mrf.mxu2  ;;  %v2066_v43 = vpop.f32.mrf.mxu3 }
 0x99b   :  { %v2576_v63 = vpack.i.bf16 %v2066_v43, %v2045_v25 }
 0x99d   :  { %2577 = vrot.lane.b32.xlu2 %v2576_v63, %s2783_s17 }
 0x9a0   :  { %v2108_v62 = vpop.f32.mrf.mxu1 }
 0x9a1   :  { %v2591_v49 = vpack.i.bf16 %v2108_v62, %v2087_v20 }
 0x9a2   :  { %v2068_v9 = vpop.f32.mrf.mxu3 }
 0x9a3   :  { %v2603_v9 = vpop.permute.xlu0 %2602 }
 0x9a5   :  { %2592 = vrot.lane.b32.xlu2 %v2591_v49, %s2783_s17 }
 0x9a8   :  { %v2110_v39 = vpop.f32.mrf.mxu1 }
 0x9a9   :  { %v2605_v39 = vunpack.i.h.bf16 %v2603_v9 }
 0x9aa   :  { %v2150_v27 = vpop.f32.mrf.mxu3 }
 0x9b2   :  { %v2152_v56 = vpop.f32.mrf.mxu3 }
 0x9d8   :  { %v2129_v23 = vpop.f32.mrf.mxu2 }
 0x9d9   :  { %v2606_v24 = vpack.i.bf16 %v2150_v27, %v2129_v23  ;;  %v2604_v27 = vunpack.i.l.bf16 %v2603_v9 }
 0x9db   :  { %2607 = vrot.lane.b32.xlu2 %v2606_v24, %s2783_s17 }
 0x9e0   :  { %v2131_v50 = vpop.f32.mrf.mxu2 }
 0x9e9   :  { %v2563_v31 = vpop.permute.xlu1 %2562 }
 0x9ea   :  { %v2565_v38 = vunpack.i.h.bf16 %v2563_v31  ;;  %v2564_v32 = vunpack.i.l.bf16 %v2563_v31 }
 0x9ec   :  { %v2268_v26 = vsel %vm2267_vm15, %v2259_v47, %v2564_v32  ;;  %v2269_v0 = vsel %vm2267_vm15, %v2260_v34, %v2565_v38 }
 0x9ed   :  { %v2276_v37 = vpack.c.bf16 %v2269_v0, %v2268_v26 }
 0x9ef   :  { %2510 = vmatmul.msk.bf16.vlgmr.msra.gmra.mxu0 %vm40_vm0, %v2276_v37 }
 0x9f1   :  { %v2573_v33 = vpop.permute.xlu1 %2572 }
 0x9f2   :  { %v2575_v45 = vunpack.i.h.bf16 %v2573_v33  ;;  %v2574_v36 = vunpack.i.l.bf16 %v2573_v33 }
 0x9f4   :  { %v2262_v57 = vsel %vm2258_vm14, %v2253_v28, %v2575_v45  ;;  %v2261_v2 = vsel %vm2258_vm14, %v2252_v1, %v2574_v36  ;;  %v2614_v28 = vld [vmem:[%s3868_s7] ss:$0 sm:$0xff] }
 0x9f7   :  { %v2578_v61 = vpop.permute.xlu2 %2577 }
 0x9f8   :  { %v2580_v40 = vunpack.i.h.bf16 %v2578_v61  ;;  %v2579_v18 = vunpack.i.l.bf16 %v2578_v61 }
 0x9f9   :  { %v2583_v19 = vpop.permute.xlu1 %2582 }
 0x9fa   :  { %v2271_v7 = vsel %vm2267_vm15, %v2262_v57, %v2580_v40  ;;  %v2270_v44 = vsel %vm2267_vm15, %v2261_v2, %v2579_v18  ;;  %v2585_v42 = vunpack.i.h.bf16 %v2583_v19  ;;  %v2584_v8 = vunpack.i.l.bf16 %v2583_v19  ;;  %v2761_v18 = vld [vmem:[%s3862_s0] sm:$0xff] }
 0x9fb   :  { %v2277_v6 = vpack.c.bf16 %v2271_v7, %v2270_v44  ;;  %v2762_v44 = vld [vmem:[%s3862_s0 + $0x8] sm:$0xff] }
 0x9fc   :  { %v2255_v52 = vsel %vm323_vm11, %v3283_v55, %v2585_v42  ;;  %v2254_v13 = vsel %vm323_vm11, %v3293_v3, %v2584_v8  ;;  %v2763_v8 = vld [vmem:[%s3862_s0 + $0x10] sm:$0xff] }
 0x9fd   :  { %v2263_v20 = vsel %vm2258_vm14, %v2254_v13, %v2589_v17  ;;  %v2264_v35 = vsel %vm2258_vm14, %v2255_v52, %v2590_v58  ;;  %v2764_v13 = vld [vmem:[%s3862_s0 + $0x18] sm:$0xff]  ;;  %v2765_v17 = vld [vmem:[%s3862_s0 + $0x20] sm:$0xff] }
 0x9ff   :  { %2511 = vmatmul.msk.bf16.gmra.mxu0 %vm40_vm0, %v2277_v6  ;;  %v2593_v53 = vpop.permute.xlu2 %2592 }
 0xa00   :  { %v2595_v12 = vunpack.i.h.bf16 %v2593_v53  ;;  %v2594_v11 = vunpack.i.l.bf16 %v2593_v53 }
 0xa01   :  { %v2598_v63 = vpop.permute.xlu1 %2597 }
 0xa02   :  { %v2272_v25 = vsel %vm2267_vm15, %v2263_v20, %v2594_v11  ;;  %v2273_v10 = vsel %vm2267_vm15, %v2264_v35, %v2595_v12  ;;  %v2600_v55 = vunpack.i.h.bf16 %v2598_v63  ;;  %v2599_v62 = vunpack.i.l.bf16 %v2598_v63 }
 0xa03   :  { %v2278_v43 = vpack.c.bf16 %v2273_v10, %v2272_v25  ;;  %v2766_v10 = vld [vmem:[%s3862_s0 + $0x28] sm:$0xff] }
 0xa04   :  { %v2257_v3 = vsel %vm323_vm11, %v3295_v4, %v2600_v55  ;;  %v2256_v49 = vsel %vm323_vm11, %v3285_v59, %v2599_v62  ;;  %v2531_v59 = vld [vmem:[%s3869_s6 + $0x8] sm:$0xff]  ;;  %v2530_v4 = vld [vmem:[%s3869_s6] sm:$0xff]  ;;  %v2767_v62 = vld [vmem:[%s3862_s0 + $0x30] sm:$0xff] }
 0xa05   :  { %v2265_v23 = vsel %vm2258_vm14, %v2256_v49, %v2604_v27  ;;  %v2266_v24 = vsel %vm2258_vm14, %v2257_v3, %v2605_v39  ;;  %2383 = vmatpush.bf16.msrb.mxu1 %v2531_v59  ;;  %2534 = vmatpush.bf16.msrb.mxu3 %v2531_v59  ;;  %v2768_v39 = vld [vmem:[%s3862_s0 + $0x38] sm:$0xff] }
 0xa09   :  { %2384 = vmatpush.bf16.msrb.mxu1 %v2530_v4  ;;  %2535 = vmatpush.bf16.msrb.mxu3 %v2530_v4 }
 0xa0f   :  { %2512 = vmatmul.msk.bf16.gmra.mxu0 %vm40_vm0, %v2278_v43 }
 0xa35   :  { %v2608_v56 = vpop.permute.xlu2 %2607 }
 0xa36   :  { %v2610_v5 = vunpack.i.h.bf16 %v2608_v56  ;;  %v2609_v21 = vunpack.i.l.bf16 %v2608_v56 }
 0xa38   :  { %v2274_v50 = vsel %vm2267_vm15, %v2265_v23, %v2609_v21  ;;  %v2275_v46 = vsel %vm2267_vm15, %v2266_v24, %v2610_v5 }
 0xa39   :  { %v2279_v15 = vpack.c.bf16 %v2275_v46, %v2274_v50 }
 0xa3b   :  { %2513 = vmatmul.msk.bf16.gmra.mxu0 %vm40_vm0, %v2279_v15 }
 0xa6c   :  { %v2321_v16 = vpop.f32.mrf.mxu0 }
 0xa6d   :  { %v2322_v29 = vadd.f32 %v2613_v30, %v2321_v16 }
 0xa74   :  { %v2323_v51 = vpop.f32.mrf.mxu0 }
 0xa75   :  { %v2324_v60 = vadd.f32 %v2613_v30, %v2323_v51 }
 0xa77   :  { %v2341_v14 = vpack.c.bf16 %v2324_v60, %v2322_v29 }
 0xa79   :  { %2522 = vmatmul.msk.bf16.vlgmr.msrb.gmra.mxu1 %vm40_vm0, %v2341_v14 }
 0xa7c   :  { %v2326_v31 = vpop.f32.mrf.mxu0 }
 0xa7d   :  { %v2327_v32 = vadd.f32 %v2613_v30, %v2326_v31 }
 0xa84   :  { %v2328_v38 = vpop.f32.mrf.mxu0 }
 0xa85   :  { %v2329_v47 = vadd.f32 %v2613_v30, %v2328_v38 }
 0xa87   :  { %v2342_v34 = vpack.c.bf16 %v2329_v47, %v2327_v32 }
 0xa89   :  { %2523 = vmatmul.msk.bf16.gmra.mxu1 %vm40_vm0, %v2342_v34 }
 0xa8c   :  { %v2331_v26 = vpop.f32.mrf.mxu0 }
 0xa8d   :  { %v2332_v37 = vadd.f32 %v2613_v30, %v2331_v26 }
 0xa94   :  { %v2333_v0 = vpop.f32.mrf.mxu0 }
 0xa95   :  { %v2334_v48 = vadd.f32 %v2613_v30, %v2333_v0 }
 0xa97   :  { %v2343_v33 = vpack.c.bf16 %v2334_v48, %v2332_v37 }
 0xa99   :  { %2524 = vmatmul.msk.bf16.vlgmr.msrb.gmra.mxu3 %vm40_vm0, %v2343_v33 }
 0xab8   :  { %v2336_v22 = vpop.f32.mrf.mxu0 }
 0xab9   :  { %v2337_v45 = vadd.f32 %v2613_v30, %v2336_v22 }
 0xac0   :  { %v2338_v54 = vpop.f32.mrf.mxu0 }
 0xac1   :  { %v2339_v36 = vadd.f32 %v2613_v30, %v2338_v54 }
 0xac3   :  { %v2344_v61 = vpack.c.bf16 %v2339_v36, %v2337_v45 }
 0xac5   :  { %2525 = vmatmul.msk.bf16.gmra.mxu3 %vm40_vm0, %v2344_v61 }
 0xaf6   :  { %v2386_v1 = vpop.f32.mrf.mxu1 }
 0xaf7   :  { %v2387_v40 = vadd.f32 %v2614_v28, %v2386_v1 }
 0xaf9   :  { %v2406_v57 = vadd.f32 %v2761_v18, %v2387_v40 }
 0xafb   :  { %2414 = vst.msk [vmem:[%s3870_s8] sm:$0xff] %vm40_vm0, %v2406_v57 }
 0xafe   :  { %v2388_v2 = vpop.f32.mrf.mxu1 }
 0xaff   :  { %v2389_v7 = vadd.f32 %v2614_v28, %v2388_v2 }
 0xb01   :  { %v2407_v6 = vadd.f32 %v2762_v44, %v2389_v7 }
 0xb03   :  { %2415 = vst.msk [vmem:[%s3870_s8 + $0x8] sm:$0xff] %vm40_vm0, %v2407_v6 }
 0xb06   :  { %v2391_v19 = vpop.f32.mrf.mxu1 }
 0xb07   :  { %v2392_v42 = vadd.f32 %v2614_v28, %v2391_v19 }
 0xb09   :  { %v2408_v53 = vadd.f32 %v2763_v8, %v2392_v42 }
 0xb0b   :  { %2416 = vst.msk [vmem:[%s3870_s8 + $0x10] sm:$0xff] %vm40_vm0, %v2408_v53 }
 0xb0e   :  { %v2393_v41 = vpop.f32.mrf.mxu1 }
 0xb0f   :  { %v2394_v52 = vadd.f32 %v2614_v28, %v2393_v41 }
 0xb11   :  { %v2409_v12 = vadd.f32 %v2764_v13, %v2394_v52 }
 0xb13   :  { %2417 = vst.msk [vmem:[%s3870_s8 + $0x18] sm:$0xff] %vm40_vm0, %v2409_v12 }
 0xb1c   :  { %v2396_v11 = vpop.f32.mrf.mxu3 }
 0xb1d   :  { %v2397_v58 = vadd.f32 %v2614_v28, %v2396_v11 }
 0xb1f   :  { %v2410_v20 = vadd.f32 %v2765_v17, %v2397_v58 }
 0xb21   :  { %2418 = vst.msk [vmem:[%s3870_s8 + $0x20] sm:$0xff] %vm40_vm0, %v2410_v20 }
 0xb24   :  { %v2398_v35 = vpop.f32.mrf.mxu3 }
 0xb25   :  { %v2399_v25 = vadd.f32 %v2614_v28, %v2398_v35 }
 0xb27   :  { %v2411_v43 = vadd.f32 %v2766_v10, %v2399_v25 }
 0xb29   :  { %2419 = vst.msk [vmem:[%s3870_s8 + $0x28] sm:$0xff] %vm40_vm0, %v2411_v43 }
 0xb48   :  { %v2401_v63 = vpop.f32.mrf.mxu3 }
 0xb49   :  { %v2402_v55 = vadd.f32 %v2614_v28, %v2401_v63 }
 0xb4b   :  { %v2412_v9 = vadd.f32 %v2767_v62, %v2402_v55 }
 0xb4d   :  { %2420 = vst.msk [vmem:[%s3870_s8 + $0x30] sm:$0xff] %vm40_vm0, %v2412_v9 }
 0xb50   :  { %v2403_v3 = vpop.f32.mrf.mxu3 }
 0xb51   :  { %v2404_v49 = vadd.f32 %v2614_v28, %v2403_v3 }
 0xb53   :  { %v2413_v27 = vadd.f32 %v2768_v39, %v2404_v49 }
 0xb55   :  { %2421 = vst.msk [vmem:[%s3870_s8 + $0x38] sm:$0xff] %vm40_vm0, %v2413_v27 }

</bundles_post_ra>
